<compile_context>
chip_gen: v7x
topology: tpu7x:2x2x1
jax: 0.10.0
libtpu: 0.0.40
codegen_flags: <defaults>
</compile_context>

<pallas_src>
import jax
import jax.numpy as jnp
from jax.experimental import pallas as pl
from jax.experimental.pallas import tpu as pltpu

# Layer sizes exactly as in the PyTorch module: fc1, fc2, fc3, fc6, fc7, fc8, fc9.
LAYER_DIMS = [8, 128, 256, 512, 256, 128, 64, 8]
_LANE = 128


def _mlp_kernel(x_ref,
                w1, b1, w2, b2, w3, b3, w4, b4, w5, b5, w6, b6, w7, b7,
                o_ref):
    """One column-tile of the feature-major MLP.

    x_ref: (8, TM) bf16, o_ref: (8, TM) f32.
    Weights are bf16 (out_features, in_features); biases are f32 (out_features, 1).
    Each layer: W @ H  (MXU, f32 accumulate), +bias and ReLU in f32, cast to bf16.
    """

    def linear(w_ref, h_bf16, b_ref):
        acc = jnp.dot(w_ref[...], h_bf16, preferred_element_type=jnp.float32)
        return acc + b_ref[...]          # (out, TM) + (out, 1) broadcast over lanes

    def linear_relu(w_ref, h_bf16, b_ref):
        return jnp.maximum(linear(w_ref, h_bf16, b_ref), 0.0).astype(jnp.bfloat16)

    h = x_ref[...]                        # already bf16, lane-dense
    h = linear_relu(w1, h, b1)            # fc1 + relu
    h = linear_relu(w2, h, b2)            # fc2 + relu
    h = linear_relu(w3, h, b3)            # fc3 + relu
    h = linear_relu(w4, h, b4)            # fc6 + relu
    h = linear_relu(w5, h, b5)            # fc7 + relu
    h = linear_relu(w6, h, b6)            # fc8 + relu
    o_ref[...] = linear(w7, h, b7).astype(o_ref.dtype)   # fc9, no activation


def init_params(key):
    """Deterministic init mimicking nn.Linear default (uniform +/- 1/sqrt(fan_in)).

    Weights are kept PyTorch-native (out_features, in_features) and stored in
    bf16 (MXU-native operands). Biases are f32 with shape (out_features, 1).
    """
    params = []
    for i in range(len(LAYER_DIMS) - 1):
        fan_in, fan_out = LAYER_DIMS[i], LAYER_DIMS[i + 1]
        key, kw, kb = jax.random.split(key, 3)
        bound = 1.0 / jnp.sqrt(jnp.float32(fan_in))
        w = jax.random.uniform(kw, (fan_out, fan_in), jnp.float32, -bound, bound)
        b = jax.random.uniform(kb, (fan_out, 1), jnp.float32, -bound, bound)
        params.append((w.astype(jnp.bfloat16), b))
    return params


def _round_up(x, mult):
    return ((x + mult - 1) // mult) * mult


def fc_position_predictor(conditions, params, *, tm=1024):
    """conditions: (batch, interval, 8) -> (batch, interval, 8) f32."""
    batch, interval, feat = conditions.shape
    assert feat == LAYER_DIMS[0]
    out_feat = LAYER_DIMS[-1]

    m = batch * interval
    x2d = conditions.reshape(m, feat).astype(jnp.bfloat16)   # bf16 in the wrapper

    # Column tile: lane-aligned (multiple of 128). Small M collapses to one
    # tile; large M uses an even number of tiles so v7x's two TensorCores get
    # a balanced split of the "parallel" grid axis.
    m128 = max(_LANE, _round_up(m, _LANE))
    if m128 <= tm:
        tm_eff, n_tiles = m128, 1
    else:
        n_tiles = pl.cdiv(m128, tm)
        if n_tiles % 2:
            n_tiles += 1
        tm_eff = _round_up(pl.cdiv(m128, n_tiles), _LANE)
    m_pad = n_tiles * tm_eff

    if m_pad != m:
        x2d = jnp.pad(x2d, ((0, m_pad - m), (0, 0)))
    x_t = x2d.T                                              # (8, m_pad) feature-major

    # x/out are tiled over the grid; weights/biases use constant index_maps so
    # they're DMA'd once and stay resident in VMEM for the whole grid.
    in_specs = [pl.BlockSpec((feat, tm_eff), lambda i: (0, i))]
    flat_args = []
    for (w, b) in params:
        flat_args.extend([w, b])
        in_specs.append(pl.BlockSpec(w.shape, lambda i: (0, 0)))
        in_specs.append(pl.BlockSpec(b.shape, lambda i: (0, 0)))

    # Advisory cost estimate so XLA can overlap this call with neighbors.
    flops = 2 * m_pad * sum(LAYER_DIMS[i] * LAYER_DIMS[i + 1]
                            for i in range(len(LAYER_DIMS) - 1))
    weight_bytes = sum(int(w.size) * w.dtype.itemsize + int(b.size) * b.dtype.itemsize
                       for (w, b) in params)
    bytes_accessed = m_pad * feat * 2 + m_pad * out_feat * 4 + weight_bytes

    out_t = pl.pallas_call(
        _mlp_kernel,
        out_shape=jax.ShapeDtypeStruct((out_feat, m_pad), jnp.float32),
        grid_spec=pltpu.PrefetchScalarGridSpec(
            num_scalar_prefetch=0,
            grid=(n_tiles,),
            in_specs=in_specs,
            out_specs=pl.BlockSpec((out_feat, tm_eff), lambda i: (0, i)),
        ),
        compiler_params=pltpu.CompilerParams(
            dimension_semantics=("parallel",),   # 2-TC sharding on v7x
            vmem_limit_bytes=32 * 1024 * 1024,   # real footprint is ~a few MiB
        ),
        cost_estimate=pl.CostEstimate(
            flops=flops, transcendentals=0, bytes_accessed=bytes_accessed),
    )(x_t, *flat_args)

    out = out_t.T[:m]                                        # (m, 8)
    return out.reshape(batch, interval, out_feat)


def _reference(conditions, params):
    """Pure-JAX reference with matching numerics (bf16 operands, f32 accumulate)."""
    h = conditions.astype(jnp.bfloat16)
    n = len(params)
    for i, (w, b) in enumerate(params):
        acc = jnp.dot(h, w.T, preferred_element_type=jnp.float32) + b.reshape(-1)
        if i < n - 1:
            h = jnp.maximum(acc, 0.0).astype(jnp.bfloat16)
        else:
            h = acc
    return h


if __name__ == "__main__":
    key = jax.random.PRNGKey(0)
    kx, kp, kx2 = jax.random.split(key, 3)

    params = init_params(kp)

    # Small shape consistent with the module: (batch=2, interval=8, 8).
    batch, interval = 2, 8
    conditions = jax.random.normal(kx, (batch, interval, 8), jnp.float32)

    out = fc_position_predictor(conditions, params)
    out = jax.block_until_ready(out)
    ref = _reference(conditions, params)
    assert out.shape == (batch, interval, 8), out.shape
    assert jnp.allclose(out, ref, atol=2e-2, rtol=2e-2), "mismatch vs reference (small)"

    # Second case exercising the multi-tile grid + padding path
    # (M=1200 -> 2 tiles of 640 columns each, balanced across TCs on v7x).
    batch2, interval2 = 4, 300
    conditions2 = jax.random.normal(kx2, (batch2, interval2, 8), jnp.float32)
    out2 = fc_position_predictor(conditions2, params)
    out2 = jax.block_until_ready(out2)
    ref2 = _reference(conditions2, params)
    assert out2.shape == (batch2, interval2, 8), out2.shape
    assert jnp.allclose(out2, ref2, atol=2e-2, rtol=2e-2), "mismatch vs reference (tiled)"

    print("KERNEL_OK")
</pallas_src>

<mosaic_0001>
module attributes {stable_mosaic.version = 11 : i64} {
  func.func @_mlp_kernel(%arg0: i32, %arg1: memref<8x128xbf16, #tpu.memory_space<vmem>>, %arg2: memref<128x8xbf16, #tpu.memory_space<vmem>>, %arg3: memref<128x1xf32, #tpu.memory_space<vmem>>, %arg4: memref<256x128xbf16, #tpu.memory_space<vmem>>, %arg5: memref<256x1xf32, #tpu.memory_space<vmem>>, %arg6: memref<512x256xbf16, #tpu.memory_space<vmem>>, %arg7: memref<512x1xf32, #tpu.memory_space<vmem>>, %arg8: memref<256x512xbf16, #tpu.memory_space<vmem>>, %arg9: memref<256x1xf32, #tpu.memory_space<vmem>>, %arg10: memref<128x256xbf16, #tpu.memory_space<vmem>>, %arg11: memref<128x1xf32, #tpu.memory_space<vmem>>, %arg12: memref<64x128xbf16, #tpu.memory_space<vmem>>, %arg13: memref<64x1xf32, #tpu.memory_space<vmem>>, %arg14: memref<8x64xbf16, #tpu.memory_space<vmem>>, %arg15: memref<8x1xf32, #tpu.memory_space<vmem>>, %arg16: memref<8x128xf32, #tpu.memory_space<vmem>>) attributes {dimension_semantics = [#tpu.dimension_semantics<parallel>], iteration_bounds = array<i64: 1>, scalar_prefetch = 0 : i64, scratch_operands = 0 : i64, tpu.core_type = #tpu.core_type<tc>, window_params = [{transform_indices = @transform_0, window_bounds = array<i64: 8, 128>}, {pipeline_mode = #tpu.pipeline_mode<synchronous>, transform_indices = @transform_1, window_bounds = array<i64: 128, 8>}, {pipeline_mode = #tpu.pipeline_mode<synchronous>, transform_indices = @transform_2, window_bounds = array<i64: 128, 1>}, {pipeline_mode = #tpu.pipeline_mode<synchronous>, transform_indices = @transform_3, window_bounds = array<i64: 256, 128>}, {pipeline_mode = #tpu.pipeline_mode<synchronous>, transform_indices = @transform_4, window_bounds = array<i64: 256, 1>}, {pipeline_mode = #tpu.pipeline_mode<synchronous>, transform_indices = @transform_5, window_bounds = array<i64: 512, 256>}, {pipeline_mode = #tpu.pipeline_mode<synchronous>, transform_indices = @transform_6, window_bounds = array<i64: 512, 1>}, {pipeline_mode = #tpu.pipeline_mode<synchronous>, transform_indices = @transform_7, window_bounds = array<i64: 256, 512>}, {pipeline_mode = #tpu.pipeline_mode<synchronous>, transform_indices = @transform_8, window_bounds = array<i64: 256, 1>}, {pipeline_mode = #tpu.pipeline_mode<synchronous>, transform_indices = @transform_9, window_bounds = array<i64: 128, 256>}, {pipeline_mode = #tpu.pipeline_mode<synchronous>, transform_indices = @transform_10, window_bounds = array<i64: 128, 1>}, {pipeline_mode = #tpu.pipeline_mode<synchronous>, transform_indices = @transform_11, window_bounds = array<i64: 64, 128>}, {pipeline_mode = #tpu.pipeline_mode<synchronous>, transform_indices = @transform_12, window_bounds = array<i64: 64, 1>}, {pipeline_mode = #tpu.pipeline_mode<synchronous>, transform_indices = @transform_13, window_bounds = array<i64: 8, 64>}, {pipeline_mode = #tpu.pipeline_mode<synchronous>, transform_indices = @transform_14, window_bounds = array<i64: 8, 1>}, {transform_indices = @transform_15, window_bounds = array<i64: 8, 128>}]} {
    %c0 = arith.constant 0 : index
    %c0_0 = arith.constant 0 : index
    %0 = vector.load %arg1[%c0, %c0_0] : memref<8x128xbf16, #tpu.memory_space<vmem>>, vector<8x128xbf16>
    %c0_1 = arith.constant 0 : index
    %c0_2 = arith.constant 0 : index
    %1 = vector.load %arg2[%c0_1, %c0_2] : memref<128x8xbf16, #tpu.memory_space<vmem>>, vector<128x8xbf16>
    %cst = arith.constant dense<0.000000e+00> : vector<128x128xf32>
    %2 = tpu.matmul %1, %0, %cst {dimension_numbers = #tpu.dot_dimension_numbers<[1], [0], [0], [1], [0, 0, 1, 1], [], []>} : vector<128x8xbf16>, vector<8x128xbf16>, vector<128x128xf32> -> vector<128x128xf32>
    %c0_3 = arith.constant 0 : index
    %c0_4 = arith.constant 0 : index
    %3 = vector.load %arg3[%c0_3, %c0_4] : memref<128x1xf32, #tpu.memory_space<vmem>>, vector<128x1xf32>
    %4 = vector.broadcast %3 : vector<128x1xf32> to vector<128x128xf32>
    %5 = arith.addf %2, %4 : vector<128x128xf32>
    %cst_5 = arith.constant 0.000000e+00 : f32
    %6 = vector.broadcast %cst_5 : f32 to vector<128x128xf32>
    %7 = arith.maximumf %5, %6 : vector<128x128xf32>
    %8 = arith.truncf %7 : vector<128x128xf32> to vector<128x128xbf16>
    %c0_6 = arith.constant 0 : index
    %c0_7 = arith.constant 0 : index
    %9 = vector.load %arg4[%c0_6, %c0_7] : memref<256x128xbf16, #tpu.memory_space<vmem>>, vector<256x128xbf16>
    %cst_8 = arith.constant dense<0.000000e+00> : vector<256x128xf32>
    %10 = tpu.matmul %9, %8, %cst_8 {dimension_numbers = #tpu.dot_dimension_numbers<[1], [0], [0], [1], [0, 0, 1, 1], [], []>} : vector<256x128xbf16>, vector<128x128xbf16>, vector<256x128xf32> -> vector<256x128xf32>
    %c0_9 = arith.constant 0 : index
    %c0_10 = arith.constant 0 : index
    %11 = vector.load %arg5[%c0_9, %c0_10] : memref<256x1xf32, #tpu.memory_space<vmem>>, vector<256x1xf32>
    %12 = vector.broadcast %11 : vector<256x1xf32> to vector<256x128xf32>
    %13 = arith.addf %10, %12 : vector<256x128xf32>
    %cst_11 = arith.constant 0.000000e+00 : f32
    %14 = vector.broadcast %cst_11 : f32 to vector<256x128xf32>
    %15 = arith.maximumf %13, %14 : vector<256x128xf32>
    %16 = arith.truncf %15 : vector<256x128xf32> to vector<256x128xbf16>
    %c0_12 = arith.constant 0 : index
    %c0_13 = arith.constant 0 : index
    %17 = vector.load %arg6[%c0_12, %c0_13] : memref<512x256xbf16, #tpu.memory_space<vmem>>, vector<512x256xbf16>
    %cst_14 = arith.constant dense<0.000000e+00> : vector<512x128xf32>
    %18 = tpu.matmul %17, %16, %cst_14 {dimension_numbers = #tpu.dot_dimension_numbers<[1], [0], [0], [1], [0, 0, 1, 1], [], []>} : vector<512x256xbf16>, vector<256x128xbf16>, vector<512x128xf32> -> vector<512x128xf32>
    %c0_15 = arith.constant 0 : index
    %c0_16 = arith.constant 0 : index
    %19 = vector.load %arg7[%c0_15, %c0_16] : memref<512x1xf32, #tpu.memory_space<vmem>>, vector<512x1xf32>
    %20 = vector.broadcast %19 : vector<512x1xf32> to vector<512x128xf32>
    %21 = arith.addf %18, %20 : vector<512x128xf32>
    %cst_17 = arith.constant 0.000000e+00 : f32
    %22 = vector.broadcast %cst_17 : f32 to vector<512x128xf32>
    %23 = arith.maximumf %21, %22 : vector<512x128xf32>
    %24 = arith.truncf %23 : vector<512x128xf32> to vector<512x128xbf16>
    %c0_18 = arith.constant 0 : index
    %c0_19 = arith.constant 0 : index
    %25 = vector.load %arg8[%c0_18, %c0_19] : memref<256x512xbf16, #tpu.memory_space<vmem>>, vector<256x512xbf16>
    %cst_20 = arith.constant dense<0.000000e+00> : vector<256x128xf32>
    %26 = tpu.matmul %25, %24, %cst_20 {dimension_numbers = #tpu.dot_dimension_numbers<[1], [0], [0], [1], [0, 0, 1, 1], [], []>} : vector<256x512xbf16>, vector<512x128xbf16>, vector<256x128xf32> -> vector<256x128xf32>
    %c0_21 = arith.constant 0 : index
    %c0_22 = arith.constant 0 : index
    %27 = vector.load %arg9[%c0_21, %c0_22] : memref<256x1xf32, #tpu.memory_space<vmem>>, vector<256x1xf32>
    %28 = vector.broadcast %27 : vector<256x1xf32> to vector<256x128xf32>
    %29 = arith.addf %26, %28 : vector<256x128xf32>
    %cst_23 = arith.constant 0.000000e+00 : f32
    %30 = vector.broadcast %cst_23 : f32 to vector<256x128xf32>
    %31 = arith.maximumf %29, %30 : vector<256x128xf32>
    %32 = arith.truncf %31 : vector<256x128xf32> to vector<256x128xbf16>
    %c0_24 = arith.constant 0 : index
    %c0_25 = arith.constant 0 : index
    %33 = vector.load %arg10[%c0_24, %c0_25] : memref<128x256xbf16, #tpu.memory_space<vmem>>, vector<128x256xbf16>
    %cst_26 = arith.constant dense<0.000000e+00> : vector<128x128xf32>
    %34 = tpu.matmul %33, %32, %cst_26 {dimension_numbers = #tpu.dot_dimension_numbers<[1], [0], [0], [1], [0, 0, 1, 1], [], []>} : vector<128x256xbf16>, vector<256x128xbf16>, vector<128x128xf32> -> vector<128x128xf32>
    %c0_27 = arith.constant 0 : index
    %c0_28 = arith.constant 0 : index
    %35 = vector.load %arg11[%c0_27, %c0_28] : memref<128x1xf32, #tpu.memory_space<vmem>>, vector<128x1xf32>
    %36 = vector.broadcast %35 : vector<128x1xf32> to vector<128x128xf32>
    %37 = arith.addf %34, %36 : vector<128x128xf32>
    %cst_29 = arith.constant 0.000000e+00 : f32
    %38 = vector.broadcast %cst_29 : f32 to vector<128x128xf32>
    %39 = arith.maximumf %37, %38 : vector<128x128xf32>
    %40 = arith.truncf %39 : vector<128x128xf32> to vector<128x128xbf16>
    %c0_30 = arith.constant 0 : index
    %c0_31 = arith.constant 0 : index
    %41 = vector.load %arg12[%c0_30, %c0_31] : memref<64x128xbf16, #tpu.memory_space<vmem>>, vector<64x128xbf16>
    %cst_32 = arith.constant dense<0.000000e+00> : vector<64x128xf32>
    %42 = tpu.matmul %41, %40, %cst_32 {dimension_numbers = #tpu.dot_dimension_numbers<[1], [0], [0], [1], [0, 0, 1, 1], [], []>} : vector<64x128xbf16>, vector<128x128xbf16>, vector<64x128xf32> -> vector<64x128xf32>
    %c0_33 = arith.constant 0 : index
    %c0_34 = arith.constant 0 : index
    %43 = vector.load %arg13[%c0_33, %c0_34] : memref<64x1xf32, #tpu.memory_space<vmem>>, vector<64x1xf32>
    %44 = vector.broadcast %43 : vector<64x1xf32> to vector<64x128xf32>
    %45 = arith.addf %42, %44 : vector<64x128xf32>
    %cst_35 = arith.constant 0.000000e+00 : f32
    %46 = vector.broadcast %cst_35 : f32 to vector<64x128xf32>
    %47 = arith.maximumf %45, %46 : vector<64x128xf32>
    %48 = arith.truncf %47 : vector<64x128xf32> to vector<64x128xbf16>
    %c0_36 = arith.constant 0 : index
    %c0_37 = arith.constant 0 : index
    %49 = vector.load %arg14[%c0_36, %c0_37] : memref<8x64xbf16, #tpu.memory_space<vmem>>, vector<8x64xbf16>
    %cst_38 = arith.constant dense<0.000000e+00> : vector<8x128xf32>
    %50 = tpu.matmul %49, %48, %cst_38 {dimension_numbers = #tpu.dot_dimension_numbers<[1], [0], [0], [1], [0, 0, 1, 1], [], []>} : vector<8x64xbf16>, vector<64x128xbf16>, vector<8x128xf32> -> vector<8x128xf32>
    %c0_39 = arith.constant 0 : index
    %c0_40 = arith.constant 0 : index
    %51 = vector.load %arg15[%c0_39, %c0_40] : memref<8x1xf32, #tpu.memory_space<vmem>>, vector<8x1xf32>
    %52 = vector.broadcast %51 : vector<8x1xf32> to vector<8x128xf32>
    %53 = arith.addf %50, %52 : vector<8x128xf32>
    %c0_41 = arith.constant 0 : index
    %c0_42 = arith.constant 0 : index
    %54 = vector.load %arg16[%c0_41, %c0_42] : memref<8x128xf32, #tpu.memory_space<vmem>>, vector<8x128xf32>
    tpu.vector_store %arg16[%c0_41, %c0_42], %53 {strides = array<i32>} : memref<8x128xf32, #tpu.memory_space<vmem>>, vector<8x128xf32>,
    return
  }
  func.func @transform_0(%arg0: i32) -> (i32, i32) {
    %c0_i32 = arith.constant 0 : i32
    %c0_i32_0 = arith.constant 0 : i32
    return %c0_i32, %arg0 : i32, i32
  }
  func.func @transform_1(%arg0: i32) -> (i32, i32) {
    %c0_i32 = arith.constant 0 : i32
    %c0_i32_0 = arith.constant 0 : i32
    %c0_i32_1 = arith.constant 0 : i32
    return %c0_i32, %c0_i32_0 : i32, i32
  }
  func.func @transform_2(%arg0: i32) -> (i32, i32) {
    %c0_i32 = arith.constant 0 : i32
    %c0_i32_0 = arith.constant 0 : i32
    %c0_i32_1 = arith.constant 0 : i32
    return %c0_i32, %c0_i32_0 : i32, i32
  }
  func.func @transform_3(%arg0: i32) -> (i32, i32) {
    %c0_i32 = arith.constant 0 : i32
    %c0_i32_0 = arith.constant 0 : i32
    %c0_i32_1 = arith.constant 0 : i32
    return %c0_i32, %c0_i32_0 : i32, i32
  }
  func.func @transform_4(%arg0: i32) -> (i32, i32) {
    %c0_i32 = arith.constant 0 : i32
    %c0_i32_0 = arith.constant 0 : i32
    %c0_i32_1 = arith.constant 0 : i32
    return %c0_i32, %c0_i32_0 : i32, i32
  }
  func.func @transform_5(%arg0: i32) -> (i32, i32) {
    %c0_i32 = arith.constant 0 : i32
    %c0_i32_0 = arith.constant 0 : i32
    %c0_i32_1 = arith.constant 0 : i32
    return %c0_i32, %c0_i32_0 : i32, i32
  }
  func.func @transform_6(%arg0: i32) -> (i32, i32) {
    %c0_i32 = arith.constant 0 : i32
    %c0_i32_0 = arith.constant 0 : i32
    %c0_i32_1 = arith.constant 0 : i32
    return %c0_i32, %c0_i32_0 : i32, i32
  }
  func.func @transform_7(%arg0: i32) -> (i32, i32) {
    %c0_i32 = arith.constant 0 : i32
    %c0_i32_0 = arith.constant 0 : i32
    %c0_i32_1 = arith.constant 0 : i32
    return %c0_i32, %c0_i32_0 : i32, i32
  }
  func.func @transform_8(%arg0: i32) -> (i32, i32) {
    %c0_i32 = arith.constant 0 : i32
    %c0_i32_0 = arith.constant 0 : i32
    %c0_i32_1 = arith.constant 0 : i32
    return %c0_i32, %c0_i32_0 : i32, i32
  }
  func.func @transform_9(%arg0: i32) -> (i32, i32) {
    %c0_i32 = arith.constant 0 : i32
    %c0_i32_0 = arith.constant 0 : i32
    %c0_i32_1 = arith.constant 0 : i32
    return %c0_i32, %c0_i32_0 : i32, i32
  }
  func.func @transform_10(%arg0: i32) -> (i32, i32) {
    %c0_i32 = arith.constant 0 : i32
    %c0_i32_0 = arith.constant 0 : i32
    %c0_i32_1 = arith.constant 0 : i32
    return %c0_i32, %c0_i32_0 : i32, i32
  }
  func.func @transform_11(%arg0: i32) -> (i32, i32) {
    %c0_i32 = arith.constant 0 : i32
    %c0_i32_0 = arith.constant 0 : i32
    %c0_i32_1 = arith.constant 0 : i32
    return %c0_i32, %c0_i32_0 : i32, i32
  }
  func.func @transform_12(%arg0: i32) -> (i32, i32) {
    %c0_i32 = arith.constant 0 : i32
    %c0_i32_0 = arith.constant 0 : i32
    %c0_i32_1 = arith.constant 0 : i32
    return %c0_i32, %c0_i32_0 : i32, i32
  }
  func.func @transform_13(%arg0: i32) -> (i32, i32) {
    %c0_i32 = arith.constant 0 : i32
    %c0_i32_0 = arith.constant 0 : i32
    %c0_i32_1 = arith.constant 0 : i32
    return %c0_i32, %c0_i32_0 : i32, i32
  }
  func.func @transform_14(%arg0: i32) -> (i32, i32) {
    %c0_i32 = arith.constant 0 : i32
    %c0_i32_0 = arith.constant 0 : i32
    %c0_i32_1 = arith.constant 0 : i32
    return %c0_i32, %c0_i32_0 : i32, i32
  }
  func.func @transform_15(%arg0: i32) -> (i32, i32) {
    %c0_i32 = arith.constant 0 : i32
    %c0_i32_0 = arith.constant 0 : i32
    return %c0_i32, %arg0 : i32, i32
  }
}

</mosaic_0001>

<bundles_post_ra>
// kernel: tpu_custom_call.1
= control target key start
LH: loop header
LB: loop body
LE: loop exit
PB: predicated region body
PF: predicated region fallthrough
CT: control target
= control target key end

     0   :  { %vm230_vm0 = vcmask 1043456   ;;  %v6071_v3 = vmov 0   ;;  %vm205_vm1 = vcmask 64512   ;;  %s6055_s0 = inlined_call_operand.vmem [shape: bf16[8,128], index: 0, kind: input, shape index: {}]   ;;  %s6056_s1 = inlined_call_operand.vmem [shape: bf16[128,8], index: 1, kind: input, shape index: {}]   ;;  %s6057_s2 = inlined_call_operand.vmem [shape: f32[128,1], index: 2, kind: input, shape index: {}]   ;;  %s6058_s3 = inlined_call_operand.vmem [shape: bf16[256,128], index: 3, kind: input, shape index: {}]   ;;  %s6059_s4 = inlined_call_operand.vmem [shape: f32[256,1], index: 4, kind: input, shape index: {}]   ;;  %s6060_s5 = inlined_call_operand.vmem [shape: bf16[512,256], index: 5, kind: input, shape index: {}]   ;;  %s6061_s6 = inlined_call_operand.vmem [shape: f32[512,1], index: 6, kind: input, shape index: {}]   ;;  %s6062_s7 = inlined_call_operand.vmem [shape: bf16[256,512], index: 7, kind: input, shape index: {}]   ;;  %s6063_s8 = inlined_call_operand.vmem [shape: f32[256,1], index: 8, kind: input, shape index: {}]   ;;  %s6064_s9 = inlined_call_operand.vmem [shape: bf16[128,256], index: 9, kind: input, shape index: {}]   ;;  %s6065_s10 = inlined_call_operand.vmem [shape: f32[128,1], index: 10, kind: input, shape index: {}]   ;;  %s6066_s11 = inlined_call_operand.vmem [shape: bf16[64,128], index: 11, kind: input, shape index: {}]   ;;  %s6067_s12 = inlined_call_operand.vmem [shape: f32[64,1], index: 12, kind: input, shape index: {}]   ;;  %s6068_s13 = inlined_call_operand.vmem [shape: bf16[8,64], index: 13, kind: input, shape index: {}]   ;;  %s6069_s14 = inlined_call_operand.vmem [shape: f32[8,1], index: 14, kind: input, shape index: {}]   ;;  %s6070_s15 = inlined_call_operand.hbm [shape: f32[8,128], index: 15, kind: output, shape index: {}]  }
   0x1   :  { %v52_v0 = vld [vmem:[%s6055_s0] sm:$0xf]  ;;  %v71_v1 = vld [vmem:[%s6057_s2 + $0x10] sm:$0xff]  ;;  %4146 = vset.pattern.permute.xlu1 %v6071_v3  ;;  %4145 = vset.pattern.permute.xlu0 %v6071_v3  ;;  %v4148_v6 = vld [vmem:[%s6056_s1 + $0x8] sm:$0xff]  }
   0x2   :  { %v69_v2 = vld [vmem:[%s6057_s2] sm:$0xff]  ;;  %v232_v4 = vsel %vm230_vm0, %v52_v0, 0  ;;  %4140 = vmatprep.subr.msk.bf16.mxu1 %vm230_vm0, %v52_v0  ;;  %97 = vperm.xlu1 %4146, %v71_v1   ;;  %v72_v7 = vld [vmem:[%s6057_s2 + $0x18] sm:$0xff]  ;;  %v70_v8 = vld [vmem:[%s6057_s2 + $0x8] sm:$0xff] }
   0x3   :  { %v4147_v5 = vld [vmem:[%s6056_s1] sm:$0xff]   ;;  %87 = vperm.xlu0 %4145, %v69_v2   ;;  %4039 = vmatpush3.bf16.msra.mxu1 %v232_v4  ;;  %v4149_v9 = vld [vmem:[%s6056_s1 + $0x10] sm:$0xff]   ;;  %v74_v10 = vld [vmem:[%s6057_s2 + $0x28] sm:$0xff] }
   0x4   :  { %4040 = vmatprep.mubr.msk.bf16.mxu1 %vm205_vm1, %v4147_v5  ;;  %1652 = vmatprep.subr.bf16.mxu0 %v6071_v3  ;;  %v73_v11 = vld [vmem:[%s6057_s2 + $0x20] sm:$0xff]  ;;  %v4150_v12 = vld [vmem:[%s6056_s1 + $0x18] sm:$0xff]   ;;  %v75_v15 = vld [vmem:[%s6057_s2 + $0x30] sm:$0xff] }
   0x5   :  { %v76_v13 = vld [vmem:[%s6057_s2 + $0x38] sm:$0xff]  ;;  %v4151_v14 = vld [vmem:[%s6056_s1 + $0x20] sm:$0xff]   ;;  %v78_v16 = vld [vmem:[%s6057_s2 + $0x48] sm:$0xff] }
   0x6   :  { %4041 = vmatmul.mubr.msk.bf16.vlgmr.msra.gmra.mrb[0].mxu1 %vm205_vm1, %v4148_v6  ;;  %102 = vperm.xlu1 %4146, %v72_v7   ;;  %v77_v17 = vld [vmem:[%s6057_s2 + $0x40] sm:$0xff]  ;;  %v4152_v18 = vld [vmem:[%s6056_s1 + $0x28] sm:$0xff]   ;;  %v80_v19 = vld [vmem:[%s6057_s2 + $0x58] sm:$0xff] }
   0x7   :  { %92 = vperm.xlu0 %4145, %v70_v8   ;;  %4044 = vmatprep.mubr.msk.bf16.mxu1 %vm205_vm1, %v4149_v9  ;;  %v4153_v20 = vld [vmem:[%s6056_s1 + $0x30] sm:$0xff]   ;;  %v82_v22 = vld [vmem:[%s6057_s2 + $0x68] sm:$0xff]  ;;  %v81_v23 = vld [vmem:[%s6057_s2 + $0x60] sm:$0xff] }
   0x8   :  { %v79_v21 = vld [vmem:[%s6057_s2 + $0x50] sm:$0xff]  ;;  %v4154_v24 = vld [vmem:[%s6056_s1 + $0x38] sm:$0xff]   ;;  %v388_v27 = vld [vmem:[%s6059_s4 + $0x8] sm:$0xff] }
   0x9   :  { %v84_v25 = vld [vmem:[%s6057_s2 + $0x78] sm:$0xff]  ;;  %v83_v26 = vld [vmem:[%s6057_s2 + $0x70] sm:$0xff]  ;;  %v387_v28 = vld [vmem:[%s6059_s4] sm:$0xff] }
   0xa   :  { %112 = vperm.xlu1 %4146, %v74_v10   ;;  %v390_v29 = vld [vmem:[%s6059_s4 + $0x18] sm:$0xff]  ;;  %v389_v30 = vld [vmem:[%s6059_s4 + $0x10] sm:$0xff]  ;;  %v392_v31 = vld [vmem:[%s6059_s4 + $0x28] sm:$0xff] }
   0xb   :  { %107 = vperm.xlu0 %4145, %v73_v11   ;;  %v391_v32 = vld [vmem:[%s6059_s4 + $0x20] sm:$0xff]  ;;  %v394_v33 = vld [vmem:[%s6059_s4 + $0x38] sm:$0xff]  ;;  %v393_v34 = vld [vmem:[%s6059_s4 + $0x30] sm:$0xff] }
   0xc   :  { %v396_v35 = vld [vmem:[%s6059_s4 + $0x48] sm:$0xff]  ;;  %v395_v36 = vld [vmem:[%s6059_s4 + $0x40] sm:$0xff]  ;;  %v398_v37 = vld [vmem:[%s6059_s4 + $0x58] sm:$0xff] }
   0xd   :  { %v397_v38 = vld [vmem:[%s6059_s4 + $0x50] sm:$0xff]  ;;  %v400_v39 = vld [vmem:[%s6059_s4 + $0x68] sm:$0xff]  ;;  %v399_v40 = vld [vmem:[%s6059_s4 + $0x60] sm:$0xff] }
   0xe   :  { %4045 = vmatmul.mubr.msk.bf16.gmra.mrb[4].mxu1 %vm205_vm1, %v4150_v12  ;;  %122 = vperm.xlu1 %4146, %v76_v13   ;;  %v402_v41 = vld [vmem:[%s6059_s4 + $0x78] sm:$0xff]  ;;  %v401_v42 = vld [vmem:[%s6059_s4 + $0x70] sm:$0xff]  ;;  %v404_v43 = vld [vmem:[%s6059_s4 + $0x88] sm:$0xff] }
   0xf   :  { %117 = vperm.xlu0 %4145, %v75_v15   ;;  %4048 = vmatprep.mubr.msk.bf16.mxu1 %vm205_vm1, %v4151_v14  ;;  %v403_v44 = vld [vmem:[%s6059_s4 + $0x80] sm:$0xff]  ;;  %v406_v45 = vld [vmem:[%s6059_s4 + $0x98] sm:$0xff]  ;;  %v405_v46 = vld [vmem:[%s6059_s4 + $0x90] sm:$0xff] }
  0x10   :  { %v408_v47 = vld [vmem:[%s6059_s4 + $0xa8] sm:$0xff]  ;;  %v407_v48 = vld [vmem:[%s6059_s4 + $0xa0] sm:$0xff]  ;;  %v410_v49 = vld [vmem:[%s6059_s4 + $0xb8] sm:$0xff] }
  0x11   :  { %v409_v50 = vld [vmem:[%s6059_s4 + $0xb0] sm:$0xff]  ;;  %v412_v51 = vld [vmem:[%s6059_s4 + $0xc8] sm:$0xff]  ;;  %v411_v52 = vld [vmem:[%s6059_s4 + $0xc0] sm:$0xff] }
  0x12   :  { %132 = vperm.xlu1 %4146, %v78_v16   ;;  %v414_v53 = vld [vmem:[%s6059_s4 + $0xd8] sm:$0xff]  ;;  %v413_v54 = vld [vmem:[%s6059_s4 + $0xd0] sm:$0xff]  ;;  %v416_v55 = vld [vmem:[%s6059_s4 + $0xe8] sm:$0xff] }
  0x13   :  { %127 = vperm.xlu0 %4145, %v77_v17   ;;  %v415_v56 = vld [vmem:[%s6059_s4 + $0xe0] sm:$0xff]  ;;  %v418_v57 = vld [vmem:[%s6059_s4 + $0xf8] sm:$0xff]  ;;  %v417_v58 = vld [vmem:[%s6059_s4 + $0xf0] sm:$0xff] }
  0x14   :  { %v965_v59 = vld [vmem:[%s6061_s6 + $0x88] sm:$0xff]  ;;  %v964_v60 = vld [vmem:[%s6061_s6 + $0x80] sm:$0xff]  ;;  %v967_v63 = vld [vmem:[%s6061_s6 + $0x98] sm:$0xff] }
  0x15   :  { %v949_v61 = vld [vmem:[%s6061_s6 + $0x8] sm:$0xff]  ;;  %v948_v62 = vld [vmem:[%s6061_s6] sm:$0xff]  ;;  %v966_v0 = vld [vmem:[%s6061_s6 + $0x90] sm:$0xff] }
  0x16   :  { %4049 = vmatmul.mubr.msk.bf16.gmra.mrb[8].mxu1 %vm205_vm1, %v4152_v18  ;;  %142 = vperm.xlu1 %4146, %v80_v19   ;;  %v951_v1 = vld [vmem:[%s6061_s6 + $0x18] sm:$0xff]  ;;  %v950_v2 = vld [vmem:[%s6061_s6 + $0x10] sm:$0xff] }
  0x17   :  { %137 = vperm.xlu0 %4145, %v79_v21   ;;  %4052 = vmatprep.mubr.msk.bf16.mxu1 %vm205_vm1, %v4153_v20 }
  0x1a   :  { %152 = vperm.xlu1 %4146, %v82_v22  }
  0x1b   :  { %147 = vperm.xlu0 %4145, %v81_v23  }
  0x1e   :  { %4053 = vmatmul.mubr.msk.bf16.gmra.mrb[12].mxu1 %vm205_vm1, %v4154_v24  ;;  %162 = vperm.xlu1 %4146, %v84_v25  }
  0x1f   :  { %157 = vperm.xlu0 %4145, %v83_v26  }
  0x22   :  { %426 = vperm.xlu1 %4146, %v388_v27  }
  0x23   :  { %421 = vperm.xlu0 %4145, %v387_v28  }
  0x26   :  { %436 = vperm.xlu1 %4146, %v390_v29  }
  0x27   :  { %431 = vperm.xlu0 %4145, %v389_v30  }
  0x2a   :  { %446 = vperm.xlu1 %4146, %v392_v31  }
  0x2b   :  { %441 = vperm.xlu0 %4145, %v391_v32  }
  0x2e   :  { %456 = vperm.xlu1 %4146, %v394_v33  }
  0x2f   :  { %451 = vperm.xlu0 %4145, %v393_v34  }
  0x32   :  { %466 = vperm.xlu1 %4146, %v396_v35  }
  0x33   :  { %461 = vperm.xlu0 %4145, %v395_v36  }
  0x36   :  { %476 = vperm.xlu1 %4146, %v398_v37  }
  0x37   :  { %471 = vperm.xlu0 %4145, %v397_v38  }
  0x3a   :  { %486 = vperm.xlu1 %4146, %v400_v39  }
  0x3b   :  { %481 = vperm.xlu0 %4145, %v399_v40  }
  0x3e   :  { %496 = vperm.xlu1 %4146, %v402_v41  }
  0x3f   :  { %491 = vperm.xlu0 %4145, %v401_v42  }
  0x42   :  { %506 = vperm.xlu1 %4146, %v404_v43  }
  0x43   :  { %501 = vperm.xlu0 %4145, %v403_v44  }
  0x46   :  { %516 = vperm.xlu1 %4146, %v406_v45  }
  0x47   :  { %511 = vperm.xlu0 %4145, %v405_v46  }
  0x4a   :  { %526 = vperm.xlu1 %4146, %v408_v47  }
  0x4b   :  { %521 = vperm.xlu0 %4145, %v407_v48  }
  0x4e   :  { %536 = vperm.xlu1 %4146, %v410_v49  }
  0x4f   :  { %531 = vperm.xlu0 %4145, %v409_v50  }
  0x52   :  { %546 = vperm.xlu1 %4146, %v412_v51  }
  0x53   :  { %541 = vperm.xlu0 %4145, %v411_v52  }
  0x56   :  { %556 = vperm.xlu1 %4146, %v414_v53  }
  0x57   :  { %551 = vperm.xlu0 %4145, %v413_v54  }
  0x5a   :  { %566 = vperm.xlu1 %4146, %v416_v55  }
  0x5b   :  { %561 = vperm.xlu0 %4145, %v415_v56  }
  0x5e   :  { %576 = vperm.xlu1 %4146, %v418_v57  }
  0x5f   :  { %571 = vperm.xlu0 %4145, %v417_v58  }
  0x62   :  { %1099 = vperm.xlu1 %4146, %v965_v59  }
  0x63   :  { %1094 = vperm.xlu0 %4145, %v964_v60  }
  0x66   :  { %1019 = vperm.xlu1 %4146, %v949_v61  }
  0x67   :  { %1014 = vperm.xlu0 %4145, %v948_v62  }
  0x6a   :  { %1109 = vperm.xlu1 %4146, %v967_v63  }
  0x6b   :  { %1104 = vperm.xlu0 %4145, %v966_v0  }
  0x6c   :  { %20 = vsyncpa [#allocation3], 0  ;;  %v969_v4 = vld [vmem:[%s6061_s6 + $0xa8] sm:$0xff]  ;;  %v968_v5 = vld [vmem:[%s6061_s6 + $0xa0] sm:$0xff]  ;;  %vm4417_vm2 = vmmov 0   ;;  %vm3460_vm3 = vcmask 523264  }
  0x6d   :  { %v953_v6 = vld [vmem:[%s6061_s6 + $0x28] sm:$0xff]  ;;  %v952_v7 = vld [vmem:[%s6061_s6 + $0x20] sm:$0xff]  ;;  %v971_v8 = vld [vmem:[%s6061_s6 + $0xb8] sm:$0xff]  ;;  %s4418_s30 = smov [#allocation2]  }
  0x6e   :  { %1029 = vperm.xlu1 %4146, %v951_v1   ;;  %v970_v9 = vld [vmem:[%s6061_s6 + $0xb0] sm:$0xff]  ;;  %v955_v10 = vld [vmem:[%s6061_s6 + $0x38] sm:$0xff]  ;;  %v973_v12 = vld [vmem:[%s6061_s6 + $0xc8] sm:$0xff] }
  0x6f   :  { %1024 = vperm.xlu0 %4145, %v950_v2   ;;  %v954_v11 = vld [vmem:[%s6061_s6 + $0x30] sm:$0xff]  ;;  %v972_v13 = vld [vmem:[%s6061_s6 + $0xc0] sm:$0xff]  ;;  %v957_v17 = vld [vmem:[%s6061_s6 + $0x48] sm:$0xff] }
  0x70   :  { %v4155_v14 = vld [vmem:[%s6058_s3] sm:$0xff]   ;;  %v975_v20 = vld [vmem:[%s6061_s6 + $0xd8] sm:$0xff]  ;;  %v974_v22 = vld [vmem:[%s6061_s6 + $0xd0] sm:$0xff] }
  0x71   :  { %4072 = vmatprep.mubr.bf16.mxu1 %v4155_v14  ;;  %v956_v18 = vld [vmem:[%s6061_s6 + $0x40] sm:$0xff]  ;;  %v959_v23 = vld [vmem:[%s6061_s6 + $0x58] sm:$0xff]  ;;  %v958_v24 = vld [vmem:[%s6061_s6 + $0x50] sm:$0xff] }
  0x72   :  { %1119 = vperm.xlu1 %4146, %v969_v4   ;;  %v977_v27 = vld [vmem:[%s6061_s6 + $0xe8] sm:$0xff]  ;;  %v976_v28 = vld [vmem:[%s6061_s6 + $0xe0] sm:$0xff]  ;;  %v979_v33 = vld [vmem:[%s6061_s6 + $0xf8] sm:$0xff] }
  0x73   :  { %1114 = vperm.xlu0 %4145, %v968_v5   ;;  %v961_v30 = vld [vmem:[%s6061_s6 + $0x68] sm:$0xff]  ;;  %v960_v32 = vld [vmem:[%s6061_s6 + $0x60] sm:$0xff]  ;;  %v978_v34 = vld [vmem:[%s6061_s6 + $0xf0] sm:$0xff] }
  0x74   :  { %v963_v37 = vld [vmem:[%s6061_s6 + $0x78] sm:$0xff]  ;;  %v962_v38 = vld [vmem:[%s6061_s6 + $0x70] sm:$0xff]  ;;  %v997_v40 = vld [vmem:[%s6061_s6 + $0x188] sm:$0xff] }
  0x75   :  { %v996_v42 = vld [vmem:[%s6061_s6 + $0x180] sm:$0xff]  ;;  %v981_v43 = vld [vmem:[%s6061_s6 + $0x108] sm:$0xff]  ;;  %v999_v47 = vld [vmem:[%s6061_s6 + $0x198] sm:$0xff] }
  0x76   :  { %1039 = vperm.xlu1 %4146, %v953_v6   ;;  %v980_v44 = vld [vmem:[%s6061_s6 + $0x100] sm:$0xff]  ;;  %v998_v48 = vld [vmem:[%s6061_s6 + $0x190] sm:$0xff]  ;;  %v983_v50 = vld [vmem:[%s6061_s6 + $0x118] sm:$0xff] }
  0x77   :  { %1034 = vperm.xlu0 %4145, %v952_v7   ;;  %v982_v52 = vld [vmem:[%s6061_s6 + $0x110] sm:$0xff]  ;;  %v1001_v53 = vld [vmem:[%s6061_s6 + $0x1a8] sm:$0xff]  ;;  %v1000_v54 = vld [vmem:[%s6061_s6 + $0x1a0] sm:$0xff] }
  0x78   :  { %v985_v57 = vld [vmem:[%s6061_s6 + $0x128] sm:$0xff]  ;;  %v984_v58 = vld [vmem:[%s6061_s6 + $0x120] sm:$0xff]  ;;  %v1003_v60 = vld [vmem:[%s6061_s6 + $0x1b8] sm:$0xff] }
  0x79   :  { %v1002_v62 = vld [vmem:[%s6061_s6 + $0x1b0] sm:$0xff]  ;;  %v987_v63 = vld [vmem:[%s6061_s6 + $0x138] sm:$0xff]  ;;  %v1005_v4 = vld [vmem:[%s6061_s6 + $0x1c8] sm:$0xff] }
  0x7a   :  { %1129 = vperm.xlu1 %4146, %v971_v8   ;;  %v986_v0 = vld [vmem:[%s6061_s6 + $0x130] sm:$0xff]  ;;  %v1004_v5 = vld [vmem:[%s6061_s6 + $0x1c0] sm:$0xff]  ;;  %v989_v7 = vld [vmem:[%s6061_s6 + $0x148] sm:$0xff] }
  0x7b   :  { %1124 = vperm.xlu0 %4145, %v970_v9   ;;  %v988_v9 = vld [vmem:[%s6061_s6 + $0x140] sm:$0xff]  ;;  %v991_v14 = vld [vmem:[%s6061_s6 + $0x158] sm:$0xff] }
  0x7e   :  { %1049 = vperm.xlu1 %4146, %v955_v10   ;;  %v1007_v10 = vld [vmem:[%s6061_s6 + $0x1d8] sm:$0xff] }
  0x7f   :  { %1044 = vperm.xlu0 %4145, %v954_v11   ;;  %v1006_v11 = vld [vmem:[%s6061_s6 + $0x1d0] sm:$0xff] }
  0x81   :  { %v4738_v15 = vpop.permute.xlu1 %97 }
  0x82   :  { %v4740_v16 = vpop.permute.xlu0 %87  ;;  %1139 = vperm.xlu1 %4146, %v973_v12  }
  0x83   :  { %1134 = vperm.xlu0 %4145, %v972_v13  }
  0x85   :  { %v4753_v21 = vpop.permute.xlu1 %102 }
  0x86   :  { %1059 = vperm.xlu1 %4146, %v957_v17   ;;  %v4748_v19 = vpop.permute.xlu0 %92  ;;  %v990_v17 = vld [vmem:[%s6061_s6 + $0x150] sm:$0xff] }
  0x87   :  { %1054 = vperm.xlu0 %4145, %v956_v18  }
  0x89   :  { %v4766_v26 = vpop.permute.xlu1 %112 }
  0x8a   :  { %1149 = vperm.xlu1 %4146, %v975_v20   ;;  %v4764_v25 = vpop.permute.xlu0 %107  ;;  %v1009_v20 = vld [vmem:[%s6061_s6 + $0x1e8] sm:$0xff] }
  0x8b   :  { %1144 = vperm.xlu0 %4145, %v974_v22  }
  0x8d   :  { %v4779_v31 = vpop.permute.xlu1 %122 }
  0x8e   :  { %1069 = vperm.xlu1 %4146, %v959_v23   ;;  %v4774_v29 = vpop.permute.xlu0 %117  ;;  %v1008_v23 = vld [vmem:[%s6061_s6 + $0x1e0] sm:$0xff] }
  0x8f   :  { %1064 = vperm.xlu0 %4145, %v958_v24   ;;  %v993_v24 = vld [vmem:[%s6061_s6 + $0x168] sm:$0xff] }
  0x91   :  { %v4792_v36 = vpop.permute.xlu1 %132 }
  0x92   :  { %1159 = vperm.xlu1 %4146, %v977_v27   ;;  %v4790_v35 = vpop.permute.xlu0 %127  ;;  %v992_v27 = vld [vmem:[%s6061_s6 + $0x160] sm:$0xff] }
  0x93   :  { %1154 = vperm.xlu0 %4145, %v976_v28  }
  0x95   :  { %v4805_v41 = vpop.permute.xlu1 %142 }
  0x96   :  { %1079 = vperm.xlu1 %4146, %v961_v30   ;;  %v4800_v39 = vpop.permute.xlu0 %137 }
  0x97   :  { %1074 = vperm.xlu0 %4145, %v960_v32   ;;  %v1011_v32 = vld [vmem:[%s6061_s6 + $0x1f8] sm:$0xff] }
  0x99   :  { %v4818_v46 = vpop.permute.xlu1 %152 }
  0x9a   :  { %1169 = vperm.xlu1 %4146, %v979_v33   ;;  %v4816_v45 = vpop.permute.xlu0 %147  ;;  %v1010_v33 = vld [vmem:[%s6061_s6 + $0x1f0] sm:$0xff] }
  0x9b   :  { %1164 = vperm.xlu0 %4145, %v978_v34  }
  0x9d   :  { %v4831_v51 = vpop.permute.xlu1 %162 }
  0x9e   :  { %1089 = vperm.xlu1 %4146, %v963_v37   ;;  %v4826_v49 = vpop.permute.xlu0 %157 }
  0x9f   :  { %1084 = vperm.xlu0 %4145, %v962_v38  }
  0xa1   :  { %v4844_v56 = vpop.permute.xlu1 %426 }
  0xa2   :  { %1259 = vperm.xlu1 %4146, %v997_v40   ;;  %v4842_v55 = vpop.permute.xlu0 %421 }
  0xa3   :  { %1254 = vperm.xlu0 %4145, %v996_v42  }
  0xa5   :  { %v4857_v61 = vpop.permute.xlu1 %436 }
  0xa6   :  { %1179 = vperm.xlu1 %4146, %v981_v43   ;;  %v4852_v59 = vpop.permute.xlu0 %431 }
  0xa7   :  { %1174 = vperm.xlu0 %4145, %v980_v44   ;;  %v995_v44 = vld [vmem:[%s6061_s6 + $0x178] sm:$0xff] }
  0xa9   :  { %v4870_v2 = vpop.permute.xlu1 %446 }
  0xaa   :  { %1269 = vperm.xlu1 %4146, %v999_v47   ;;  %v4868_v1 = vpop.permute.xlu0 %441 }
  0xab   :  { %1264 = vperm.xlu0 %4145, %v998_v48  }
  0xad   :  { %v4883_v8 = vpop.permute.xlu1 %456 }
  0xae   :  { %1189 = vperm.xlu1 %4146, %v983_v50   ;;  %v4878_v6 = vpop.permute.xlu0 %451 }
  0xaf   :  { %1184 = vperm.xlu0 %4145, %v982_v52  }
  0xb1   :  { %v4896_v13 = vpop.permute.xlu1 %466 }
  0xb2   :  { %1279 = vperm.xlu1 %4146, %v1001_v53   ;;  %v4894_v12 = vpop.permute.xlu0 %461 }
  0xb3   :  { %1274 = vperm.xlu0 %4145, %v1000_v54  }
  0xb5   :  { %v4909_v22 = vpop.permute.xlu1 %476 }
  0xb6   :  { %1199 = vperm.xlu1 %4146, %v985_v57   ;;  %v4904_v18 = vpop.permute.xlu0 %471 }
  0xb7   :  { %1194 = vperm.xlu0 %4145, %v984_v58   ;;  %v2118_v58 = vld [vmem:[%s6063_s8 + $0x88] sm:$0xff] }
  0xb9   :  { %v4922_v30 = vpop.permute.xlu1 %486 }
  0xba   :  { %1289 = vperm.xlu1 %4146, %v1003_v60   ;;  %v4920_v28 = vpop.permute.xlu0 %481 }
  0xbb   :  { %1284 = vperm.xlu0 %4145, %v1002_v62  }
  0xbd   :  { %v4937_v47 = vpop.permute.xlu1 %496 }
  0xbe   :  { %1209 = vperm.xlu1 %4146, %v987_v63   ;;  %v4931_v40 = vpop.permute.xlu0 %491 }
  0xbf   :  { %1204 = vperm.xlu0 %4145, %v986_v0  }
  0xc2   :  { %1299 = vperm.xlu1 %4146, %v1005_v4   ;;  %v4950_v62 = vpop.permute.xlu0 %501 }
  0xc3   :  { %1294 = vperm.xlu0 %4145, %v1004_v5  }
  0xc6   :  { %1219 = vperm.xlu1 %4146, %v989_v7  }
  0xc7   :  { %1214 = vperm.xlu0 %4145, %v988_v9  }
  0xca   :  { %1309 = vperm.xlu1 %4146, %v1007_v10   ;;  %v2102_v10 = vld [vmem:[%s6063_s8 + $0x8] sm:$0xff] }
  0xcb   :  { %1304 = vperm.xlu0 %4145, %v1006_v11  }
  0xce   :  { %1229 = vperm.xlu1 %4146, %v991_v14  }
  0xcf   :  { %1224 = vperm.xlu0 %4145, %v990_v17   ;;  %v2101_v17 = vld [vmem:[%s6063_s8] sm:$0xff] }
  0xd2   :  { %1319 = vperm.xlu1 %4146, %v1009_v20  }
  0xd3   :  { %1314 = vperm.xlu0 %4145, %v1008_v23   ;;  %v4964_v23 = vpop.permute.xlu0 %511 }
  0xd6   :  { %1239 = vperm.xlu1 %4146, %v993_v24  }
  0xd7   :  { %1234 = vperm.xlu0 %4145, %v992_v27  }
  0xd9   :  { %v4042_v34 = vpop.f32.mrb[0].mxu1 }
  0xda   :  { %v277_v37 = vadd.f32 %v4042_v34, %v4738_v15  ;;  %v268_v38 = vpop.f32.mrb[1].mxu1  ;;  %1329 = vperm.xlu1 %4146, %v1011_v32   ;;  %v994_v15 = vld [vmem:[%s6061_s6 + $0x170] sm:$0xff] }
  0xdb   :  { %v269_v42 = vadd.f32 %v268_v38, %v4740_v16  ;;  %1324 = vperm.xlu0 %4145, %v1010_v33   ;;  %v4043_v43 = vpop.f32.mrb[2].mxu1 }
  0xdc   :  { %v280_v48 = vadd.f32 %v4043_v43, %v4753_v21  ;;  %v271_v50 = vpop.f32.mrb[3].mxu1  ;;  %v333_v53 = vmax.f32 %v277_v37, 0.0  ;;  %v2117_v21 = vld [vmem:[%s6063_s8 + $0x80] sm:$0xff] }
  0xdd   :  { %v272_v52 = vadd.f32 %v271_v50, %v4748_v19  ;;  %v331_v16 = vmax.f32 %v269_v42, 0.0  ;;  %v4952_v19 = vpop.permute.xlu1 %506 }
  0xde   :  { %v334_v54 = vmax.f32 %v280_v48, 0.0  ;;  %1249 = vperm.xlu1 %4146, %v995_v44   ;;  %v2104_v48 = vld [vmem:[%s6063_s8 + $0x18] sm:$0xff] }
  0xdf   :  { %v332_v57 = vmax.f32 %v272_v52, 0.0  ;;  %1244 = vperm.xlu0 %4145, %v994_v15   ;;  %v2103_v52 = vld [vmem:[%s6063_s8 + $0x10] sm:$0xff] }
  0xe0   :  { %v348_v60 = vpack.c.bf16 %v334_v54, %v333_v53 }
  0xe1   :  { %v347_v63 = vpack.c.bf16 %v332_v57, %v331_v16  ;;  %v4046_v0 = vpop.f32.mrb[4].mxu1  ;;  %v4969_v32 = vpop.permute.xlu1 %516 }
  0xe2   :  { %v293_v4 = vadd.f32 %v4046_v0, %v4774_v29  ;;  %v284_v5 = vpop.f32.mrb[5].mxu1  ;;  %2220 = vperm.xlu1 %4146, %v2118_v58  }
  0xe3   :  { %v285_v7 = vadd.f32 %v284_v5, %v4764_v25  ;;  %2215 = vperm.xlu0 %4145, %v2117_v21   ;;  %v4047_v9 = vpop.f32.mrb[6].mxu1  ;;  %4056 = vmatprep.subr.bf16.mxu1 %v347_v63  ;;  %v2121_v21 = vld [vmem:[%s6063_s8 + $0xa0] sm:$0xff] }
  0xe4   :  { %v296_v11 = vadd.f32 %v4047_v9, %v4779_v31  ;;  %v287_v14 = vpop.f32.mrb[7].mxu1  ;;  %4057 = vmatpush3.bf16.msra.mxu1 %v347_v63  ;;  %v337_v20 = vmax.f32 %v293_v4, 0.0  ;;  %v2120_v31 = vld [vmem:[%s6063_s8 + $0x98] sm:$0xff] }
  0xe5   :  { %v288_v29 = vadd.f32 %v287_v14, %v4766_v26  ;;  %4058 = vmatprep.subr.bf16.mxu1 %v348_v60  ;;  %v335_v24 = vmax.f32 %v285_v7, 0.0  ;;  %v2119_v26 = vld [vmem:[%s6063_s8 + $0x90] sm:$0xff] }
  0xe6   :  { %v338_v25 = vmax.f32 %v296_v11, 0.0  ;;  %2140 = vperm.xlu1 %4146, %v2102_v10   ;;  %v2106_v10 = vld [vmem:[%s6063_s8 + $0x28] sm:$0xff] }
  0xe7   :  { %v336_v27 = vmax.f32 %v288_v29, 0.0  ;;  %2135 = vperm.xlu0 %4145, %v2101_v17  }
  0xe8   :  { %v350_v33 = vpack.c.bf16 %v338_v25, %v337_v20  ;;  %4059 = vmatpush3.bf16.msra.mxu1 %v348_v60 }
  0xe9   :  { %v349_v34 = vpack.c.bf16 %v336_v27, %v335_v24  ;;  %v4050_v37 = vpop.f32.mrb[8].mxu1  ;;  %v2124_v27 = vld [vmem:[%s6063_s8 + $0xb8] sm:$0xff] }
  0xea   :  { %v309_v38 = vadd.f32 %v4050_v37, %v4800_v39  ;;  %v300_v42 = vpop.f32.mrb[9].mxu1  ;;  %2230 = vperm.xlu1 %4146, %v2120_v31   ;;  %v4983_v39 = vpop.permute.xlu0 %521  ;;  %v2123_v31 = vld [vmem:[%s6063_s8 + $0xb0] sm:$0xff] }
  0xeb   :  { %v301_v43 = vadd.f32 %v300_v42, %v4790_v35  ;;  %2225 = vperm.xlu0 %4145, %v2119_v26   ;;  %v4051_v44 = vpop.f32.mrb[10].mxu1  ;;  %4060 = vmatprep.subr.bf16.mxu1 %v349_v34  ;;  %v4986_v35 = vpop.permute.xlu1 %526  ;;  %v2107_v37 = vld [vmem:[%s6063_s8 + $0x30] sm:$0xff]  ;;  %v2126_v42 = vld [vmem:[%s6063_s8 + $0xc8] sm:$0xff] }
  0xec   :  { %v312_v50 = vadd.f32 %v4051_v44, %v4805_v41  ;;  %v303_v15 = vpop.f32.mrb[11].mxu1  ;;  %4061 = vmatpush3.bf16.msra.mxu1 %v349_v34  ;;  %v341_v54 = vmax.f32 %v309_v38, 0.0  ;;  %v2122_v41 = vld [vmem:[%s6063_s8 + $0xa8] sm:$0xff]  ;;  %v2108_v34 = vld [vmem:[%s6063_s8 + $0x38] sm:$0xff] }
  0xed   :  { %v304_v53 = vadd.f32 %v303_v15, %v4792_v36  ;;  %4062 = vmatprep.subr.bf16.mxu1 %v350_v33  ;;  %v339_v57 = vmax.f32 %v301_v43, 0.0  ;;  %v4156_v43 = vld [vmem:[%s6058_s3 + $0x8] sm:$0xff]  }
  0xee   :  { %v342_v16 = vmax.f32 %v312_v50, 0.0  ;;  %2150 = vperm.xlu1 %4146, %v2104_v48   ;;  %v4995_v5 = vpop.permute.xlu0 %531  ;;  %v2125_v48 = vld [vmem:[%s6063_s8 + $0xc0] sm:$0xff]  ;;  %v4157_v50 = vld [vmem:[%s6058_s3 + $0x10] sm:$0xff]   ;;  %v2110_v15 = vld [vmem:[%s6063_s8 + $0x48] sm:$0xff] }
  0xef   :  { %v340_v58 = vmax.f32 %v304_v53, 0.0  ;;  %2145 = vperm.xlu0 %4145, %v2103_v52   ;;  %v5001_v11 = vpop.permute.xlu1 %536  ;;  %v2109_v52 = vld [vmem:[%s6063_s8 + $0x40] sm:$0xff] }
  0xf0   :  { %v352_v60 = vpack.c.bf16 %v342_v16, %v341_v54  ;;  %4063 = vmatpush3.bf16.msra.mxu1 %v350_v33  ;;  %v2128_v16 = vld [vmem:[%s6063_s8 + $0xd8] sm:$0xff] }
  0xf1   :  { %v351_v36 = vpack.c.bf16 %v340_v58, %v339_v57  ;;  %v4054_v63 = vpop.f32.mrb[12].mxu1  ;;  %v4158_v57 = vld [vmem:[%s6058_s3 + $0x18] sm:$0xff]   ;;  %v2127_v58 = vld [vmem:[%s6063_s8 + $0xd0] sm:$0xff] }
  0xf2   :  { %v325_v0 = vadd.f32 %v4054_v63, %v4826_v49  ;;  %v316_v4 = vpop.f32.mrb[13].mxu1  ;;  %2240 = vperm.xlu1 %4146, %v2122_v41   ;;  %v2105_v49 = vld [vmem:[%s6063_s8 + $0x20] sm:$0xff]  ;;  %v5014_v33 = vpop.permute.xlu0 %541  ;;  %v2111_v63 = vld [vmem:[%s6063_s8 + $0x50] sm:$0xff] }
  0xf3   :  { %v317_v7 = vadd.f32 %v316_v4, %v4816_v45  ;;  %2235 = vperm.xlu0 %4145, %v2121_v21   ;;  %v4055_v9 = vpop.f32.mrb[14].mxu1  ;;  %4064 = vmatprep.subr.bf16.mxu1 %v351_v36  ;;  %v5016_v26 = vpop.permute.xlu1 %546  ;;  %v4159_v41 = vld [vmem:[%s6058_s3 + $0x20] sm:$0xff]   ;;  %v2112_v21 = vld [vmem:[%s6063_s8 + $0x58] sm:$0xff]  ;;  %v4160_v4 = vld [vmem:[%s6058_s3 + $0x28] sm:$0xff]  }
  0xf4   :  { %v328_v14 = vadd.f32 %v4055_v9, %v4831_v51  ;;  %v319_v17 = vpop.f32.mrb[15].mxu1  ;;  %4065 = vmatpush3.bf16.msra.mxu1 %v351_v36  ;;  %v345_v45 = vmax.f32 %v325_v0, 0.0  ;;  %v2130_v0 = vld [vmem:[%s6063_s8 + $0xe8] sm:$0xff]  ;;  %v4161_v9 = vld [vmem:[%s6058_s3 + $0x30] sm:$0xff]  }
  0xf5   :  { %v320_v29 = vadd.f32 %v319_v17, %v4818_v46  ;;  %4066 = vmatprep.subr.bf16.mxu1 %v352_v60  ;;  %v343_v25 = vmax.f32 %v317_v7, 0.0  ;;  %v2129_v7 = vld [vmem:[%s6063_s8 + $0xe0] sm:$0xff]  ;;  %v2114_v17 = vld [vmem:[%s6063_s8 + $0x68] sm:$0xff] }
  0xf6   :  { %v346_v20 = vmax.f32 %v328_v14, 0.0  ;;  %2160 = vperm.xlu1 %4146, %v2106_v10   ;;  %v5024_v38 = vpop.permute.xlu0 %551 }
  0xf7   :  { %v344_v24 = vmax.f32 %v320_v29, 0.0  ;;  %2155 = vperm.xlu0 %4145, %v2105_v49   ;;  %v5032_v44 = vpop.permute.xlu1 %556  ;;  %v2113_v49 = vld [vmem:[%s6063_s8 + $0x60] sm:$0xff] }
  0xf8   :  { %v354_v51 = vpack.c.bf16 %v346_v20, %v345_v45  ;;  %4067 = vmatpush3.bf16.msra.mxu1 %v352_v60  ;;  %v2132_v45 = vld [vmem:[%s6063_s8 + $0xf8] sm:$0xff] }
  0xf9   :  { %v353_v46 = vpack.c.bf16 %v344_v24, %v343_v25  ;;  %v4162_v20 = vld [vmem:[%s6058_s3 + $0x38] sm:$0xff]   ;;  %v2131_v24 = vld [vmem:[%s6063_s8 + $0xf0] sm:$0xff] }
  0xfa   :  { %2250 = vperm.xlu1 %4146, %v2124_v27   ;;  %v5046_v53 = vpop.permute.xlu0 %561  ;;  %v4163_v27 = vld [vmem:[%s6058_s3 + $0x40] sm:$0xff]  }
  0xfb   :  { %2245 = vperm.xlu0 %4145, %v2123_v31   ;;  %4068 = vmatprep.subr.bf16.mxu1 %v353_v46  ;;  %v5048_v54 = vpop.permute.xlu1 %566  ;;  %v2115_v31 = vld [vmem:[%s6063_s8 + $0x70] sm:$0xff] }
  0xfc   :  { %4069 = vmatpush3.bf16.msra.mxu1 %v353_v46 }
  0xfd   :  { %4070 = vmatprep.subr.bf16.mxu1 %v354_v51 }
  0xfe   :  { %2170 = vperm.xlu1 %4146, %v2108_v34   ;;  %v5062_v60 = vpop.permute.xlu0 %571 }
  0xff   :  { %2165 = vperm.xlu0 %4145, %v2107_v37   ;;  %v5067_v36 = vpop.permute.xlu1 %576  ;;  %v3000_v37 = vld [vmem:[%s6065_s10 + $0x8] sm:$0xff] }
 0x100   :  { %4071 = vmatpush3.bf16.msra.mxu1 %v354_v51  ;;  %v2116_v51 = vld [vmem:[%s6063_s8 + $0x78] sm:$0xff] }
 0x102   :  { %2260 = vperm.xlu1 %4146, %v2126_v42   ;;  %v5084_v10 = vpop.permute.xlu0 %1094  ;;  %v4164_v42 = vld [vmem:[%s6058_s3 + $0x48] sm:$0xff]  }
 0x103   :  { %2255 = vperm.xlu0 %4145, %v2125_v48   ;;  %4073 = vmatmul.mubr.bf16.vlgmr.msra.gmra.mrb[16].mxu1 %v4156_v43  ;;  %v5086_v14 = vpop.permute.xlu1 %1099  ;;  %v2999_v43 = vld [vmem:[%s6065_s10] sm:$0xff]  ;;  %v4165_v48 = vld [vmem:[%s6058_s3 + $0x50] sm:$0xff]  }
 0x104   :  { %4076 = vmatprep.mubr.bf16.mxu1 %v4157_v50 }
 0x106   :  { %2180 = vperm.xlu1 %4146, %v2110_v15   ;;  %v5094_v29 = vpop.permute.xlu0 %1014  ;;  %v3002_v15 = vld [vmem:[%s6065_s10 + $0x18] sm:$0xff] }
 0x107   :  { %2175 = vperm.xlu0 %4145, %v2109_v52   ;;  %v5102_v25 = vpop.permute.xlu1 %1019 }
 0x10a   :  { %2270 = vperm.xlu1 %4146, %v2128_v16   ;;  %v5116_v46 = vpop.permute.xlu0 %1104  ;;  %v3001_v16 = vld [vmem:[%s6065_s10 + $0x10] sm:$0xff] }
 0x10b   :  { %2265 = vperm.xlu0 %4145, %v2127_v58   ;;  %4077 = vmatmul.mubr.bf16.gmra.mrb[20].mxu1 %v4158_v57  ;;  %v5118_v34 = vpop.permute.xlu1 %1109  ;;  %v3004_v57 = vld [vmem:[%s6065_s10 + $0x28] sm:$0xff]  ;;  %v4166_v58 = vld [vmem:[%s6058_s3 + $0x58] sm:$0xff]  }
 0x10c   :  { %4080 = vmatprep.mubr.bf16.mxu1 %v4159_v41  ;;  %v3003_v41 = vld [vmem:[%s6065_s10 + $0x20] sm:$0xff] }
 0x10e   :  { %2190 = vperm.xlu1 %4146, %v2112_v21   ;;  %v5132_v50 = vpop.permute.xlu0 %1024  ;;  %v4167_v21 = vld [vmem:[%s6058_s3 + $0x60] sm:$0xff]  }
 0x10f   :  { %2185 = vperm.xlu0 %4145, %v2111_v63   ;;  %v5137_v52 = vpop.permute.xlu1 %1029 }
 0x112   :  { %2280 = vperm.xlu1 %4146, %v2130_v0   ;;  %v5154_v63 = vpop.permute.xlu0 %1114 }
 0x113   :  { %2275 = vperm.xlu0 %4145, %v2129_v7   ;;  %4081 = vmatmul.mubr.bf16.gmra.mrb[24].mxu1 %v4160_v4  ;;  %6073 = vst [vmem:[#allocation5_spill] sm:$0xff] %v5154_v63  ;;  %v5156_v0 = vpop.permute.xlu1 %1119  ;;  %v3006_v4 = vld [vmem:[%s6065_s10 + $0x38] sm:$0xff]  ;;  %v3005_v7 = vld [vmem:[%s6065_s10 + $0x30] sm:$0xff] }
 0x114   :  { %4084 = vmatprep.mubr.bf16.mxu1 %v4161_v9  ;;  %6074 = vst [vmem:[#allocation6_spill] sm:$0xff] %v5156_v0 }
 0x116   :  { %2200 = vperm.xlu1 %4146, %v2114_v17   ;;  %v5164_v9 = vpop.permute.xlu0 %1034  ;;  %v3008_v17 = vld [vmem:[%s6065_s10 + $0x48] sm:$0xff] }
 0x117   :  { %2195 = vperm.xlu0 %4145, %v2113_v49   ;;  %v4168_v49 = vld [vmem:[%s6058_s3 + $0x68] sm:$0xff]  }
 0x11a   :  { %2290 = vperm.xlu1 %4146, %v2132_v45   ;;  %v5172_v45 = vpop.permute.xlu1 %1039 }
 0x11b   :  { %2285 = vperm.xlu0 %4145, %v2131_v24   ;;  %4085 = vmatmul.mubr.bf16.gmra.mrb[28].mxu1 %v4162_v20  ;;  %v3007_v20 = vld [vmem:[%s6065_s10 + $0x40] sm:$0xff]  ;;  %v4169_v24 = vld [vmem:[%s6058_s3 + $0x70] sm:$0xff]  }
 0x11c   :  { %4088 = vmatprep.mubr.bf16.mxu1 %v4163_v27  ;;  %v3010_v27 = vld [vmem:[%s6065_s10 + $0x58] sm:$0xff] }
 0x11e   :  { %2210 = vperm.xlu1 %4146, %v2116_v51   ;;  %v3009_v51 = vld [vmem:[%s6065_s10 + $0x50] sm:$0xff] }
 0x11f   :  { %2205 = vperm.xlu0 %4145, %v2115_v31   ;;  %v5186_v31 = vpop.permute.xlu0 %1124 }
 0x120   :  { %6075 = vst [vmem:[#allocation7_spill] sm:$0xff] %v5186_v31 }
 0x122   :  { %3022 = vperm.xlu1 %4146, %v3000_v37   ;;  %v5188_v37 = vpop.permute.xlu1 %1129 }
 0x123   :  { %3017 = vperm.xlu0 %4145, %v2999_v43   ;;  %4089 = vmatmul.mubr.bf16.gmra.mrb[32].mxu1 %v4164_v42  ;;  %6076 = vst [vmem:[#allocation8_spill] sm:$0xff] %v5188_v37  ;;  %v3012_v42 = vld [vmem:[%s6065_s10 + $0x68] sm:$0xff]  ;;  %v4170_v43 = vld [vmem:[%s6058_s3 + $0x78] sm:$0xff]  }
 0x124   :  { %4092 = vmatprep.mubr.bf16.mxu1 %v4165_v48  ;;  %v3011_v48 = vld [vmem:[%s6065_s10 + $0x60] sm:$0xff] }
 0x126   :  { %3032 = vperm.xlu1 %4146, %v3002_v15   ;;  %v5199_v15 = vpop.permute.xlu0 %1044 }
 0x127   :  { %3027 = vperm.xlu0 %4145, %v3001_v16   ;;  %v3014_v16 = vld [vmem:[%s6065_s10 + $0x78] sm:$0xff] }
 0x12a   :  { %3042 = vperm.xlu1 %4146, %v3004_v57   ;;  %v5204_v57 = vpop.permute.xlu1 %1049 }
 0x12b   :  { %3037 = vperm.xlu0 %4145, %v3003_v41   ;;  %4093 = vmatmul.mubr.bf16.gmra.mrb[36].mxu1 %v4166_v58  ;;  %v3013_v58 = vld [vmem:[%s6065_s10 + $0x70] sm:$0xff]  ;;  %v3305_v41 = vld [vmem:[%s6067_s12 + $0x8] sm:$0xff]  ;;  %s3511_s10 = sshll.u32 %s4418_s30, 4  ;;  %s3512_s10 = int_to_ptr.vmem [resolvable:$true] %s3511_s10 }
 0x12c   :  { %4096 = vmatprep.mubr.bf16.mxu1 %v4167_v21  ;;  %v3304_v21 = vld [vmem:[%s6067_s12] sm:$0xff]  ;;  %s4391_s16 = scalar_lea.vmem %s3512_s10, 128  ;;  %p4396_p1 = scmp.lt.s32.totalorder %s3512_s10, %s3512_s10 }
 0x12d   :  { %p4392_p0 = scmp.ne.s32.totalorder %s3512_s10, %s4391_s16  ;;  %p4397_p2 = scmp.lt.s32.totalorder %s4391_s16, %s4391_s16 }
 0x12e   :  { %3052 = vperm.xlu1 %4146, %v3006_v4   ;;  %v5215_v4 = vpop.permute.xlu0 %1134 }
 0x12f   :  { %3047 = vperm.xlu0 %4145, %v3005_v7   ;;  %6077 = vst [vmem:[#allocation9_spill] sm:$0xff] %v5215_v4  ;;  %v5217_v7 = vpop.permute.xlu1 %1139  ;;  %p4398_p3 = por %p4397_p2, %p4396_p1 }
 0x130   :  { %6078 = vst [vmem:[#allocation10_spill] sm:$0xff] %v5217_v7 }
 0x131   :  { %p4399_p4 = pnand %p4398_p3, %p4392_p0 }
 0x132   :  { %3062 = vperm.xlu1 %4146, %v3008_v17   ;;  %v3307_v17 = vld [vmem:[%s6067_s12 + $0x18] sm:$0xff] }
 0x133   :  { %3057 = vperm.xlu0 %4145, %v3007_v20   ;;  %4097 = vmatmul.mubr.bf16.gmra.mrb[40].mxu1 %v4168_v49  ;;  %v3306_v49 = vld [vmem:[%s6067_s12 + $0x10] sm:$0xff]  ;;  %v5225_v20 = vpop.permute.xlu0 %1054 }
 0x134   :  { %4100 = vmatprep.mubr.bf16.mxu1 %v4169_v24  ;;  %v3309_v24 = vld [vmem:[%s6067_s12 + $0x28] sm:$0xff] }
 0x136   :  { %3072 = vperm.xlu1 %4146, %v3010_v27   ;;  %v5230_v27 = vpop.permute.xlu1 %1059 }
 0x137   :  { %3067 = vperm.xlu0 %4145, %v3009_v51   ;;  %v3308_v51 = vld [vmem:[%s6067_s12 + $0x20] sm:$0xff] }
 0x13a   :  { %3082 = vperm.xlu1 %4146, %v3012_v42   ;;  %v3311_v42 = vld [vmem:[%s6067_s12 + $0x38] sm:$0xff] }
 0x13b   :  { %3077 = vperm.xlu0 %4145, %v3011_v48   ;;  %4101 = vmatmul.mubr.bf16.gmra.mrb[44].mxu1 %v4170_v43  ;;  %v3310_v43 = vld [vmem:[%s6067_s12 + $0x30] sm:$0xff]  ;;  %v5241_v48 = vpop.permute.xlu0 %1144 }
 0x13c   :  { %6079 = vst [vmem:[#allocation11_spill] sm:$0xff] %v5241_v48 }
 0x13e   :  { %3092 = vperm.xlu1 %4146, %v3014_v16   ;;  %v5243_v16 = vpop.permute.xlu1 %1149 }
 0x13f   :  { %3087 = vperm.xlu0 %4145, %v3013_v58   ;;  %6080 = vst [vmem:[#allocation12_spill] sm:$0xff] %v5243_v16  ;;  %v3454_v58 = vld [vmem:[%s6069_s14] sm:$0xff] }
 0x142   :  { %3319 = vperm.xlu1 %4146, %v3305_v41   ;;  %v5248_v41 = vpop.permute.xlu0 %1064 }
 0x143   :  { %3314 = vperm.xlu0 %4145, %v3304_v21   ;;  %v4173_v21 = vld [vmem:[%s6060_s5 + $0x4] ss:$8 sps:$4 sm:$0xff]  }
 0x144   :  { %1684 = vmatprep.mubr.bf16.mxu0 %v4173_v21 }
 0x146   :  { %3329 = vperm.xlu1 %4146, %v3307_v17  }
 0x147   :  { %3324 = vperm.xlu0 %4145, %v3306_v49  }
 0x14a   :  { %3339 = vperm.xlu1 %4146, %v3309_v24  }
 0x14b   :  { %3334 = vperm.xlu0 %4145, %v3308_v51  }
 0x14e   :  { %3349 = vperm.xlu1 %4146, %v3311_v42  }
 0x14f   :  { %3344 = vperm.xlu0 %4145, %v3310_v43  }
 0x153   :  { %3457 = vperm.xlu0 %4145, %v3454_v58  }
 0x1d6   :  { %v4074_v17 = vpop.f32.mrb[16].mxu1 }
 0x1d7   :  { %v718_v49 = vadd.f32 %v4074_v17, %v4852_v59  ;;  %v709_v24 = vpop.f32.mrb[17].mxu1 }
 0x1d8   :  { %v710_v51 = vadd.f32 %v709_v24, %v4842_v55  ;;  %v4075_v42 = vpop.f32.mrb[18].mxu1  ;;  %v6081_v24 = vmov 0  }
 0x1d9   :  { %v721_v43 = vadd.f32 %v4075_v42, %v4857_v61  ;;  %v712_v3 = vpop.f32.mrb[19].mxu1  ;;  %v838_v48 = vmax.f32 %v718_v49, 0.0 }
 0x1da   :  { %v713_v16 = vadd.f32 %v712_v3, %v4844_v56  ;;  %v836_v58 = vmax.f32 %v710_v51, 0.0 }
 0x1db   :  { %v839_v7 = vmax.f32 %v721_v43, 0.0 }
 0x1dc   :  { %v837_v4 = vmax.f32 %v713_v16, 0.0 }
 0x1dd   :  { %v869_v37 = vpack.c.bf16 %v839_v7, %v838_v48 }
 0x1de   :  { %v4078_v31 = vpop.f32.mrb[20].mxu1  ;;  %v868_v0 = vpack.c.bf16 %v837_v4, %v836_v58 }
 0x1df   :  { %v734_v21 = vadd.f32 %v4078_v31, %v4878_v6  ;;  %v725_v63 = vpop.f32.mrb[21].mxu1 }
 0x1e0   :  { %v726_v59 = vadd.f32 %v725_v63, %v4868_v1  ;;  %v4079_v17 = vpop.f32.mrb[22].mxu1  ;;  %1653 = vmatpush1.bf16.msra.mxu0 %v868_v0 }
 0x1e1   :  { %v737_v55 = vadd.f32 %v4079_v17, %v4883_v8  ;;  %v728_v61 = vpop.f32.mrb[23].mxu1  ;;  %1654 = vmatprep.subr.bf16.mxu0 %v6081_v24  ;;  %v842_v56 = vmax.f32 %v734_v21, 0.0 }
 0x1e2   :  { %v729_v3 = vadd.f32 %v728_v61, %v4870_v2  ;;  %v840_v16 = vmax.f32 %v726_v59, 0.0 }
 0x1e3   :  { %v843_v49 = vmax.f32 %v737_v55, 0.0 }
 0x1e4   :  { %v841_v7 = vmax.f32 %v729_v3, 0.0  ;;  %1655 = vmatpush1.bf16.msra.mxu0 %v869_v37 }
 0x1e5   :  { %v871_v4 = vpack.c.bf16 %v843_v49, %v842_v56  ;;  %1656 = vmatprep.subr.bf16.mxu0 %v6081_v24 }
 0x1e6   :  { %v870_v6 = vpack.c.bf16 %v841_v7, %v840_v16  ;;  %v4082_v31 = vpop.f32.mrb[24].mxu1 }
 0x1e7   :  { %v750_v1 = vadd.f32 %v4082_v31, %v4904_v18  ;;  %v741_v63 = vpop.f32.mrb[25].mxu1 }
 0x1e8   :  { %v742_v8 = vadd.f32 %v741_v63, %v4894_v12  ;;  %v4083_v0 = vpop.f32.mrb[26].mxu1  ;;  %1657 = vmatpush1.bf16.msra.mxu0 %v870_v6 }
 0x1e9   :  { %v753_v48 = vadd.f32 %v4083_v0, %v4909_v22  ;;  %v744_v2 = vpop.f32.mrb[27].mxu1  ;;  %1658 = vmatprep.subr.bf16.mxu0 %v6081_v24  ;;  %v846_v37 = vmax.f32 %v750_v1, 0.0 }
 0x1ea   :  { %v745_v51 = vadd.f32 %v744_v2, %v4896_v13  ;;  %v844_v43 = vmax.f32 %v742_v8, 0.0 }
 0x1eb   :  { %v847_v42 = vmax.f32 %v753_v48, 0.0 }
 0x1ec   :  { %v845_v58 = vmax.f32 %v745_v51, 0.0  ;;  %1659 = vmatpush1.bf16.msra.mxu0 %v871_v4 }
 0x1ed   :  { %v873_v21 = vpack.c.bf16 %v847_v42, %v846_v37  ;;  %1660 = vmatprep.subr.bf16.mxu0 %v6081_v24 }
 0x1ee   :  { %v872_v18 = vpack.c.bf16 %v845_v58, %v844_v43  ;;  %v4086_v59 = vpop.f32.mrb[28].mxu1 }
 0x1ef   :  { %v766_v12 = vadd.f32 %v4086_v59, %v4931_v40  ;;  %v757_v17 = vpop.f32.mrb[29].mxu1 }
 0x1f0   :  { %v758_v22 = vadd.f32 %v757_v17, %v4920_v28  ;;  %v4087_v55 = vpop.f32.mrb[30].mxu1  ;;  %1661 = vmatpush1.bf16.msra.mxu0 %v872_v18 }
 0x1f1   :  { %v769_v61 = vadd.f32 %v4087_v55, %v4937_v47  ;;  %v760_v13 = vpop.f32.mrb[31].mxu1  ;;  %1662 = vmatprep.subr.bf16.mxu0 %v6081_v24  ;;  %v850_v56 = vmax.f32 %v766_v12, 0.0 }
 0x1f2   :  { %v761_v3 = vadd.f32 %v760_v13, %v4922_v30  ;;  %v848_v16 = vmax.f32 %v758_v22, 0.0 }
 0x1f3   :  { %v851_v49 = vmax.f32 %v769_v61, 0.0 }
 0x1f4   :  { %v849_v7 = vmax.f32 %v761_v3, 0.0  ;;  %1663 = vmatpush1.bf16.msra.mxu0 %v873_v21 }
 0x1f5   :  { %v875_v4 = vpack.c.bf16 %v851_v49, %v850_v56  ;;  %1664 = vmatprep.subr.bf16.mxu0 %v6081_v24 }
 0x1f6   :  { %v874_v40 = vpack.c.bf16 %v849_v7, %v848_v16  ;;  %v4090_v6 = vpop.f32.mrb[32].mxu1 }
 0x1f7   :  { %v782_v28 = vadd.f32 %v4090_v6, %v4964_v23  ;;  %v773_v31 = vpop.f32.mrb[33].mxu1 }
 0x1f8   :  { %v774_v47 = vadd.f32 %v773_v31, %v4950_v62  ;;  %v4091_v1 = vpop.f32.mrb[34].mxu1  ;;  %1665 = vmatpush1.bf16.msra.mxu0 %v874_v40 }
 0x1f9   :  { %v785_v63 = vadd.f32 %v4091_v1, %v4969_v32  ;;  %v776_v30 = vpop.f32.mrb[35].mxu1  ;;  %1666 = vmatprep.subr.bf16.mxu0 %v6081_v24  ;;  %v854_v0 = vmax.f32 %v782_v28, 0.0 }
 0x1fa   :  { %v777_v8 = vadd.f32 %v776_v30, %v4952_v19  ;;  %v852_v2 = vmax.f32 %v774_v47, 0.0 }
 0x1fb   :  { %v855_v48 = vmax.f32 %v785_v63, 0.0 }
 0x1fc   :  { %v853_v51 = vmax.f32 %v777_v8, 0.0  ;;  %1667 = vmatpush1.bf16.msra.mxu0 %v875_v4 }
 0x1fd   :  { %v877_v37 = vpack.c.bf16 %v855_v48, %v854_v0  ;;  %1668 = vmatprep.subr.bf16.mxu0 %v6081_v24 }
 0x1fe   :  { %v876_v23 = vpack.c.bf16 %v853_v51, %v852_v2  ;;  %v4094_v42 = vpop.f32.mrb[36].mxu1  ;;  %v4177_v51 = vld [vmem:[%s6060_s5 + $0x24] ss:$8 sps:$4 sm:$0xff]  }
 0x1ff   :  { %v798_v62 = vadd.f32 %v4094_v42, %v4995_v5  ;;  %v789_v43 = vpop.f32.mrb[37].mxu1  ;;  %v4183_v42 = vld [vmem:[%s6060_s5 + $0x44] ss:$8 sps:$4 sm:$0xff]  }
 0x200   :  { %v790_v32 = vadd.f32 %v789_v43, %v4983_v39  ;;  %v4095_v58 = vpop.f32.mrb[38].mxu1  ;;  %1669 = vmatpush1.bf16.msra.mxu0 %v876_v23  ;;  %v4182_v23 = vld [vmem:[%s6060_s5 + $0x30] ss:$8 sps:$4 sm:$0xff]   ;;  %v4186_v43 = vld [vmem:[%s6060_s5 + $0x54] ss:$8 sps:$4 sm:$0xff]  }
 0x201   :  { %v801_v21 = vadd.f32 %v4095_v58, %v5001_v11  ;;  %v792_v19 = vpop.f32.mrb[39].mxu1  ;;  %1670 = vmatprep.subr.bf16.mxu0 %v6081_v24  ;;  %v858_v59 = vmax.f32 %v798_v62, 0.0  ;;  %v4185_v62 = vld [vmem:[%s6060_s5 + $0x40] ss:$8 sps:$4 sm:$0xff]   ;;  %v4189_v58 = vld [vmem:[%s6060_s5 + $0x64] ss:$8 sps:$4 sm:$0xff]  }
 0x202   :  { %v793_v18 = vadd.f32 %v792_v19, %v4986_v35  ;;  %v856_v17 = vmax.f32 %v790_v32, 0.0  ;;  %v4188_v32 = vld [vmem:[%s6060_s5 + $0x50] ss:$8 sps:$4 sm:$0xff]   ;;  %v4192_v19 = vld [vmem:[%s6060_s5 + $0x74] ss:$8 sps:$4 sm:$0xff]  }
 0x203   :  { %v859_v12 = vmax.f32 %v801_v21, 0.0  ;;  %v4191_v21 = vld [vmem:[%s6060_s5 + $0x60] ss:$8 sps:$4 sm:$0xff]  }
 0x204   :  { %v857_v22 = vmax.f32 %v793_v18, 0.0  ;;  %1671 = vmatpush1.bf16.msra.mxu0 %v877_v37  ;;  %v4180_v37 = vld [vmem:[%s6060_s5 + $0x34] ss:$8 sps:$4 sm:$0xff]   ;;  %v4194_v18 = vld [vmem:[%s6060_s5 + $0x70] ss:$8 sps:$4 sm:$0xff]  }
 0x205   :  { %v879_v55 = vpack.c.bf16 %v859_v12, %v858_v59  ;;  %1672 = vmatprep.subr.bf16.mxu0 %v6081_v24  ;;  %v4195_v59 = vld [vmem:[%s6060_s5 + $0x84] ss:$8 sps:$4 sm:$0xff]   ;;  %v4197_v12 = vld [vmem:[%s6060_s5 + $0x80] ss:$8 sps:$4 sm:$0xff]  }
 0x206   :  { %v878_v5 = vpack.c.bf16 %v857_v22, %v856_v17  ;;  %v4098_v61 = vpop.f32.mrb[40].mxu1  ;;  %v4198_v17 = vld [vmem:[%s6060_s5 + $0x94] ss:$8 sps:$4 sm:$0xff]   ;;  %v4200_v22 = vld [vmem:[%s6060_s5 + $0x90] ss:$8 sps:$4 sm:$0xff]  }
 0x207   :  { %v814_v39 = vadd.f32 %v4098_v61, %v5024_v38  ;;  %v805_v13 = vpop.f32.mrb[41].mxu1  ;;  %v4204_v61 = vld [vmem:[%s6060_s5 + $0xb4] ss:$8 sps:$4 sm:$0xff]  }
 0x208   :  { %v806_v11 = vadd.f32 %v805_v13, %v5014_v33  ;;  %v4099_v3 = vpop.f32.mrb[42].mxu1  ;;  %1673 = vmatpush1.bf16.msra.mxu0 %v878_v5  ;;  %v4203_v5 = vld [vmem:[%s6060_s5 + $0xa0] ss:$8 sps:$4 sm:$0xff]   ;;  %v4207_v13 = vld [vmem:[%s6060_s5 + $0xc4] ss:$8 sps:$4 sm:$0xff]  }
 0x209   :  { %v817_v56 = vadd.f32 %v4099_v3, %v5032_v44  ;;  %v808_v35 = vpop.f32.mrb[43].mxu1  ;;  %1674 = vmatprep.subr.bf16.mxu0 %v6081_v24  ;;  %v862_v16 = vmax.f32 %v814_v39, 0.0  ;;  %v4206_v39 = vld [vmem:[%s6060_s5 + $0xb0] ss:$8 sps:$4 sm:$0xff]   ;;  %v4210_v3 = vld [vmem:[%s6060_s5 + $0xd4] ss:$8 sps:$4 sm:$0xff]  }
 0x20a   :  { %v809_v49 = vadd.f32 %v808_v35, %v5016_v26  ;;  %v860_v4 = vmax.f32 %v806_v11, 0.0  ;;  %v4209_v11 = vld [vmem:[%s6060_s5 + $0xc0] ss:$8 sps:$4 sm:$0xff]   ;;  %v4213_v35 = vld [vmem:[%s6060_s5 + $0xe4] ss:$8 sps:$4 sm:$0xff]  }
 0x20b   :  { %v863_v7 = vmax.f32 %v817_v56, 0.0  ;;  %v4212_v56 = vld [vmem:[%s6060_s5 + $0xd0] ss:$8 sps:$4 sm:$0xff]  }
 0x20c   :  { %v861_v40 = vmax.f32 %v809_v49, 0.0  ;;  %1675 = vmatpush1.bf16.msra.mxu0 %v879_v55  ;;  %v4201_v55 = vld [vmem:[%s6060_s5 + $0xa4] ss:$8 sps:$4 sm:$0xff]   ;;  %v4215_v49 = vld [vmem:[%s6060_s5 + $0xe0] ss:$8 sps:$4 sm:$0xff]  }
 0x20d   :  { %v881_v6 = vpack.c.bf16 %v863_v7, %v862_v16  ;;  %1676 = vmatprep.subr.bf16.mxu0 %v6081_v24  ;;  %v4216_v16 = vld [vmem:[%s6060_s5 + $0xf4] ss:$8 sps:$4 sm:$0xff]   ;;  %v4218_v7 = vld [vmem:[%s6060_s5 + $0xf0] ss:$8 sps:$4 sm:$0xff]  }
 0x20e   :  { %v880_v38 = vpack.c.bf16 %v861_v40, %v860_v4  ;;  %v4102_v28 = vpop.f32.mrb[44].mxu1  ;;  %v4219_v4 = vld [vmem:[%s6060_s5 + $0x104] ss:$8 sps:$4 sm:$0xff]   ;;  %v4221_v40 = vld [vmem:[%s6060_s5 + $0x100] ss:$8 sps:$4 sm:$0xff]  }
 0x20f   :  { %v830_v33 = vadd.f32 %v4102_v28, %v5062_v60  ;;  %v821_v31 = vpop.f32.mrb[45].mxu1  ;;  %v4225_v28 = vld [vmem:[%s6060_s5 + $0x124] ss:$8 sps:$4 sm:$0xff]  }
 0x210   :  { %v822_v44 = vadd.f32 %v821_v31, %v5046_v53  ;;  %v4103_v47 = vpop.f32.mrb[46].mxu1  ;;  %1677 = vmatpush1.bf16.msra.mxu0 %v880_v38  ;;  %v4171_v53 = vld [vmem:[%s6060_s5] ss:$8 sps:$4 sm:$0xff]   ;;  %v4224_v38 = vld [vmem:[%s6060_s5 + $0x110] ss:$8 sps:$4 sm:$0xff]  }
 0x211   :  { %v833_v1 = vadd.f32 %v4103_v47, %v5067_v36  ;;  %v824_v26 = vpop.f32.mrb[47].mxu1  ;;  %1678 = vmatprep.subr.bf16.mxu0 %v6081_v24  ;;  %v866_v30 = vmax.f32 %v830_v33, 0.0  ;;  %v4176_v36 = vld [vmem:[%s6060_s5 + $0x10] ss:$8 sps:$4 sm:$0xff]   ;;  %v4227_v33 = vld [vmem:[%s6060_s5 + $0x120] ss:$8 sps:$4 sm:$0xff]  }
 0x212   :  { %v825_v63 = vadd.f32 %v824_v26, %v5048_v54  ;;  %v864_v0 = vmax.f32 %v822_v44, 0.0  ;;  %v4174_v54 = vld [vmem:[%s6060_s5 + $0x14] ss:$8 sps:$4 sm:$0xff]   ;;  %v4230_v44 = vld [vmem:[%s6060_s5 + $0x130] ss:$8 sps:$4 sm:$0xff]  }
 0x213   :  { %v867_v8 = vmax.f32 %v833_v1, 0.0  ;;  %v4228_v31 = vld [vmem:[%s6060_s5 + $0x134] ss:$8 sps:$4 sm:$0xff]   ;;  %v4231_v47 = vld [vmem:[%s6060_s5 + $0x144] ss:$8 sps:$4 sm:$0xff]  }
 0x214   :  { %v865_v48 = vmax.f32 %v825_v63, 0.0  ;;  %1679 = vmatpush1.bf16.msra.mxu0 %v881_v6  ;;  %v4222_v6 = vld [vmem:[%s6060_s5 + $0x114] ss:$8 sps:$4 sm:$0xff]   ;;  %v4233_v1 = vld [vmem:[%s6060_s5 + $0x140] ss:$8 sps:$4 sm:$0xff]  }
 0x215   :  { %v883_v2 = vpack.c.bf16 %v867_v8, %v866_v30  ;;  %1680 = vmatprep.subr.bf16.mxu0 %v6081_v24  ;;  %v4234_v26 = vld [vmem:[%s6060_s5 + $0x154] ss:$8 sps:$4 sm:$0xff]   ;;  %v4236_v63 = vld [vmem:[%s6060_s5 + $0x150] ss:$8 sps:$4 sm:$0xff]   ;;  %v4237_v30 = vld [vmem:[%s6060_s5 + $0x164] ss:$8 sps:$4 sm:$0xff]  }
 0x216   :  { %v882_v60 = vpack.c.bf16 %v865_v48, %v864_v0  ;;  %v4239_v8 = vld [vmem:[%s6060_s5 + $0x160] ss:$8 sps:$4 sm:$0xff]   ;;  %v4240_v0 = vld [vmem:[%s6060_s5 + $0x174] ss:$8 sps:$4 sm:$0xff]   ;;  %v4242_v48 = vld [vmem:[%s6060_s5 + $0x170] ss:$8 sps:$4 sm:$0xff]  }
 0x218   :  { %1681 = vmatpush1.bf16.msra.mxu0 %v882_v60  ;;  %v4245_v60 = vld [vmem:[%s6060_s5 + $0x180] ss:$8 sps:$4 sm:$0xff]  }
 0x219   :  { %1682 = vmatprep.subr.bf16.mxu0 %v6081_v24  ;;  %v4179_v24 = vld [vmem:[%s6060_s5 + $0x20] ss:$8 sps:$4 sm:$0xff]  }
 0x21c   :  { %1683 = vmatpush1.bf16.msra.mxu0 %v883_v2  ;;  %v4243_v2 = vld [vmem:[%s6060_s5 + $0x184] ss:$8 sps:$4 sm:$0xff]  }
 0x21f   :  { %1685 = vmatmul.mubr.bf16.vlgmr.msra.gmra.mrb[0].mxu0 %v4171_v53  ;;  %v4246_v53 = vld [vmem:[%s6060_s5 + $0x194] ss:$8 sps:$4 sm:$0xff]  }
 0x220   :  { %1692 = vmatprep.mubr.bf16.mxu0 %v4174_v54  ;;  %v4248_v54 = vld [vmem:[%s6060_s5 + $0x190] ss:$8 sps:$4 sm:$0xff]  }
 0x227   :  { %1693 = vmatmul.mubr.bf16.gmra.mrb[4].mxu0 %v4176_v36  ;;  %v4249_v36 = vld [vmem:[%s6060_s5 + $0x1a4] ss:$8 sps:$4 sm:$0xff]  }
 0x228   :  { %1700 = vmatprep.mubr.bf16.mxu0 %v4177_v51  ;;  %v4251_v51 = vld [vmem:[%s6060_s5 + $0x1a0] ss:$8 sps:$4 sm:$0xff]  }
 0x22f   :  { %1701 = vmatmul.mubr.bf16.gmra.mrb[8].mxu0 %v4179_v24  ;;  %v4252_v24 = vld [vmem:[%s6060_s5 + $0x1b4] ss:$8 sps:$4 sm:$0xff]  }
 0x230   :  { %1708 = vmatprep.mubr.bf16.mxu0 %v4180_v37 }
 0x237   :  { %1709 = vmatmul.mubr.bf16.gmra.mrb[12].mxu0 %v4182_v23 }
 0x238   :  { %1716 = vmatprep.mubr.bf16.mxu0 %v4183_v42 }
 0x23f   :  { %1717 = vmatmul.mubr.bf16.gmra.mrb[16].mxu0 %v4185_v62  ;;  %v4254_v62 = vld [vmem:[%s6060_s5 + $0x1b0] ss:$8 sps:$4 sm:$0xff]  }
 0x240   :  { %1724 = vmatprep.mubr.bf16.mxu0 %v4186_v43 }
 0x247   :  { %1725 = vmatmul.mubr.bf16.gmra.mrb[20].mxu0 %v4188_v32  ;;  %v4255_v32 = vld [vmem:[%s6060_s5 + $0x1c4] ss:$8 sps:$4 sm:$0xff]  }
 0x248   :  { %1732 = vmatprep.mubr.bf16.mxu0 %v4189_v58  ;;  %v4269_v58 = vld [vmem:[%s6062_s7 + $0x4] ss:$16 sps:$4 sm:$0xff]  }
 0x249   :  { %2645 = vmatprep.mubr.bf16.mxu1 %v4269_v58 }
 0x24f   :  { %1733 = vmatmul.mubr.bf16.gmra.mrb[24].mxu0 %v4191_v21 }
 0x250   :  { %1740 = vmatprep.mubr.bf16.mxu0 %v4192_v19 }
 0x257   :  { %1741 = vmatmul.mubr.bf16.gmra.mrb[28].mxu0 %v4194_v18 }
 0x258   :  { %1748 = vmatprep.mubr.bf16.mxu0 %v4195_v59 }
 0x25f   :  { %1749 = vmatmul.mubr.bf16.gmra.mrb[32].mxu0 %v4197_v12 }
 0x260   :  { %1756 = vmatprep.mubr.bf16.mxu0 %v4198_v17 }
 0x267   :  { %1757 = vmatmul.mubr.bf16.gmra.mrb[36].mxu0 %v4200_v22 }
 0x268   :  { %1764 = vmatprep.mubr.bf16.mxu0 %v4201_v55  ;;  %v4257_v55 = vld [vmem:[%s6060_s5 + $0x1c0] ss:$8 sps:$4 sm:$0xff]  }
 0x26f   :  { %1765 = vmatmul.mubr.bf16.gmra.mrb[40].mxu0 %v4203_v5 }
 0x270   :  { %1772 = vmatprep.mubr.bf16.mxu0 %v4204_v61 }
 0x277   :  { %1773 = vmatmul.mubr.bf16.gmra.mrb[44].mxu0 %v4206_v39 }
 0x278   :  { %1780 = vmatprep.mubr.bf16.mxu0 %v4207_v13 }
 0x27f   :  { %1781 = vmatmul.mubr.bf16.gmra.mrb[48].mxu0 %v4209_v11 }
 0x280   :  { %1788 = vmatprep.mubr.bf16.mxu0 %v4210_v3 }
 0x287   :  { %1789 = vmatmul.mubr.bf16.gmra.mrb[52].mxu0 %v4212_v56 }
 0x288   :  { %1796 = vmatprep.mubr.bf16.mxu0 %v4213_v35 }
 0x28f   :  { %1797 = vmatmul.mubr.bf16.gmra.mrb[56].mxu0 %v4215_v49  ;;  %v4260_v49 = vld [vmem:[%s6060_s5 + $0x1d0] ss:$8 sps:$4 sm:$0xff]  }
 0x290   :  { %1804 = vmatprep.mubr.bf16.mxu0 %v4216_v16 }
 0x297   :  { %1805 = vmatmul.mubr.bf16.gmra.mrb[60].mxu0 %v4218_v7 }
 0x298   :  { %1812 = vmatprep.mubr.bf16.mxu0 %v4219_v4 }
 0x29f   :  { %1813 = vmatmul.mubr.bf16.gmra.mrb[64].mxu0 %v4221_v40 }
 0x2a0   :  { %1820 = vmatprep.mubr.bf16.mxu0 %v4222_v6 }
 0x2a7   :  { %1821 = vmatmul.mubr.bf16.gmra.mrb[68].mxu0 %v4224_v38 }
 0x2a8   :  { %1828 = vmatprep.mubr.bf16.mxu0 %v4225_v28 }
 0x2af   :  { %1829 = vmatmul.mubr.bf16.gmra.mrb[72].mxu0 %v4227_v33 }
 0x2b0   :  { %1836 = vmatprep.mubr.bf16.mxu0 %v4228_v31  ;;  %v4263_v31 = vld [vmem:[%s6060_s5 + $0x1e0] ss:$8 sps:$4 sm:$0xff]  }
 0x2b7   :  { %1837 = vmatmul.mubr.bf16.gmra.mrb[76].mxu0 %v4230_v44 }
 0x2b8   :  { %1844 = vmatprep.mubr.bf16.mxu0 %v4231_v47 }
 0x2bf   :  { %1845 = vmatmul.mubr.bf16.gmra.mrb[80].mxu0 %v4233_v1 }
 0x2c0   :  { %1852 = vmatprep.mubr.bf16.mxu0 %v4234_v26 }
 0x2c7   :  { %1853 = vmatmul.mubr.bf16.gmra.mrb[84].mxu0 %v4236_v63 }
 0x2c8   :  { %1860 = vmatprep.mubr.bf16.mxu0 %v4237_v30 }
 0x2cf   :  { %1861 = vmatmul.mubr.bf16.gmra.mrb[88].mxu0 %v4239_v8 }
 0x2d0   :  { %1868 = vmatprep.mubr.bf16.mxu0 %v4240_v0 }
 0x2d7   :  { %1869 = vmatmul.mubr.bf16.gmra.mrb[92].mxu0 %v4242_v48  ;;  %v4266_v48 = vld [vmem:[%s6060_s5 + $0x1f0] ss:$8 sps:$4 sm:$0xff]  }
 0x2d8   :  { %1876 = vmatprep.mubr.bf16.mxu0 %v4243_v2  ;;  %v1070_v2 = vpop.permute.xlu1 %1069 }
 0x2df   :  { %1877 = vmatmul.mubr.bf16.gmra.mrb[96].mxu0 %v4245_v60 }
 0x2e0   :  { %1884 = vmatprep.mubr.bf16.mxu0 %v4246_v53 }
 0x2e7   :  { %1885 = vmatmul.mubr.bf16.gmra.mrb[100].mxu0 %v4248_v54 }
 0x2e8   :  { %1892 = vmatprep.mubr.bf16.mxu0 %v4249_v36 }
 0x2ef   :  { %1893 = vmatmul.mubr.bf16.gmra.mrb[104].mxu0 %v4251_v51  ;;  %v5510_v51 = vpop.permute.xlu0 %1154 }
 0x2f0   :  { %1900 = vmatprep.mubr.bf16.mxu0 %v4252_v24 }
 0x2f2   :  { %v1686_v37 = vpop.f32.mrb[0].mxu0 }
 0x2f3   :  { %v1687_v23 = vadd.f32 %v1686_v37, %v5094_v29  ;;  %v1688_v42 = vpop.f32.mrb[1].mxu0  ;;  %v5514_v37 = vpop.permute.xlu1 %1159 }
 0x2f4   :  { %v1689_v43 = vpop.f32.mrb[2].mxu0  ;;  %v1075_v58 = vpop.permute.xlu0 %1074 }
 0x2f5   :  { %v1690_v21 = vadd.f32 %v1689_v43, %v5102_v25  ;;  %v1691_v19 = vpop.f32.mrb[3].mxu0  ;;  %v1941_v18 = vmax.f32 %v1687_v23, 0.0  ;;  %v4258_v25 = vld [vmem:[%s6060_s5 + $0x1d4] ss:$8 sps:$4 sm:$0xff]  }
 0x2f7   :  { %v1942_v29 = vmax.f32 %v1690_v21, 0.0  ;;  %1901 = vmatmul.mubr.bf16.gmra.mrb[108].mxu0 %v4254_v62  ;;  %v1080_v19 = vpop.permute.xlu1 %1079 }
 0x2f8   :  { %1908 = vmatprep.mubr.bf16.mxu0 %v4255_v32 }
 0x2f9   :  { %v5473_v59 = vpack.c.bf16 %v1942_v29, %v1941_v18 }
 0x2fa   :  { %v1694_v12 = vpop.f32.mrb[4].mxu0 }
 0x2fb   :  { %v1695_v17 = vadd.f32 %v1694_v12, %v5132_v50  ;;  %v1696_v22 = vpop.f32.mrb[5].mxu0 }
 0x2fc   :  { %v1697_v5 = vpop.f32.mrb[6].mxu0  ;;  %v5519_v22 = vpop.permute.xlu0 %1164 }
 0x2fd   :  { %v1698_v61 = vadd.f32 %v1697_v5, %v5137_v52  ;;  %v1699_v39 = vpop.f32.mrb[7].mxu0  ;;  %v1943_v13 = vmax.f32 %v1695_v17, 0.0  ;;  %v4261_v52 = vld [vmem:[%s6060_s5 + $0x1e4] ss:$8 sps:$4 sm:$0xff]  }
 0x2ff   :  { %v1944_v11 = vmax.f32 %v1698_v61, 0.0  ;;  %1909 = vmatmul.mubr.bf16.gmra.mrb[112].mxu0 %v4257_v55  ;;  %v5521_v61 = vpop.permute.xlu1 %1169 }
 0x300   :  { %1916 = vmatprep.mubr.bf16.mxu0 %v4258_v25 }
 0x301   :  { %v5483_v3 = vpack.c.bf16 %v1944_v11, %v1943_v13  ;;  %v1085_v11 = vpop.permute.xlu0 %1084 }
 0x302   :  { %v1702_v50 = vpop.f32.mrb[8].mxu0 }
 0x303   :  { %v1703_v56 = vadd.f32 %v1702_v50, %v5164_v9  ;;  %v1704_v35 = vpop.f32.mrb[9].mxu0 }
 0x304   :  { %v1705_v16 = vpop.f32.mrb[10].mxu0 }
 0x305   :  { %v1706_v7 = vadd.f32 %v1705_v16, %v5172_v45  ;;  %v1707_v4 = vpop.f32.mrb[11].mxu0  ;;  %v1945_v40 = vmax.f32 %v1703_v56, 0.0  ;;  %v4264_v45 = vld [vmem:[%s6060_s5 + $0x1f4] ss:$8 sps:$4 sm:$0xff]  }
 0x307   :  { %v1946_v6 = vmax.f32 %v1706_v7, 0.0  ;;  %1917 = vmatmul.mubr.bf16.gmra.mrb[116].mxu0 %v4260_v49  ;;  %v1090_v49 = vpop.permute.xlu1 %1089 }
 0x308   :  { %1924 = vmatprep.mubr.bf16.mxu0 %v4261_v52 }
 0x309   :  { %v5493_v38 = vpack.c.bf16 %v1946_v6, %v1945_v40 }
 0x30a   :  { %v1710_v9 = vpop.f32.mrb[12].mxu0 }
 0x30b   :  { %v1711_v28 = vadd.f32 %v1710_v9, %v5199_v15  ;;  %v1712_v33 = vpop.f32.mrb[13].mxu0 }
 0x30c   :  { %v1713_v44 = vpop.f32.mrb[14].mxu0 }
 0x30d   :  { %v1714_v47 = vadd.f32 %v1713_v44, %v5204_v57  ;;  %v1715_v1 = vpop.f32.mrb[15].mxu0  ;;  %v1947_v26 = vmax.f32 %v1711_v28, 0.0 }
 0x30f   :  { %v1948_v63 = vmax.f32 %v1714_v47, 0.0  ;;  %1925 = vmatmul.mubr.bf16.gmra.mrb[120].mxu0 %v4263_v31 }
 0x310   :  { %1932 = vmatprep.mubr.bf16.mxu0 %v4264_v45 }
 0x311   :  { %v5503_v30 = vpack.c.bf16 %v1948_v63, %v1947_v26 }
 0x312   :  { %v1718_v15 = vpop.f32.mrb[16].mxu0 }
 0x313   :  { %v1719_v8 = vadd.f32 %v1718_v15, %v5225_v20  ;;  %v1720_v0 = vpop.f32.mrb[17].mxu0 }
 0x314   :  { %v1721_v60 = vpop.f32.mrb[18].mxu0 }
 0x315   :  { %v1722_v53 = vadd.f32 %v1721_v60, %v5230_v27  ;;  %v1723_v57 = vpop.f32.mrb[19].mxu0  ;;  %v1949_v54 = vmax.f32 %v1719_v8, 0.0 }
 0x317   :  { %v1950_v36 = vmax.f32 %v1722_v53, 0.0  ;;  %1933 = vmatmul.mubr.bf16.gmra.mrb[124].mxu0 %v4266_v48 }
 0x319   :  { %v5512_v24 = vpack.c.bf16 %v1950_v36, %v1949_v54 }
 0x31a   :  { %v1726_v20 = vpop.f32.mrb[20].mxu0 }
 0x31b   :  { %v1727_v23 = vadd.f32 %v1726_v20, %v5248_v41  ;;  %v1728_v42 = vpop.f32.mrb[21].mxu0 }
 0x31c   :  { %v1729_v62 = vpop.f32.mrb[22].mxu0 }
 0x31d   :  { %v1730_v43 = vadd.f32 %v1729_v62, %v1070_v2  ;;  %v1731_v32 = vpop.f32.mrb[23].mxu0  ;;  %v1951_v21 = vmax.f32 %v1727_v23, 0.0 }
 0x31f   :  { %v1952_v27 = vmax.f32 %v1730_v43, 0.0 }
 0x321   :  { %v5517_v18 = vpack.c.bf16 %v1952_v27, %v1951_v21 }
 0x322   :  { %v1734_v29 = vpop.f32.mrb[24].mxu0 }
 0x323   :  { %v1735_v12 = vadd.f32 %v1734_v29, %v1075_v58  ;;  %v1736_v17 = vpop.f32.mrb[25].mxu0 }
 0x324   :  { %v1737_v55 = vpop.f32.mrb[26].mxu0 }
 0x325   :  { %v1738_v5 = vadd.f32 %v1737_v55, %v1080_v19  ;;  %v1739_v25 = vpop.f32.mrb[27].mxu0  ;;  %v1953_v41 = vmax.f32 %v1735_v12, 0.0  ;;  %v6085_v19 = vld [vmem:[#allocation8_spill] sm:$0xff] }
 0x326   :  { %v5540_v25 = vpop.permute.xlu1 %1259 }
 0x327   :  { %v1954_v39 = vmax.f32 %v1738_v5, 0.0 }
 0x329   :  { %v5523_v13 = vpack.c.bf16 %v1954_v39, %v1953_v41  ;;  %v6086_v39 = vld [vmem:[#allocation9_spill] sm:$0xff] }
 0x32a   :  { %v1742_v50 = vpop.f32.mrb[28].mxu0 }
 0x32b   :  { %v1743_v56 = vadd.f32 %v1742_v50, %v1085_v11  ;;  %v1744_v35 = vpop.f32.mrb[29].mxu0 }
 0x32c   :  { %v1745_v16 = vpop.f32.mrb[30].mxu0  ;;  %v6087_v35 = vld [vmem:[#allocation10_spill] sm:$0xff] }
 0x32d   :  { %v1746_v52 = vadd.f32 %v1745_v16, %v1090_v49  ;;  %v1747_v7 = vpop.f32.mrb[31].mxu0  ;;  %v1955_v4 = vmax.f32 %v1743_v56, 0.0 }
 0x32f   :  { %v1956_v40 = vmax.f32 %v1746_v52, 0.0 }
 0x331   :  { %v5525_v6 = vpack.c.bf16 %v1956_v40, %v1955_v4  ;;  %v1180_v4 = vpop.permute.xlu1 %1179 }
 0x332   :  { %v1750_v9 = vpop.f32.mrb[32].mxu0 }
 0x333   :  { %v1751_v28 = vadd.f32 %v1750_v9, %v5084_v10  ;;  %v1752_v33 = vpop.f32.mrb[33].mxu0 }
 0x334   :  { %v1753_v31 = vpop.f32.mrb[34].mxu0 }
 0x335   :  { %v1754_v44 = vadd.f32 %v1753_v31, %v5086_v14  ;;  %v1755_v45 = vpop.f32.mrb[35].mxu0  ;;  %v1957_v47 = vmax.f32 %v1751_v28, 0.0  ;;  %v6082_v14 = vld [vmem:[#allocation5_spill] sm:$0xff]  ;;  %v6088_v28 = vld [vmem:[#allocation11_spill] sm:$0xff] }
 0x337   :  { %v1958_v1 = vmax.f32 %v1754_v44, 0.0 }
 0x339   :  { %v2013_v26 = vpack.c.bf16 %v1958_v1, %v1957_v47  ;;  %v6089_v47 = vld [vmem:[#allocation12_spill] sm:$0xff] }
 0x33a   :  { %v1758_v63 = vpop.f32.mrb[36].mxu0 }
 0x33b   :  { %v1759_v15 = vadd.f32 %v1758_v63, %v5116_v46  ;;  %v1760_v8 = vpop.f32.mrb[37].mxu0  ;;  %3733 = vmatprep.subr.bf16.mxu1 %v2013_v26  ;;  %v6083_v46 = vld [vmem:[#allocation6_spill] sm:$0xff]  ;;  %v5550_v26 = vpop.permute.xlu1 %1269 }
 0x33c   :  { %v1761_v0 = vpop.f32.mrb[38].mxu0  ;;  %3734 = vmatpush3.bf16.msra.mxu1 %v5473_v59 }
 0x33d   :  { %v1762_v48 = vadd.f32 %v1761_v0, %v5118_v34  ;;  %v1763_v2 = vpop.f32.mrb[39].mxu0  ;;  %v1959_v10 = vmax.f32 %v1759_v15, 0.0  ;;  %v6084_v34 = vld [vmem:[#allocation7_spill] sm:$0xff] }
 0x33f   :  { %v1960_v60 = vmax.f32 %v1762_v48, 0.0 }
 0x341   :  { %v2014_v53 = vpack.c.bf16 %v1960_v60, %v1959_v10  ;;  %v1190_v60 = vpop.permute.xlu1 %1189 }
 0x342   :  { %v1766_v57 = vpop.f32.mrb[40].mxu0 }
 0x343   :  { %v1767_v54 = vadd.f32 %v1766_v57, %v6082_v14  ;;  %v1768_v36 = vpop.f32.mrb[41].mxu0  ;;  %3735 = vmatprep.subr.bf16.mxu1 %v2014_v53 }
 0x344   :  { %v1769_v20 = vpop.f32.mrb[42].mxu0  ;;  %3736 = vmatpush3.bf16.msra.mxu1 %v5483_v3  ;;  %v5538_v3 = vpop.permute.xlu0 %1254 }
 0x345   :  { %v1770_v23 = vadd.f32 %v1769_v20, %v6083_v46  ;;  %v1771_v42 = vpop.f32.mrb[43].mxu0  ;;  %v1961_v62 = vmax.f32 %v1767_v54, 0.0  ;;  %v5557_v46 = vpop.permute.xlu1 %1279 }
 0x347   :  { %v1962_v43 = vmax.f32 %v1770_v23, 0.0 }
 0x348   :  { %v1175_v16 = vpop.permute.xlu0 %1174 }
 0x349   :  { %v2015_v59 = vpack.c.bf16 %v1962_v43, %v1961_v62 }
 0x34a   :  { %v1774_v32 = vpop.f32.mrb[44].mxu0 }
 0x34b   :  { %v1775_v58 = vadd.f32 %v1774_v32, %v6084_v34  ;;  %v1776_v21 = vpop.f32.mrb[45].mxu0  ;;  %3737 = vmatprep.subr.bf16.mxu1 %v2015_v59  ;;  %v1200_v34 = vpop.permute.xlu1 %1199 }
 0x34c   :  { %v1777_v27 = vpop.f32.mrb[46].mxu0  ;;  %3738 = vmatpush3.bf16.msra.mxu1 %v5493_v38  ;;  %v5546_v44 = vpop.permute.xlu0 %1264 }
 0x34d   :  { %v1778_v29 = vadd.f32 %v1777_v27, %v6085_v19  ;;  %v1779_v12 = vpop.f32.mrb[47].mxu0  ;;  %v1963_v17 = vmax.f32 %v1775_v58, 0.0 }
 0x34f   :  { %v1964_v55 = vmax.f32 %v1778_v29, 0.0 }
 0x350   :  { %v1185_v0 = vpop.permute.xlu0 %1184 }
 0x351   :  { %v2016_v5 = vpack.c.bf16 %v1964_v55, %v1963_v17  ;;  %v5571_v55 = vpop.permute.xlu1 %1289 }
 0x352   :  { %v1782_v41 = vpop.f32.mrb[48].mxu0 }
 0x353   :  { %v1783_v11 = vadd.f32 %v1782_v41, %v6086_v39  ;;  %v1784_v50 = vpop.f32.mrb[49].mxu0  ;;  %3739 = vmatprep.subr.bf16.mxu1 %v2016_v5 }
 0x354   :  { %v1785_v56 = vpop.f32.mrb[50].mxu0  ;;  %3740 = vmatpush3.bf16.msra.mxu1 %v5503_v30  ;;  %v5555_v36 = vpop.permute.xlu0 %1274 }
 0x355   :  { %v1786_v38 = vadd.f32 %v1785_v56, %v6087_v35  ;;  %v1787_v49 = vpop.f32.mrb[51].mxu0  ;;  %v1965_v52 = vmax.f32 %v1783_v11, 0.0 }
 0x357   :  { %v1966_v7 = vmax.f32 %v1786_v38, 0.0  ;;  %v1210_v38 = vpop.permute.xlu1 %1209 }
 0x359   :  { %v2017_v40 = vpack.c.bf16 %v1966_v7, %v1965_v52 }
 0x35a   :  { %v1790_v9 = vpop.f32.mrb[52].mxu0 }
 0x35b   :  { %v1791_v33 = vadd.f32 %v1790_v9, %v6088_v28  ;;  %v1792_v31 = vpop.f32.mrb[53].mxu0  ;;  %3741 = vmatprep.subr.bf16.mxu1 %v2017_v40 }
 0x35c   :  { %v1793_v45 = vpop.f32.mrb[54].mxu0  ;;  %3742 = vmatpush3.bf16.msra.mxu1 %v5512_v24 }
 0x35d   :  { %v1794_v30 = vadd.f32 %v1793_v45, %v6089_v47  ;;  %v1795_v1 = vpop.f32.mrb[55].mxu0  ;;  %v1967_v63 = vmax.f32 %v1791_v33, 0.0  ;;  %v5585_v33 = vpop.permute.xlu1 %1299 }
 0x35f   :  { %v1968_v15 = vmax.f32 %v1794_v30, 0.0  ;;  %v4275_v30 = vld [vmem:[%s6062_s7 + $0x40] ss:$16 sps:$4 sm:$0xff]  }
 0x361   :  { %v2018_v8 = vpack.c.bf16 %v1968_v15, %v1967_v63  ;;  %v4276_v63 = vld [vmem:[%s6062_s7 + $0x64] ss:$16 sps:$4 sm:$0xff]  }
 0x362   :  { %v1798_v48 = vpop.f32.mrb[56].mxu0 }
 0x363   :  { %v1799_v2 = vadd.f32 %v1798_v48, %v5510_v51  ;;  %v1800_v10 = vpop.f32.mrb[57].mxu0  ;;  %3743 = vmatprep.subr.bf16.mxu1 %v2018_v8 }
 0x364   :  { %v1801_v53 = vpop.f32.mrb[58].mxu0  ;;  %3744 = vmatpush3.bf16.msra.mxu1 %v5517_v18  ;;  %v1220_v10 = vpop.permute.xlu1 %1219 }
 0x365   :  { %v1802_v24 = vadd.f32 %v1801_v53, %v5514_v37  ;;  %v1803_v57 = vpop.f32.mrb[59].mxu0  ;;  %v1969_v14 = vmax.f32 %v1799_v2, 0.0  ;;  %v1195_v37 = vpop.permute.xlu0 %1194 }
 0x367   :  { %v1970_v54 = vmax.f32 %v1802_v24, 0.0 }
 0x369   :  { %v2019_v20 = vpack.c.bf16 %v1970_v54, %v1969_v14  ;;  %v5565_v29 = vpop.permute.xlu0 %1284  ;;  %v4278_v14 = vld [vmem:[%s6062_s7 + $0x60] ss:$16 sps:$4 sm:$0xff]  }
 0x36a   :  { %v1806_v23 = vpop.f32.mrb[60].mxu0 }
 0x36b   :  { %v1807_v42 = vadd.f32 %v1806_v23, %v5519_v22  ;;  %v1808_v51 = vpop.f32.mrb[61].mxu0  ;;  %3745 = vmatprep.subr.bf16.mxu1 %v2019_v20  ;;  %v4267_v22 = vld [vmem:[%s6062_s7] ss:$16 sps:$4 sm:$0xff]   ;;  %v4279_v23 = vld [vmem:[%s6062_s7 + $0x84] ss:$16 sps:$4 sm:$0xff]  }
 0x36c   :  { %v1809_v62 = vpop.f32.mrb[62].mxu0  ;;  %3746 = vmatpush3.bf16.msra.mxu1 %v5523_v13 }
 0x36d   :  { %v1810_v18 = vadd.f32 %v1809_v62, %v5521_v61  ;;  %v1811_v43 = vpop.f32.mrb[63].mxu0  ;;  %v1971_v59 = vmax.f32 %v1807_v42, 0.0  ;;  %v4270_v61 = vld [vmem:[%s6062_s7 + $0x24] ss:$16 sps:$4 sm:$0xff]   ;;  %v1205_v11 = vpop.permute.xlu0 %1204 }
 0x36e   :  { %v5603_v62 = vpop.permute.xlu1 %1309 }
 0x36f   :  { %v1972_v32 = vmax.f32 %v1810_v18, 0.0 }
 0x371   :  { %v2020_v58 = vpack.c.bf16 %v1972_v32, %v1971_v59  ;;  %v5581_v9 = vpop.permute.xlu0 %1294 }
 0x372   :  { %v1814_v21 = vpop.f32.mrb[64].mxu0 }
 0x373   :  { %v1815_v27 = vadd.f32 %v1814_v21, %v1175_v16  ;;  %v1816_v19 = vpop.f32.mrb[65].mxu0  ;;  %3747 = vmatprep.subr.bf16.mxu1 %v2020_v58  ;;  %v4273_v16 = vld [vmem:[%s6062_s7 + $0x44] ss:$16 sps:$4 sm:$0xff]   ;;  %v4281_v21 = vld [vmem:[%s6062_s7 + $0x80] ss:$16 sps:$4 sm:$0xff]  }
 0x374   :  { %v1817_v12 = vpop.f32.mrb[66].mxu0  ;;  %3748 = vmatpush3.bf16.msra.mxu1 %v5525_v6  ;;  %v4272_v6 = vld [vmem:[%s6062_s7 + $0x20] ss:$16 sps:$4 sm:$0xff]  }
 0x375   :  { %v1818_v13 = vadd.f32 %v1817_v12, %v1180_v4  ;;  %v1819_v17 = vpop.f32.mrb[67].mxu0  ;;  %v1973_v5 = vmax.f32 %v1815_v27, 0.0  ;;  %v1230_v27 = vpop.permute.xlu1 %1229 }
 0x377   :  { %v1974_v41 = vmax.f32 %v1818_v13, 0.0  ;;  %2646 = vmatmul.mubr.bf16.vlgmr.msra.gmra.mrb[48].mxu1 %v4267_v22  ;;  %v4282_v22 = vld [vmem:[%s6062_s7 + $0xa4] ss:$16 sps:$4 sm:$0xff]  }
 0x378   :  { %2653 = vmatprep.mubr.bf16.mxu1 %v4270_v61 }
 0x379   :  { %v5573_v39 = vpack.c.bf16 %v1974_v41, %v1973_v5 }
 0x37a   :  { %v1822_v50 = vpop.f32.mrb[68].mxu0 }
 0x37b   :  { %v1823_v56 = vadd.f32 %v1822_v50, %v1185_v0  ;;  %v1824_v35 = vpop.f32.mrb[69].mxu0  ;;  %v1215_v0 = vpop.permute.xlu0 %1214 }
 0x37c   :  { %v1825_v49 = vpop.f32.mrb[70].mxu0 }
 0x37d   :  { %v1826_v52 = vadd.f32 %v1825_v49, %v1190_v60  ;;  %v1827_v7 = vpop.f32.mrb[71].mxu0  ;;  %v1975_v4 = vmax.f32 %v1823_v56, 0.0  ;;  %v4285_v49 = vld [vmem:[%s6062_s7 + $0xc4] ss:$16 sps:$4 sm:$0xff]  }
 0x37f   :  { %v1976_v40 = vmax.f32 %v1826_v52, 0.0  ;;  %2654 = vmatmul.mubr.bf16.gmra.mrb[52].mxu1 %v4272_v6  ;;  %v5598_v54 = vpop.permute.xlu0 %1304  ;;  %v4284_v6 = vld [vmem:[%s6062_s7 + $0xa0] ss:$16 sps:$4 sm:$0xff]  }
 0x380   :  { %2661 = vmatprep.mubr.bf16.mxu1 %v4273_v16 }
 0x381   :  { %v5583_v28 = vpack.c.bf16 %v1976_v40, %v1975_v4 }
 0x382   :  { %v1830_v31 = vpop.f32.mrb[72].mxu0 }
 0x383   :  { %v1831_v45 = vadd.f32 %v1830_v31, %v1195_v37  ;;  %v1832_v47 = vpop.f32.mrb[73].mxu0  ;;  %v1225_v59 = vpop.permute.xlu0 %1224 }
 0x384   :  { %v1833_v1 = vpop.f32.mrb[74].mxu0 }
 0x385   :  { %v1834_v15 = vadd.f32 %v1833_v1, %v1200_v34  ;;  %v1835_v8 = vpop.f32.mrb[75].mxu0  ;;  %v1977_v48 = vmax.f32 %v1831_v45, 0.0 }
 0x387   :  { %v1978_v2 = vmax.f32 %v1834_v15, 0.0  ;;  %2662 = vmatmul.mubr.bf16.gmra.mrb[56].mxu1 %v4275_v30  ;;  %v5613_v5 = vpop.permute.xlu0 %1314 }
 0x388   :  { %2669 = vmatprep.mubr.bf16.mxu1 %v4276_v63  ;;  %v4287_v63 = vld [vmem:[%s6062_s7 + $0xc0] ss:$16 sps:$4 sm:$0xff]  }
 0x389   :  { %v5593_v60 = vpack.c.bf16 %v1978_v2, %v1977_v48 }
 0x38a   :  { %v1838_v53 = vpop.f32.mrb[76].mxu0 }
 0x38b   :  { %v1839_v24 = vadd.f32 %v1838_v53, %v1205_v11  ;;  %v1840_v57 = vpop.f32.mrb[77].mxu0  ;;  %v5617_v11 = vpop.permute.xlu1 %1319 }
 0x38c   :  { %v1841_v20 = vpop.f32.mrb[78].mxu0  ;;  %v1235_v7 = vpop.permute.xlu0 %1234 }
 0x38d   :  { %v1842_v42 = vadd.f32 %v1841_v20, %v1210_v38  ;;  %v1843_v51 = vpop.f32.mrb[79].mxu0  ;;  %v1979_v18 = vmax.f32 %v1839_v24, 0.0 }
 0x38e   :  { %v4290_v51 = vld [vmem:[%s6062_s7 + $0xe0] ss:$16 sps:$4 sm:$0xff]  }
 0x38f   :  { %v1980_v43 = vmax.f32 %v1842_v42, 0.0  ;;  %2670 = vmatmul.mubr.bf16.gmra.mrb[60].mxu1 %v4278_v14  ;;  %v1240_v31 = vpop.permute.xlu1 %1239 }
 0x390   :  { %2677 = vmatprep.mubr.bf16.mxu1 %v4279_v23  ;;  %v5630_v15 = vpop.permute.xlu0 %1324 }
 0x391   :  { %v5605_v37 = vpack.c.bf16 %v1980_v43, %v1979_v18 }
 0x392   :  { %v1846_v32 = vpop.f32.mrb[80].mxu0 }
 0x393   :  { %v1847_v34 = vadd.f32 %v1846_v32, %v1215_v0  ;;  %v1848_v58 = vpop.f32.mrb[81].mxu0  ;;  %v4288_v0 = vld [vmem:[%s6062_s7 + $0xe4] ss:$16 sps:$4 sm:$0xff]  }
 0x394   :  { %v1849_v19 = vpop.f32.mrb[82].mxu0  ;;  %v1245_v14 = vpop.permute.xlu0 %1244 }
 0x395   :  { %v1850_v12 = vadd.f32 %v1849_v19, %v1220_v10  ;;  %v1851_v61 = vpop.f32.mrb[83].mxu0  ;;  %v1981_v13 = vmax.f32 %v1847_v34, 0.0  ;;  %v5635_v10 = vpop.permute.xlu1 %1329 }
 0x396   :  { %v4293_v61 = vld [vmem:[%s6062_s7 + $0x100] ss:$16 sps:$4 sm:$0xff]  }
 0x397   :  { %v1982_v17 = vmax.f32 %v1850_v12, 0.0  ;;  %2678 = vmatmul.mubr.bf16.gmra.mrb[64].mxu1 %v4281_v21 }
 0x398   :  { %2685 = vmatprep.mubr.bf16.mxu1 %v4282_v22 }
 0x399   :  { %v5615_v41 = vpack.c.bf16 %v1982_v17, %v1981_v13  ;;  %v1250_v18 = vpop.permute.xlu1 %1249  ;;  %v4294_v17 = vld [vmem:[%s6062_s7 + $0x124] ss:$16 sps:$4 sm:$0xff]  }
 0x39a   :  { %v1854_v50 = vpop.f32.mrb[84].mxu0 }
 0x39b   :  { %v1855_v56 = vadd.f32 %v1854_v50, %v1225_v59  ;;  %v1856_v35 = vpop.f32.mrb[85].mxu0  ;;  %v4291_v59 = vld [vmem:[%s6062_s7 + $0x104] ss:$16 sps:$4 sm:$0xff]  }
 0x39c   :  { %v1857_v38 = vpop.f32.mrb[86].mxu0 }
 0x39d   :  { %v1858_v16 = vadd.f32 %v1857_v38, %v1230_v27  ;;  %v1859_v52 = vpop.f32.mrb[87].mxu0  ;;  %v1983_v4 = vmax.f32 %v1855_v56, 0.0 }
 0x39e   :  { %v4296_v52 = vld [vmem:[%s6062_s7 + $0x120] ss:$16 sps:$4 sm:$0xff]  }
 0x39f   :  { %v1984_v40 = vmax.f32 %v1858_v16, 0.0  ;;  %2686 = vmatmul.mubr.bf16.gmra.mrb[68].mxu1 %v4284_v6 }
 0x3a0   :  { %2693 = vmatprep.mubr.bf16.mxu1 %v4285_v49 }
 0x3a1   :  { %v5625_v45 = vpack.c.bf16 %v1984_v40, %v1983_v4 }
 0x3a2   :  { %v1862_v47 = vpop.f32.mrb[88].mxu0 }
 0x3a3   :  { %v1863_v30 = vadd.f32 %v1862_v47, %v1235_v7  ;;  %v1864_v1 = vpop.f32.mrb[89].mxu0 }
 0x3a4   :  { %v1865_v8 = vpop.f32.mrb[90].mxu0 }
 0x3a5   :  { %v1866_v48 = vadd.f32 %v1865_v8, %v1240_v31  ;;  %v1867_v2 = vpop.f32.mrb[91].mxu0  ;;  %v1985_v53 = vmax.f32 %v1863_v30, 0.0 }
 0x3a7   :  { %v1986_v24 = vmax.f32 %v1866_v48, 0.0  ;;  %2694 = vmatmul.mubr.bf16.gmra.mrb[72].mxu1 %v4287_v63 }
 0x3a8   :  { %2701 = vmatprep.mubr.bf16.mxu1 %v4288_v0 }
 0x3a9   :  { %v5637_v57 = vpack.c.bf16 %v1986_v24, %v1985_v53 }
 0x3aa   :  { %v1870_v20 = vpop.f32.mrb[92].mxu0 }
 0x3ab   :  { %v1871_v23 = vadd.f32 %v1870_v20, %v1245_v14  ;;  %v1872_v42 = vpop.f32.mrb[93].mxu0 }
 0x3ac   :  { %v1873_v43 = vpop.f32.mrb[94].mxu0 }
 0x3ad   :  { %v1874_v32 = vadd.f32 %v1873_v43, %v1250_v18  ;;  %v1875_v34 = vpop.f32.mrb[95].mxu0  ;;  %v1987_v58 = vmax.f32 %v1871_v23, 0.0 }
 0x3af   :  { %v1988_v21 = vmax.f32 %v1874_v32, 0.0  ;;  %2702 = vmatmul.mubr.bf16.gmra.mrb[76].mxu1 %v4290_v51 }
 0x3b0   :  { %2709 = vmatprep.mubr.bf16.mxu1 %v4291_v59 }
 0x3b1   :  { %v5645_v27 = vpack.c.bf16 %v1988_v21, %v1987_v58 }
 0x3b2   :  { %v1878_v19 = vpop.f32.mrb[96].mxu0 }
 0x3b3   :  { %v1879_v22 = vadd.f32 %v1878_v19, %v5538_v3  ;;  %v1880_v12 = vpop.f32.mrb[97].mxu0 }
 0x3b4   :  { %v1881_v13 = vpop.f32.mrb[98].mxu0 }
 0x3b5   :  { %v1882_v50 = vadd.f32 %v1881_v13, %v5540_v25  ;;  %v1883_v56 = vpop.f32.mrb[99].mxu0  ;;  %v1989_v35 = vmax.f32 %v1879_v22, 0.0  ;;  %v4297_v25 = vld [vmem:[%s6062_s7 + $0x144] ss:$16 sps:$4 sm:$0xff]  }
 0x3b7   :  { %v1990_v6 = vmax.f32 %v1882_v50, 0.0  ;;  %2710 = vmatmul.mubr.bf16.gmra.mrb[80].mxu1 %v4293_v61 }
 0x3b8   :  { %2717 = vmatprep.mubr.bf16.mxu1 %v4294_v17 }
 0x3b9   :  { %v2029_v38 = vpack.c.bf16 %v1990_v6, %v1989_v35 }
 0x3ba   :  { %v1886_v49 = vpop.f32.mrb[100].mxu0 }
 0x3bb   :  { %v1887_v3 = vadd.f32 %v1886_v49, %v5546_v44  ;;  %v1888_v16 = vpop.f32.mrb[101].mxu0  ;;  %3845 = vmatprep.subr.bf16.mxu1 %v2029_v38 }
 0x3bc   :  { %v1889_v7 = vpop.f32.mrb[102].mxu0  ;;  %3846 = vmatpush3.bf16.msra.mxu1 %v5573_v39  ;;  %v4299_v39 = vld [vmem:[%s6062_s7 + $0x140] ss:$16 sps:$4 sm:$0xff]  }
 0x3bd   :  { %v1890_v4 = vadd.f32 %v1889_v7, %v5550_v26  ;;  %v1891_v40 = vpop.f32.mrb[103].mxu0  ;;  %v1991_v31 = vmax.f32 %v1887_v3, 0.0  ;;  %v4300_v26 = vld [vmem:[%s6062_s7 + $0x164] ss:$16 sps:$4 sm:$0xff]  }
 0x3bf   :  { %v1992_v47 = vmax.f32 %v1890_v4, 0.0  ;;  %2718 = vmatmul.mubr.bf16.gmra.mrb[84].mxu1 %v4296_v52 }
 0x3c0   :  { %2725 = vmatprep.mubr.bf16.mxu1 %v4297_v25 }
 0x3c1   :  { %v2030_v44 = vpack.c.bf16 %v1992_v47, %v1991_v31 }
 0x3c2   :  { %v1894_v30 = vpop.f32.mrb[104].mxu0 }
 0x3c3   :  { %v1895_v1 = vadd.f32 %v1894_v30, %v5555_v36  ;;  %v1896_v63 = vpop.f32.mrb[105].mxu0  ;;  %3847 = vmatprep.subr.bf16.mxu1 %v2030_v44 }
 0x3c4   :  { %v1897_v8 = vpop.f32.mrb[106].mxu0  ;;  %3848 = vmatpush3.bf16.msra.mxu1 %v5583_v28  ;;  %v4302_v28 = vld [vmem:[%s6062_s7 + $0x160] ss:$16 sps:$4 sm:$0xff]  }
 0x3c5   :  { %v1898_v0 = vadd.f32 %v1897_v8, %v5557_v46  ;;  %v1899_v48 = vpop.f32.mrb[107].mxu0  ;;  %v1993_v2 = vmax.f32 %v1895_v1, 0.0  ;;  %v4303_v46 = vld [vmem:[%s6062_s7 + $0x184] ss:$16 sps:$4 sm:$0xff]  }
 0x3c6   :  { %v4324_v48 = vld [vmem:[%s6062_s7 + $0x6c] ss:$16 sps:$4 sm:$0xff]  }
 0x3c7   :  { %v1994_v53 = vmax.f32 %v1898_v0, 0.0  ;;  %2726 = vmatmul.mubr.bf16.gmra.mrb[88].mxu1 %v4299_v39  ;;  %v4321_v0 = vld [vmem:[%s6062_s7 + $0x4c] ss:$16 sps:$4 sm:$0xff]  }
 0x3c8   :  { %2733 = vmatprep.mubr.bf16.mxu1 %v4300_v26  ;;  %v4315_v26 = vld [vmem:[%s6062_s7 + $0x8] ss:$16 sps:$4 sm:$0xff]  }
 0x3c9   :  { %v2031_v36 = vpack.c.bf16 %v1994_v53, %v1993_v2  ;;  %v4326_v2 = vld [vmem:[%s6062_s7 + $0x68] ss:$16 sps:$4 sm:$0xff]   ;;  %v4327_v53 = vld [vmem:[%s6062_s7 + $0x8c] ss:$16 sps:$4 sm:$0xff]  }
 0x3ca   :  { %v1902_v24 = vpop.f32.mrb[108].mxu0 }
 0x3cb   :  { %v1903_v14 = vadd.f32 %v1902_v24, %v5565_v29  ;;  %v1904_v20 = vpop.f32.mrb[109].mxu0  ;;  %3849 = vmatprep.subr.bf16.mxu1 %v2031_v36  ;;  %v4329_v36 = vld [vmem:[%s6062_s7 + $0x88] ss:$16 sps:$4 sm:$0xff]   ;;  %v4330_v24 = vld [vmem:[%s6062_s7 + $0xac] ss:$16 sps:$4 sm:$0xff]  }
 0x3cc   :  { %v1905_v23 = vpop.f32.mrb[110].mxu0  ;;  %3850 = vmatpush3.bf16.msra.mxu1 %v5593_v60  ;;  %v4305_v60 = vld [vmem:[%s6062_s7 + $0x180] ss:$16 sps:$4 sm:$0xff]   ;;  %v4333_v20 = vld [vmem:[%s6062_s7 + $0xcc] ss:$16 sps:$4 sm:$0xff]  }
 0x3cd   :  { %v1906_v42 = vadd.f32 %v1905_v23, %v5571_v55  ;;  %v1907_v51 = vpop.f32.mrb[111].mxu0  ;;  %v1995_v18 = vmax.f32 %v1903_v14, 0.0  ;;  %v4306_v55 = vld [vmem:[%s6062_s7 + $0x1a4] ss:$16 sps:$4 sm:$0xff]   ;;  %v4332_v14 = vld [vmem:[%s6062_s7 + $0xa8] ss:$16 sps:$4 sm:$0xff]  }
 0x3ce   :  { %v4336_v23 = vld [vmem:[%s6062_s7 + $0xec] ss:$16 sps:$4 sm:$0xff]   ;;  %v4341_v51 = vld [vmem:[%s6062_s7 + $0x108] ss:$16 sps:$4 sm:$0xff]  }
 0x3cf   :  { %v1996_v43 = vmax.f32 %v1906_v42, 0.0  ;;  %2734 = vmatmul.mubr.bf16.gmra.mrb[92].mxu1 %v4302_v28  ;;  %v4335_v28 = vld [vmem:[%s6062_s7 + $0xc8] ss:$16 sps:$4 sm:$0xff]   ;;  %v4339_v42 = vld [vmem:[%s6062_s7 + $0x10c] ss:$16 sps:$4 sm:$0xff]  }
 0x3d0   :  { %2741 = vmatprep.mubr.bf16.mxu1 %v4303_v46  ;;  %v4338_v46 = vld [vmem:[%s6062_s7 + $0xe8] ss:$16 sps:$4 sm:$0xff]  }
 0x3d1   :  { %v2032_v29 = vpack.c.bf16 %v1996_v43, %v1995_v18  ;;  %v4342_v18 = vld [vmem:[%s6062_s7 + $0x12c] ss:$16 sps:$4 sm:$0xff]   ;;  %v4344_v43 = vld [vmem:[%s6062_s7 + $0x128] ss:$16 sps:$4 sm:$0xff]  }
 0x3d2   :  { %v1910_v59 = vpop.f32.mrb[112].mxu0 }
 0x3d3   :  { %v1911_v32 = vadd.f32 %v1910_v59, %v5581_v9  ;;  %v1912_v34 = vpop.f32.mrb[113].mxu0  ;;  %3851 = vmatprep.subr.bf16.mxu1 %v2032_v29  ;;  %v4345_v29 = vld [vmem:[%s6062_s7 + $0x14c] ss:$16 sps:$4 sm:$0xff]   ;;  %v4347_v59 = vld [vmem:[%s6062_s7 + $0x148] ss:$16 sps:$4 sm:$0xff]  }
 0x3d4   :  { %v1913_v58 = vpop.f32.mrb[114].mxu0  ;;  %3852 = vmatpush3.bf16.msra.mxu1 %v5605_v37  ;;  %v4308_v37 = vld [vmem:[%s6062_s7 + $0x1a0] ss:$16 sps:$4 sm:$0xff]  }
 0x3d5   :  { %v1914_v21 = vadd.f32 %v1913_v58, %v5585_v33  ;;  %v1915_v19 = vpop.f32.mrb[115].mxu0  ;;  %v1997_v22 = vmax.f32 %v1911_v32, 0.0  ;;  %v4309_v33 = vld [vmem:[%s6062_s7 + $0x1c4] ss:$16 sps:$4 sm:$0xff]   ;;  %v4348_v32 = vld [vmem:[%s6062_s7 + $0x16c] ss:$16 sps:$4 sm:$0xff]  }
 0x3d6   :  { %v4350_v58 = vld [vmem:[%s6062_s7 + $0x168] ss:$16 sps:$4 sm:$0xff]   ;;  %v4351_v19 = vld [vmem:[%s6062_s7 + $0x18c] ss:$16 sps:$4 sm:$0xff]  }
 0x3d7   :  { %v1998_v12 = vmax.f32 %v1914_v21, 0.0  ;;  %2742 = vmatmul.mubr.bf16.gmra.mrb[96].mxu1 %v4305_v60 }
 0x3d8   :  { %2749 = vmatprep.mubr.bf16.mxu1 %v4306_v55 }
 0x3d9   :  { %v2033_v9 = vpack.c.bf16 %v1998_v12, %v1997_v22 }
 0x3da   :  { %v1918_v61 = vpop.f32.mrb[116].mxu0 }
 0x3db   :  { %v1919_v13 = vadd.f32 %v1918_v61, %v5598_v54  ;;  %v1920_v17 = vpop.f32.mrb[117].mxu0  ;;  %3853 = vmatprep.subr.bf16.mxu1 %v2033_v9 }
 0x3dc   :  { %v1921_v50 = vpop.f32.mrb[118].mxu0  ;;  %3854 = vmatpush3.bf16.msra.mxu1 %v5615_v41  ;;  %v4311_v41 = vld [vmem:[%s6062_s7 + $0x1c0] ss:$16 sps:$4 sm:$0xff]  }
 0x3dd   :  { %v1922_v56 = vadd.f32 %v1921_v50, %v5603_v62  ;;  %v1923_v35 = vpop.f32.mrb[119].mxu0  ;;  %v1999_v6 = vmax.f32 %v1919_v13, 0.0  ;;  %v4312_v62 = vld [vmem:[%s6062_s7 + $0x1e4] ss:$16 sps:$4 sm:$0xff]   ;;  %v4353_v13 = vld [vmem:[%s6062_s7 + $0x188] ss:$16 sps:$4 sm:$0xff]  }
 0x3de   :  { %v4354_v50 = vld [vmem:[%s6062_s7 + $0x1ac] ss:$16 sps:$4 sm:$0xff]  }
 0x3df   :  { %v2000_v38 = vmax.f32 %v1922_v56, 0.0  ;;  %2750 = vmatmul.mubr.bf16.gmra.mrb[100].mxu1 %v4308_v37 }
 0x3e0   :  { %2757 = vmatprep.mubr.bf16.mxu1 %v4309_v33 }
 0x3e1   :  { %v2034_v54 = vpack.c.bf16 %v2000_v38, %v1999_v6  ;;  %v4356_v38 = vld [vmem:[%s6062_s7 + $0x1a8] ss:$16 sps:$4 sm:$0xff]  }
 0x3e2   :  { %v1926_v49 = vpop.f32.mrb[120].mxu0 }
 0x3e3   :  { %v1927_v3 = vadd.f32 %v1926_v49, %v5613_v5  ;;  %v1928_v16 = vpop.f32.mrb[121].mxu0  ;;  %3855 = vmatprep.subr.bf16.mxu1 %v2034_v54 }
 0x3e4   :  { %v1929_v52 = vpop.f32.mrb[122].mxu0  ;;  %3856 = vmatpush3.bf16.msra.mxu1 %v5625_v45  ;;  %v4314_v45 = vld [vmem:[%s6062_s7 + $0x1e0] ss:$16 sps:$4 sm:$0xff]  }
 0x3e5   :  { %v1930_v7 = vadd.f32 %v1929_v52, %v5617_v11  ;;  %v1931_v25 = vpop.f32.mrb[123].mxu0  ;;  %v2001_v4 = vmax.f32 %v1927_v3, 0.0  ;;  %v4317_v11 = vld [vmem:[%s6062_s7 + $0xc] ss:$16 sps:$4 sm:$0xff]  }
 0x3e6   :  { %v4357_v3 = vld [vmem:[%s6062_s7 + $0x1cc] ss:$16 sps:$4 sm:$0xff]  }
 0x3e7   :  { %v2002_v40 = vmax.f32 %v1930_v7, 0.0  ;;  %2758 = vmatmul.mubr.bf16.gmra.mrb[104].mxu1 %v4311_v41  ;;  %v4359_v7 = vld [vmem:[%s6062_s7 + $0x1c8] ss:$16 sps:$4 sm:$0xff]  }
 0x3e8   :  { %2765 = vmatprep.mubr.bf16.mxu1 %v4312_v62 }
 0x3e9   :  { %v2035_v5 = vpack.c.bf16 %v2002_v40, %v2001_v4  ;;  %v4360_v40 = vld [vmem:[%s6062_s7 + $0x1ec] ss:$16 sps:$4 sm:$0xff]  }
 0x3ea   :  { %v1934_v31 = vpop.f32.mrb[124].mxu0 }
 0x3eb   :  { %v1935_v47 = vadd.f32 %v1934_v31, %v5630_v15  ;;  %v1936_v44 = vpop.f32.mrb[125].mxu0  ;;  %3857 = vmatprep.subr.bf16.mxu1 %v2035_v5 }
 0x3ec   :  { %v1937_v30 = vpop.f32.mrb[126].mxu0  ;;  %3858 = vmatpush3.bf16.msra.mxu1 %v5637_v57  ;;  %v4318_v57 = vld [vmem:[%s6062_s7 + $0x2c] ss:$16 sps:$4 sm:$0xff]  }
 0x3ed   :  { %v1938_v1 = vadd.f32 %v1937_v30, %v5635_v10  ;;  %v1939_v63 = vpop.f32.mrb[127].mxu0  ;;  %v2003_v39 = vmax.f32 %v1935_v47, 0.0  ;;  %v4320_v10 = vld [vmem:[%s6062_s7 + $0x28] ss:$16 sps:$4 sm:$0xff]  }
 0x3ef   :  { %v2004_v8 = vmax.f32 %v1938_v1, 0.0  ;;  %2766 = vmatmul.mubr.bf16.gmra.mrb[108].mxu1 %v4314_v45  ;;  %v4362_v45 = vld [vmem:[%s6062_s7 + $0x1e8] ss:$16 sps:$4 sm:$0xff]  }
 0x3f0   :  { %2806 = vmatprep.mubr.bf16.mxu1 %v4317_v11 }
 0x3f1   :  { %v2036_v15 = vpack.c.bf16 %v2004_v8, %v2003_v39 }
 0x3f3   :  { %3859 = vmatprep.subr.bf16.mxu1 %v2036_v15 }
 0x3f4   :  { %3860 = vmatpush3.bf16.msra.mxu1 %v5645_v27  ;;  %v4323_v27 = vld [vmem:[%s6062_s7 + $0x48] ss:$16 sps:$4 sm:$0xff]  }
 0x3f7   :  { %2807 = vmatmul.mubr.bf16.vlgmr.msra.gmra.mrb[112].mxu1 %v4315_v26 }
 0x3f8   :  { %2814 = vmatprep.mubr.bf16.mxu1 %v4318_v57 }
 0x3ff   :  { %2815 = vmatmul.mubr.bf16.gmra.mrb[116].mxu1 %v4320_v10 }
 0x400   :  { %2822 = vmatprep.mubr.bf16.mxu1 %v4321_v0 }
 0x407   :  { %2823 = vmatmul.mubr.bf16.gmra.mrb[120].mxu1 %v4323_v27 }
 0x408   :  { %2830 = vmatprep.mubr.bf16.mxu1 %v4324_v48 }
 0x40f   :  { %2831 = vmatmul.mubr.bf16.gmra.mrb[124].mxu1 %v4326_v2 }
 0x410   :  { %2838 = vmatprep.mubr.bf16.mxu1 %v4327_v53 }
 0x417   :  { %2839 = vmatmul.mubr.bf16.gmra.mrb[128].mxu1 %v4329_v36 }
 0x418   :  { %2846 = vmatprep.mubr.bf16.mxu1 %v4330_v24 }
 0x41f   :  { %2847 = vmatmul.mubr.bf16.gmra.mrb[132].mxu1 %v4332_v14 }
 0x420   :  { %2854 = vmatprep.mubr.bf16.mxu1 %v4333_v20 }
 0x427   :  { %2855 = vmatmul.mubr.bf16.gmra.mrb[136].mxu1 %v4335_v28 }
 0x428   :  { %2862 = vmatprep.mubr.bf16.mxu1 %v4336_v23 }
 0x42f   :  { %2863 = vmatmul.mubr.bf16.gmra.mrb[140].mxu1 %v4338_v46 }
 0x430   :  { %2870 = vmatprep.mubr.bf16.mxu1 %v4339_v42 }
 0x437   :  { %2871 = vmatmul.mubr.bf16.gmra.mrb[144].mxu1 %v4341_v51 }
 0x438   :  { %2878 = vmatprep.mubr.bf16.mxu1 %v4342_v18 }
 0x43f   :  { %2879 = vmatmul.mubr.bf16.gmra.mrb[148].mxu1 %v4344_v43 }
 0x440   :  { %2886 = vmatprep.mubr.bf16.mxu1 %v4345_v29 }
 0x447   :  { %2887 = vmatmul.mubr.bf16.gmra.mrb[152].mxu1 %v4347_v59 }
 0x448   :  { %2894 = vmatprep.mubr.bf16.mxu1 %v4348_v32 }
 0x44a   :  { %v3749_v34 = vpop.f32.mrb[48].mxu1 }
 0x44b   :  { %v3750_v60 = vpop.f32.mrb[49].mxu1 }
 0x44c   :  { %v5788_v55 = vadd.f32 %v3750_v60, %v3749_v34  ;;  %v3752_v21 = vpop.f32.mrb[50].mxu1 }
 0x44d   :  { %v3753_v22 = vpop.f32.mrb[51].mxu1 }
 0x44e   :  { %v5793_v12 = vadd.f32 %v3753_v22, %v3752_v21 }
 0x44f   :  { %2895 = vmatmul.mubr.bf16.gmra.mrb[156].mxu1 %v4350_v58 }
 0x450   :  { %2902 = vmatprep.mubr.bf16.mxu1 %v4351_v19 }
 0x452   :  { %v3755_v9 = vpop.f32.mrb[52].mxu1 }
 0x453   :  { %v3756_v61 = vpop.f32.mrb[53].mxu1 }
 0x454   :  { %v5798_v17 = vadd.f32 %v3756_v61, %v3755_v9  ;;  %v3758_v37 = vpop.f32.mrb[54].mxu1 }
 0x455   :  { %v3759_v33 = vpop.f32.mrb[55].mxu1 }
 0x456   :  { %v5803_v56 = vadd.f32 %v3759_v33, %v3758_v37 }
 0x457   :  { %2903 = vmatmul.mubr.bf16.gmra.mrb[160].mxu1 %v4353_v13 }
 0x458   :  { %2910 = vmatprep.mubr.bf16.mxu1 %v4354_v50 }
 0x45a   :  { %v3761_v35 = vpop.f32.mrb[56].mxu1 }
 0x45b   :  { %v3762_v6 = vpop.f32.mrb[57].mxu1 }
 0x45c   :  { %v5808_v54 = vadd.f32 %v3762_v6, %v3761_v35  ;;  %v3764_v49 = vpop.f32.mrb[58].mxu1 }
 0x45d   :  { %v3765_v16 = vpop.f32.mrb[59].mxu1 }
 0x45e   :  { %v5813_v41 = vadd.f32 %v3765_v16, %v3764_v49  ;;  %v5860_v16 = vpop.permute.xlu0 %2215 }
 0x45f   :  { %2911 = vmatmul.mubr.bf16.gmra.mrb[164].mxu1 %v4356_v38 }
 0x460   :  { %2918 = vmatprep.mubr.bf16.mxu1 %v4357_v3 }
 0x462   :  { %v3767_v52 = vpop.f32.mrb[60].mxu1 }
 0x463   :  { %v3768_v62 = vpop.f32.mrb[61].mxu1 }
 0x464   :  { %v5818_v25 = vadd.f32 %v3768_v62, %v3767_v52  ;;  %v3770_v4 = vpop.f32.mrb[62].mxu1  ;;  %v5862_v62 = vpop.permute.xlu1 %2220 }
 0x465   :  { %v3771_v5 = vpop.f32.mrb[63].mxu1 }
 0x466   :  { %v5823_v31 = vadd.f32 %v3771_v5, %v3770_v4 }
 0x467   :  { %2919 = vmatmul.mubr.bf16.gmra.mrb[168].mxu1 %v4359_v7 }
 0x468   :  { %2926 = vmatprep.mubr.bf16.mxu1 %v4360_v40 }
 0x46a   :  { %v3773_v47 = vpop.f32.mrb[64].mxu1 }
 0x46b   :  { %v3774_v44 = vpop.f32.mrb[65].mxu1 }
 0x46c   :  { %v5828_v30 = vadd.f32 %v3774_v44, %v3773_v47  ;;  %v3776_v11 = vpop.f32.mrb[66].mxu1  ;;  %v2136_v44 = vpop.permute.xlu0 %2135 }
 0x46d   :  { %v3777_v1 = vpop.f32.mrb[67].mxu1 }
 0x46e   :  { %v5830_v63 = vadd.f32 %v3777_v1, %v3776_v11 }
 0x46f   :  { %2927 = vmatmul.mubr.bf16.gmra.mrb[172].mxu1 %v4362_v45  ;;  %v2141_v45 = vpop.permute.xlu1 %2140 }
 0x472   :  { %v3779_v39 = vpop.f32.mrb[68].mxu1 }
 0x473   :  { %v3780_v8 = vpop.f32.mrb[69].mxu1 }
 0x474   :  { %v5832_v15 = vadd.f32 %v3780_v8, %v3779_v39  ;;  %v3782_v26 = vpop.f32.mrb[70].mxu1 }
 0x475   :  { %v3783_v57 = vpop.f32.mrb[71].mxu1 }
 0x476   :  { %v5834_v10 = vadd.f32 %v3783_v57, %v3782_v26  ;;  %v5870_v26 = vpop.permute.xlu0 %2225 }
 0x47a   :  { %v3785_v0 = vpop.f32.mrb[72].mxu1 }
 0x47b   :  { %v3786_v27 = vpop.f32.mrb[73].mxu1 }
 0x47c   :  { %v5836_v48 = vadd.f32 %v3786_v27, %v3785_v0  ;;  %v3788_v2 = vpop.f32.mrb[74].mxu1  ;;  %v5874_v27 = vpop.permute.xlu1 %2230 }
 0x47d   :  { %v3789_v53 = vpop.f32.mrb[75].mxu1 }
 0x47e   :  { %v5838_v36 = vadd.f32 %v3789_v53, %v3788_v2  ;;  %v2146_v53 = vpop.permute.xlu0 %2145 }
 0x482   :  { %v3791_v24 = vpop.f32.mrb[76].mxu1 }
 0x483   :  { %v3792_v14 = vpop.f32.mrb[77].mxu1 }
 0x484   :  { %v5840_v20 = vadd.f32 %v3792_v14, %v3791_v24  ;;  %v3794_v28 = vpop.f32.mrb[78].mxu1 }
 0x485   :  { %v3795_v23 = vpop.f32.mrb[79].mxu1 }
 0x486   :  { %v5842_v46 = vadd.f32 %v3795_v23, %v3794_v28  ;;  %v2151_v23 = vpop.permute.xlu1 %2150 }
 0x48a   :  { %v3797_v42 = vpop.f32.mrb[80].mxu1 }
 0x48b   :  { %v3798_v51 = vpop.f32.mrb[81].mxu1 }
 0x48c   :  { %v5844_v18 = vadd.f32 %v3798_v51, %v3797_v42  ;;  %v3800_v43 = vpop.f32.mrb[82].mxu1 }
 0x48d   :  { %v3801_v29 = vpop.f32.mrb[83].mxu1 }
 0x48e   :  { %v5846_v59 = vadd.f32 %v3801_v29, %v3800_v43  ;;  %v5880_v43 = vpop.permute.xlu0 %2235 }
 0x492   :  { %v3803_v32 = vpop.f32.mrb[84].mxu1 }
 0x493   :  { %v3804_v34 = vpop.f32.mrb[85].mxu1 }
 0x494   :  { %v5848_v60 = vadd.f32 %v3804_v34, %v3803_v32  ;;  %v3806_v58 = vpop.f32.mrb[86].mxu1  ;;  %v5882_v32 = vpop.permute.xlu1 %2240 }
 0x495   :  { %v3807_v21 = vpop.f32.mrb[87].mxu1 }
 0x496   :  { %v5850_v19 = vadd.f32 %v3807_v21, %v3806_v58 }
 0x49a   :  { %v3809_v22 = vpop.f32.mrb[88].mxu1 }
 0x49b   :  { %v3810_v9 = vpop.f32.mrb[89].mxu1 }
 0x49c   :  { %v5852_v61 = vadd.f32 %v3810_v9, %v3809_v22  ;;  %v3812_v13 = vpop.f32.mrb[90].mxu1 }
 0x49d   :  { %v3813_v37 = vpop.f32.mrb[91].mxu1 }
 0x49e   :  { %v5854_v50 = vadd.f32 %v3813_v37, %v3812_v13  ;;  %v2156_v13 = vpop.permute.xlu0 %2155  ;;  %v2161_v37 = vpop.permute.xlu1 %2160 }
 0x4a2   :  { %v3815_v33 = vpop.f32.mrb[92].mxu1 }
 0x4a3   :  { %v3816_v35 = vpop.f32.mrb[93].mxu1 }
 0x4a4   :  { %v5856_v6 = vadd.f32 %v3816_v35, %v3815_v33  ;;  %v3818_v38 = vpop.f32.mrb[94].mxu1 }
 0x4a5   :  { %v3819_v49 = vpop.f32.mrb[95].mxu1 }
 0x4a6   :  { %v5858_v3 = vadd.f32 %v3819_v49, %v3818_v38  ;;  %v2648_v38 = vadd.f32 %v5788_v55, %v2136_v44 }
 0x4aa   :  { %v3821_v52 = vpop.f32.mrb[96].mxu1 }
 0x4ab   :  { %v3822_v7 = vpop.f32.mrb[97].mxu1 }
 0x4ac   :  { %v5864_v4 = vadd.f32 %v3822_v7, %v3821_v52  ;;  %v3824_v40 = vpop.f32.mrb[98].mxu1  ;;  %v5889_v7 = vpop.permute.xlu0 %2245 }
 0x4ad   :  { %v3825_v5 = vpop.f32.mrb[99].mxu1 }
 0x4ae   :  { %v5866_v47 = vadd.f32 %v3825_v5, %v3824_v40  ;;  %v2651_v5 = vadd.f32 %v5793_v12, %v2141_v45 }
 0x4b0   :  { %v2166_v44 = vpop.permute.xlu0 %2165 }
 0x4b2   :  { %v3827_v11 = vpop.f32.mrb[100].mxu1 }
 0x4b3   :  { %v3828_v1 = vpop.f32.mrb[101].mxu1 }
 0x4b4   :  { %v5868_v39 = vadd.f32 %v3828_v1, %v3827_v11  ;;  %v3830_v8 = vpop.f32.mrb[102].mxu1 }
 0x4b5   :  { %v3831_v57 = vpop.f32.mrb[103].mxu1 }
 0x4b6   :  { %v5872_v0 = vadd.f32 %v3831_v57, %v3830_v8  ;;  %v5892_v8 = vpop.permute.xlu1 %2250  ;;  %v4365_v57 = vld [vmem:[%s6064_s9 + $0x4] ss:$8 sps:$4 sm:$0xff]  }
 0x4b7   :  { %3207 = vmatprep.mubr.bf16.mxu0 %v4365_v57 }
 0x4ba   :  { %v3833_v2 = vpop.f32.mrb[104].mxu1 }
 0x4bb   :  { %v3834_v24 = vpop.f32.mrb[105].mxu1 }
 0x4bc   :  { %v5876_v14 = vadd.f32 %v3834_v24, %v3833_v2  ;;  %v3836_v28 = vpop.f32.mrb[106].mxu1 }
 0x4bd   :  { %v3837_v42 = vpop.f32.mrb[107].mxu1 }
 0x4be   :  { %v5878_v51 = vadd.f32 %v3837_v42, %v3836_v28 }
 0x4c2   :  { %v3839_v29 = vpop.f32.mrb[108].mxu1 }
 0x4c3   :  { %v3840_v34 = vpop.f32.mrb[109].mxu1 }
 0x4c4   :  { %v5884_v58 = vadd.f32 %v3840_v34, %v3839_v29  ;;  %v3842_v21 = vpop.f32.mrb[110].mxu1  ;;  %v2656_v29 = vadd.f32 %v5798_v17, %v2146_v53  ;;  %v2664_v17 = vadd.f32 %v5808_v54, %v2156_v13 }
 0x4c5   :  { %v3843_v22 = vpop.f32.mrb[111].mxu1 }
 0x4c6   :  { %v5886_v9 = vadd.f32 %v3843_v22, %v3842_v21  ;;  %v2171_v21 = vpop.permute.xlu1 %2170 }
 0x4ca   :  { %v3861_v33 = vpop.f32.mrb[112].mxu1 }
 0x4cb   :  { %v3862_v35 = vpop.f32.mrb[113].mxu1 }
 0x4cc   :  { %v3863_v49 = vadd.f32 %v3862_v35, %v3861_v33  ;;  %v3864_v52 = vpop.f32.mrb[114].mxu1  ;;  %v2659_v33 = vadd.f32 %v5803_v56, %v2151_v23  ;;  %v2667_v56 = vadd.f32 %v5813_v41, %v2161_v37  ;;  %v2675_v41 = vadd.f32 %v5823_v31, %v2171_v21 }
 0x4cd   :  { %v3865_v40 = vpop.f32.mrb[115].mxu1 }
 0x4ce   :  { %v2809_v11 = vadd.f32 %v3863_v49, %v2648_v38  ;;  %v3866_v1 = vadd.f32 %v3865_v40, %v3864_v52  ;;  %v5901_v52 = vpop.permute.xlu0 %2255 }
 0x4d0   :  { %v2812_v2 = vadd.f32 %v3866_v1, %v2651_v5  ;;  %v2935_v24 = vmax.f32 %v2809_v11, 0.0  ;;  %v5903_v1 = vpop.permute.xlu1 %2260 }
 0x4d2   :  { %v2936_v28 = vmax.f32 %v2812_v2, 0.0  ;;  %v3867_v55 = vpop.f32.mrb[116].mxu1 }
 0x4d3   :  { %v3868_v42 = vpop.f32.mrb[117].mxu1 }
 0x4d4   :  { %v5898_v34 = vpack.c.bf16 %v2936_v28, %v2935_v24  ;;  %v3869_v12 = vadd.f32 %v3868_v42, %v3867_v55  ;;  %v3870_v45 = vpop.f32.mrb[118].mxu1  ;;  %v2176_v42 = vpop.permute.xlu0 %2175 }
 0x4d5   :  { %v3871_v22 = vpop.f32.mrb[119].mxu1 }
 0x4d6   :  { %v2817_v35 = vadd.f32 %v3869_v12, %v2656_v29  ;;  %v3872_v38 = vadd.f32 %v3871_v22, %v3870_v45  ;;  %v2181_v12 = vpop.permute.xlu1 %2180 }
 0x4d7   :  { %v2683_v31 = vadd.f32 %v5830_v63, %v2181_v12 }
 0x4d8   :  { %v2820_v49 = vadd.f32 %v3872_v38, %v2659_v33  ;;  %v2937_v40 = vmax.f32 %v2817_v35, 0.0  ;;  %v2672_v38 = vadd.f32 %v5818_v25, %v2166_v44  ;;  %v2680_v25 = vadd.f32 %v5828_v30, %v2176_v42 }
 0x4da   :  { %v2938_v5 = vmax.f32 %v2820_v49, 0.0  ;;  %v3873_v11 = vpop.f32.mrb[120].mxu1 }
 0x4db   :  { %v3874_v57 = vpop.f32.mrb[121].mxu1 }
 0x4dc   :  { %v5906_v53 = vpack.c.bf16 %v2938_v5, %v2937_v40  ;;  %v3875_v2 = vadd.f32 %v3874_v57, %v3873_v11  ;;  %v3876_v24 = vpop.f32.mrb[122].mxu1  ;;  %v5912_v40 = vpop.permute.xlu0 %2265 }
 0x4dd   :  { %v3877_v28 = vpop.f32.mrb[123].mxu1  ;;  %v5915_v57 = vpop.permute.xlu1 %2270 }
 0x4de   :  { %v2825_v23 = vadd.f32 %v3875_v2, %v2664_v17  ;;  %v3878_v55 = vadd.f32 %v3877_v28, %v3876_v24 }
 0x4e0   :  { %v2828_v29 = vadd.f32 %v3878_v55, %v2667_v56  ;;  %v2939_v45 = vmax.f32 %v2825_v23, 0.0  ;;  %v2186_v56 = vpop.permute.xlu0 %2185 }
 0x4e1   :  { %v2688_v30 = vadd.f32 %v5832_v15, %v2186_v56 }
 0x4e2   :  { %v2940_v22 = vmax.f32 %v2828_v29, 0.0  ;;  %v3879_v33 = vpop.f32.mrb[124].mxu1 }
 0x4e3   :  { %v3880_v35 = vpop.f32.mrb[125].mxu1 }
 0x4e4   :  { %v5910_v49 = vpack.c.bf16 %v2940_v22, %v2939_v45  ;;  %v3881_v54 = vadd.f32 %v3880_v35, %v3879_v33  ;;  %v3882_v13 = vpop.f32.mrb[126].mxu1  ;;  %v2191_v45 = vpop.permute.xlu1 %2190 }
 0x4e5   :  { %v3883_v5 = vpop.f32.mrb[127].mxu1  ;;  %v2691_v63 = vadd.f32 %v5834_v10, %v2191_v45 }
 0x4e6   :  { %v2833_v37 = vadd.f32 %v3881_v54, %v2672_v38  ;;  %v3884_v11 = vadd.f32 %v3883_v5, %v3882_v13  ;;  %v5921_v38 = vpop.permute.xlu0 %2275 }
 0x4e8   :  { %v2836_v17 = vadd.f32 %v3884_v11, %v2675_v41  ;;  %v2941_v2 = vmax.f32 %v2833_v37, 0.0  ;;  %v5923_v41 = vpop.permute.xlu1 %2280 }
 0x4ea   :  { %v2942_v24 = vmax.f32 %v2836_v17, 0.0  ;;  %v3885_v28 = vpop.f32.mrb[128].mxu1 }
 0x4eb   :  { %v3886_v23 = vpop.f32.mrb[129].mxu1 }
 0x4ec   :  { %v5918_v44 = vpack.c.bf16 %v2942_v24, %v2941_v2  ;;  %v3887_v55 = vadd.f32 %v3886_v23, %v3885_v28  ;;  %v3888_v29 = vpop.f32.mrb[130].mxu1  ;;  %v2196_v28 = vpop.permute.xlu0 %2195 }
 0x4ed   :  { %v3889_v22 = vpop.f32.mrb[131].mxu1 }
 0x4ee   :  { %v2841_v21 = vadd.f32 %v3887_v55, %v2680_v25  ;;  %v3890_v33 = vadd.f32 %v3889_v22, %v3888_v29  ;;  %v2201_v25 = vpop.permute.xlu1 %2200 }
 0x4ef   :  { %v2699_v10 = vadd.f32 %v5838_v36, %v2201_v25 }
 0x4f0   :  { %v2844_v35 = vadd.f32 %v3890_v33, %v2683_v31  ;;  %v2943_v54 = vmax.f32 %v2841_v21, 0.0  ;;  %v2696_v21 = vadd.f32 %v5836_v48, %v2196_v28 }
 0x4f2   :  { %v2944_v13 = vmax.f32 %v2844_v35, 0.0  ;;  %v3891_v5 = vpop.f32.mrb[132].mxu1  ;;  %v5932_v35 = vpop.permute.xlu0 %2285 }
 0x4f3   :  { %v3892_v37 = vpop.f32.mrb[133].mxu1 }
 0x4f4   :  { %v5926_v42 = vpack.c.bf16 %v2944_v13, %v2943_v54  ;;  %v3893_v11 = vadd.f32 %v3892_v37, %v3891_v5  ;;  %v3894_v17 = vpop.f32.mrb[134].mxu1  ;;  %v5935_v5 = vpop.permute.xlu1 %2290 }
 0x4f5   :  { %v3895_v2 = vpop.f32.mrb[135].mxu1 }
 0x4f6   :  { %v2849_v12 = vadd.f32 %v3893_v11, %v2688_v30  ;;  %v3896_v24 = vadd.f32 %v3895_v2, %v3894_v17  ;;  %v2206_v2 = vpop.permute.xlu0 %2205 }
 0x4f7   :  { %v2704_v48 = vadd.f32 %v5840_v20, %v2206_v2 }
 0x4f8   :  { %v2852_v23 = vadd.f32 %v3896_v24, %v2691_v63  ;;  %v2945_v55 = vmax.f32 %v2849_v12, 0.0 }
 0x4fa   :  { %v2946_v29 = vmax.f32 %v2852_v23, 0.0  ;;  %v3897_v22 = vpop.f32.mrb[136].mxu1  ;;  %v2211_v23 = vpop.permute.xlu1 %2210 }
 0x4fb   :  { %v3898_v31 = vpop.f32.mrb[137].mxu1  ;;  %v2707_v36 = vadd.f32 %v5842_v46, %v2211_v23 }
 0x4fc   :  { %v5930_v33 = vpack.c.bf16 %v2946_v29, %v2945_v55  ;;  %v3899_v15 = vadd.f32 %v3898_v31, %v3897_v22  ;;  %v3900_v56 = vpop.f32.mrb[138].mxu1 }
 0x4fd   :  { %v3901_v54 = vpop.f32.mrb[139].mxu1 }
 0x4fe   :  { %v2857_v45 = vadd.f32 %v3899_v15, %v2696_v21  ;;  %v3902_v13 = vadd.f32 %v3901_v54, %v3900_v56  ;;  %v2712_v54 = vadd.f32 %v5844_v18, %v5860_v16 }
 0x500   :  { %v2860_v37 = vadd.f32 %v3902_v13, %v2699_v10  ;;  %v2947_v30 = vmax.f32 %v2857_v45, 0.0 }
 0x502   :  { %v2948_v11 = vmax.f32 %v2860_v37, 0.0  ;;  %v3903_v17 = vpop.f32.mrb[140].mxu1  ;;  %v2715_v37 = vadd.f32 %v5846_v59, %v5862_v62 }
 0x503   :  { %v3904_v63 = vpop.f32.mrb[141].mxu1 }
 0x504   :  { %v5938_v12 = vpack.c.bf16 %v2948_v11, %v2947_v30  ;;  %v3905_v24 = vadd.f32 %v3904_v63, %v3903_v17  ;;  %v3906_v28 = vpop.f32.mrb[142].mxu1 }
 0x505   :  { %v3907_v55 = vpop.f32.mrb[143].mxu1 }
 0x506   :  { %v2865_v25 = vadd.f32 %v3905_v24, %v2704_v48  ;;  %v3908_v29 = vadd.f32 %v3907_v55, %v3906_v28  ;;  %v2720_v24 = vadd.f32 %v5848_v60, %v5870_v26  ;;  %v2723_v55 = vadd.f32 %v5850_v19, %v5874_v27 }
 0x507   :  { %v2728_v60 = vadd.f32 %v5852_v61, %v5880_v43  ;;  %v2731_v19 = vadd.f32 %v5854_v50, %v5882_v32  ;;  %v2736_v61 = vadd.f32 %v5856_v6, %v5889_v7  ;;  %v2739_v50 = vadd.f32 %v5858_v3, %v5892_v8 }
 0x508   :  { %v2868_v22 = vadd.f32 %v3908_v29, %v2707_v36  ;;  %v2949_v31 = vmax.f32 %v2865_v25, 0.0  ;;  %v2744_v6 = vadd.f32 %v5864_v4, %v5901_v52  ;;  %v2747_v3 = vadd.f32 %v5866_v47, %v5903_v1 }
 0x509   :  { %v2752_v4 = vadd.f32 %v5868_v39, %v5912_v40  ;;  %v2755_v47 = vadd.f32 %v5872_v0, %v5915_v57  ;;  %v2760_v39 = vadd.f32 %v5876_v14, %v5921_v38  ;;  %v2763_v0 = vadd.f32 %v5878_v51, %v5923_v41 }
 0x50a   :  { %v2950_v21 = vmax.f32 %v2868_v22, 0.0  ;;  %v3909_v15 = vpop.f32.mrb[144].mxu1  ;;  %v2768_v14 = vadd.f32 %v5884_v58, %v5932_v35  ;;  %v2771_v51 = vadd.f32 %v5886_v9, %v5935_v5  ;;  %v4363_v58 = vld [vmem:[%s6064_s9] ss:$8 sps:$4 sm:$0xff]   ;;  %v4366_v9 = vld [vmem:[%s6064_s9 + $0x14] ss:$8 sps:$4 sm:$0xff]  }
 0x50b   :  { %v3910_v56 = vpop.f32.mrb[145].mxu1  ;;  %v4368_v35 = vld [vmem:[%s6064_s9 + $0x10] ss:$8 sps:$4 sm:$0xff]   ;;  %v4369_v5 = vld [vmem:[%s6064_s9 + $0x24] ss:$8 sps:$4 sm:$0xff]  }
 0x50c   :  { %v5943_v10 = vpack.c.bf16 %v2950_v21, %v2949_v31  ;;  %v3911_v20 = vadd.f32 %v3910_v56, %v3909_v15  ;;  %v3912_v45 = vpop.f32.mrb[146].mxu1 }
 0x50d   :  { %v3913_v13 = vpop.f32.mrb[147].mxu1 }
 0x50e   :  { %v2873_v30 = vadd.f32 %v3911_v20, %v2712_v54  ;;  %v3914_v46 = vadd.f32 %v3913_v13, %v3912_v45 }
 0x510   :  { %v2876_v11 = vadd.f32 %v3914_v46, %v2715_v37  ;;  %v2951_v17 = vmax.f32 %v2873_v30, 0.0 }
 0x512   :  { %v2952_v2 = vmax.f32 %v2876_v11, 0.0  ;;  %v3915_v63 = vpop.f32.mrb[148].mxu1 }
 0x513   :  { %v3916_v48 = vpop.f32.mrb[149].mxu1 }
 0x514   :  { %v3917_v28 = vadd.f32 %v3916_v48, %v3915_v63  ;;  %v3918_v18 = vpop.f32.mrb[150].mxu1  ;;  %v2975_v16 = vpack.c.bf16 %v2952_v2, %v2951_v17 }
 0x515   :  { %v3919_v23 = vpop.f32.mrb[151].mxu1 }
 0x516   :  { %v2881_v36 = vadd.f32 %v3917_v28, %v2720_v24  ;;  %v3920_v25 = vadd.f32 %v3919_v23, %v3918_v18  ;;  %3957 = vmatprep.subr.bf16.mxu0 %v2975_v16 }
 0x517   :  { %3958 = vmatpush3.bf16.msra.mxu0 %v5898_v34 }
 0x518   :  { %v2884_v59 = vadd.f32 %v3920_v25, %v2723_v55  ;;  %v2953_v62 = vmax.f32 %v2881_v36, 0.0 }
 0x51a   :  { %v2954_v29 = vmax.f32 %v2884_v59, 0.0  ;;  %v3921_v22 = vpop.f32.mrb[152].mxu1 }
 0x51b   :  { %v3922_v31 = vpop.f32.mrb[153].mxu1 }
 0x51c   :  { %v3923_v26 = vadd.f32 %v3922_v31, %v3921_v22  ;;  %v3924_v21 = vpop.f32.mrb[154].mxu1  ;;  %v2976_v15 = vpack.c.bf16 %v2954_v29, %v2953_v62 }
 0x51d   :  { %v3925_v56 = vpop.f32.mrb[155].mxu1 }
 0x51e   :  { %v2889_v27 = vadd.f32 %v3923_v26, %v2728_v60  ;;  %v3926_v54 = vadd.f32 %v3925_v56, %v3924_v21  ;;  %3959 = vmatprep.subr.bf16.mxu0 %v2976_v15 }
 0x51f   :  { %3960 = vmatpush3.bf16.msra.mxu0 %v5906_v53 }
 0x520   :  { %v2892_v34 = vadd.f32 %v3926_v54, %v2731_v19  ;;  %v2955_v20 = vmax.f32 %v2889_v27, 0.0 }
 0x522   :  { %v2956_v45 = vmax.f32 %v2892_v34, 0.0  ;;  %v3927_v13 = vpop.f32.mrb[156].mxu1 }
 0x523   :  { %v3928_v37 = vpop.f32.mrb[157].mxu1 }
 0x524   :  { %v3929_v43 = vadd.f32 %v3928_v37, %v3927_v13  ;;  %v3930_v30 = vpop.f32.mrb[158].mxu1  ;;  %v2977_v46 = vpack.c.bf16 %v2956_v45, %v2955_v20 }
 0x525   :  { %v3931_v11 = vpop.f32.mrb[159].mxu1 }
 0x526   :  { %v2897_v32 = vadd.f32 %v3929_v43, %v2736_v61  ;;  %v3932_v17 = vadd.f32 %v3931_v11, %v3930_v30  ;;  %3961 = vmatprep.subr.bf16.mxu0 %v2977_v46 }
 0x527   :  { %3962 = vmatpush3.bf16.msra.mxu0 %v5910_v49 }
 0x528   :  { %v2900_v53 = vadd.f32 %v3932_v17, %v2739_v50  ;;  %v2957_v2 = vmax.f32 %v2897_v32, 0.0  ;;  %v4374_v32 = vld [vmem:[%s6064_s9 + $0x30] ss:$8 sps:$4 sm:$0xff]   ;;  %v4375_v17 = vld [vmem:[%s6064_s9 + $0x44] ss:$8 sps:$4 sm:$0xff]  }
 0x52a   :  { %v2958_v63 = vmax.f32 %v2900_v53, 0.0  ;;  %v3933_v48 = vpop.f32.mrb[160].mxu1  ;;  %v4377_v53 = vld [vmem:[%s6064_s9 + $0x40] ss:$8 sps:$4 sm:$0xff]  }
 0x52b   :  { %v3934_v24 = vpop.f32.mrb[161].mxu1 }
 0x52c   :  { %v3935_v7 = vadd.f32 %v3934_v24, %v3933_v48  ;;  %v3936_v28 = vpop.f32.mrb[162].mxu1  ;;  %v2978_v18 = vpack.c.bf16 %v2958_v63, %v2957_v2  ;;  %v4378_v2 = vld [vmem:[%s6064_s9 + $0x54] ss:$8 sps:$4 sm:$0xff]   ;;  %v4380_v63 = vld [vmem:[%s6064_s9 + $0x50] ss:$8 sps:$4 sm:$0xff]  }
 0x52d   :  { %v3937_v16 = vpop.f32.mrb[163].mxu1  ;;  %v4381_v48 = vld [vmem:[%s6064_s9 + $0x64] ss:$8 sps:$4 sm:$0xff]   ;;  %v4383_v24 = vld [vmem:[%s6064_s9 + $0x60] ss:$8 sps:$4 sm:$0xff]  }
 0x52e   :  { %v2905_v8 = vadd.f32 %v3935_v7, %v2744_v6  ;;  %v3938_v23 = vadd.f32 %v3937_v16, %v3936_v28  ;;  %3963 = vmatprep.subr.bf16.mxu0 %v2978_v18  ;;  %v4384_v6 = vld [vmem:[%s6064_s9 + $0x74] ss:$8 sps:$4 sm:$0xff]   ;;  %v4386_v7 = vld [vmem:[%s6064_s9 + $0x70] ss:$8 sps:$4 sm:$0xff]   ;;  %v4387_v28 = vld [vmem:[%s6066_s11] sm:$0xff]  }
 0x52f   :  { %3964 = vmatpush3.bf16.msra.mxu0 %v5918_v44  ;;  %4120 = vmatprep.mubr.bf16.mxu1 %v4387_v28 }
 0x530   :  { %v2908_v49 = vadd.f32 %v3938_v23, %v2747_v3  ;;  %v2959_v55 = vmax.f32 %v2905_v8, 0.0  ;;  %v3018_v23 = vpop.permute.xlu0 %3017 }
 0x532   :  { %v2960_v36 = vmax.f32 %v2908_v49, 0.0  ;;  %v3939_v25 = vpop.f32.mrb[164].mxu1 }
 0x533   :  { %v3940_v59 = vpop.f32.mrb[165].mxu1 }
 0x534   :  { %v3941_v52 = vadd.f32 %v3940_v59, %v3939_v25  ;;  %v3942_v62 = vpop.f32.mrb[166].mxu1  ;;  %v2979_v29 = vpack.c.bf16 %v2960_v36, %v2959_v55  ;;  %v3023_v25 = vpop.permute.xlu1 %3022 }
 0x535   :  { %v3943_v22 = vpop.f32.mrb[167].mxu1 }
 0x536   :  { %v2913_v1 = vadd.f32 %v3941_v52, %v2752_v4  ;;  %v3944_v31 = vadd.f32 %v3943_v22, %v3942_v62  ;;  %3965 = vmatprep.subr.bf16.mxu0 %v2979_v29 }
 0x537   :  { %3966 = vmatpush3.bf16.msra.mxu0 %v5926_v42 }
 0x538   :  { %v2916_v44 = vadd.f32 %v3944_v31, %v2755_v47  ;;  %v2961_v60 = vmax.f32 %v2913_v1, 0.0  ;;  %v3028_v31 = vpop.permute.xlu0 %3027 }
 0x53a   :  { %v2962_v26 = vmax.f32 %v2916_v44, 0.0  ;;  %v3945_v21 = vpop.f32.mrb[168].mxu1 }
 0x53b   :  { %v3946_v15 = vpop.f32.mrb[169].mxu1 }
 0x53c   :  { %v3947_v40 = vadd.f32 %v3946_v15, %v3945_v21  ;;  %v3948_v56 = vpop.f32.mrb[170].mxu1  ;;  %v2980_v19 = vpack.c.bf16 %v2962_v26, %v2961_v60  ;;  %v3033_v21 = vpop.permute.xlu1 %3032 }
 0x53d   :  { %v3949_v27 = vpop.f32.mrb[171].mxu1 }
 0x53e   :  { %v2921_v57 = vadd.f32 %v3947_v40, %v2760_v39  ;;  %v3950_v54 = vadd.f32 %v3949_v27, %v3948_v56  ;;  %3967 = vmatprep.subr.bf16.mxu0 %v2980_v19 }
 0x53f   :  { %3968 = vmatpush3.bf16.msra.mxu0 %v5930_v33 }
 0x540   :  { %v2924_v42 = vadd.f32 %v3950_v54, %v2763_v0  ;;  %v2963_v34 = vmax.f32 %v2921_v57, 0.0  ;;  %v3038_v54 = vpop.permute.xlu0 %3037 }
 0x542   :  { %v2964_v20 = vmax.f32 %v2924_v42, 0.0  ;;  %v3951_v45 = vpop.f32.mrb[172].mxu1 }
 0x543   :  { %v3952_v13 = vpop.f32.mrb[173].mxu1 }
 0x544   :  { %v3953_v38 = vadd.f32 %v3952_v13, %v3951_v45  ;;  %v3954_v37 = vpop.f32.mrb[174].mxu1  ;;  %v2981_v61 = vpack.c.bf16 %v2964_v20, %v2963_v34  ;;  %v3043_v45 = vpop.permute.xlu1 %3042 }
 0x545   :  { %v3955_v43 = vpop.f32.mrb[175].mxu1 }
 0x546   :  { %v2929_v41 = vadd.f32 %v3953_v38, %v2768_v14  ;;  %v3956_v30 = vadd.f32 %v3955_v43, %v3954_v37  ;;  %3969 = vmatprep.subr.bf16.mxu0 %v2981_v61 }
 0x547   :  { %3970 = vmatpush3.bf16.msra.mxu0 %v5938_v12  ;;  %v4371_v12 = vld [vmem:[%s6064_s9 + $0x20] ss:$8 sps:$4 sm:$0xff]  }
 0x548   :  { %v2932_v33 = vadd.f32 %v3956_v30, %v2771_v51  ;;  %v2965_v46 = vmax.f32 %v2929_v41, 0.0  ;;  %v3048_v30 = vpop.permute.xlu0 %3047 }
 0x54a   :  { %v2966_v11 = vmax.f32 %v2932_v33, 0.0 }
 0x54c   :  { %v2982_v50 = vpack.c.bf16 %v2966_v11, %v2965_v46 }
 0x54e   :  { %3971 = vmatprep.subr.bf16.mxu0 %v2982_v50  ;;  %v3053_v50 = vpop.permute.xlu1 %3052 }
 0x54f   :  { %3972 = vmatpush3.bf16.msra.mxu0 %v5943_v10  ;;  %v4372_v10 = vld [vmem:[%s6064_s9 + $0x34] ss:$8 sps:$4 sm:$0xff]  }
 0x552   :  { %3208 = vmatmul.mubr.bf16.vlgmr.msra.gmra.mrb[128].mxu0 %v4363_v58 }
 0x553   :  { %3215 = vmatprep.mubr.bf16.mxu0 %v4366_v9 }
 0x55a   :  { %3216 = vmatmul.mubr.bf16.gmra.mrb[132].mxu0 %v4368_v35 }
 0x55b   :  { %3223 = vmatprep.mubr.bf16.mxu0 %v4369_v5 }
 0x562   :  { %3224 = vmatmul.mubr.bf16.gmra.mrb[136].mxu0 %v4371_v12 }
 0x563   :  { %3231 = vmatprep.mubr.bf16.mxu0 %v4372_v10 }
 0x56a   :  { %3232 = vmatmul.mubr.bf16.gmra.mrb[140].mxu0 %v4374_v32 }
 0x56b   :  { %3239 = vmatprep.mubr.bf16.mxu0 %v4375_v17 }
 0x572   :  { %3240 = vmatmul.mubr.bf16.gmra.mrb[144].mxu0 %v4377_v53  ;;  %v3058_v53 = vpop.permute.xlu0 %3057 }
 0x573   :  { %3247 = vmatprep.mubr.bf16.mxu0 %v4378_v2 }
 0x57a   :  { %3248 = vmatmul.mubr.bf16.gmra.mrb[148].mxu0 %v4380_v63 }
 0x57b   :  { %3255 = vmatprep.mubr.bf16.mxu0 %v4381_v48 }
 0x582   :  { %3256 = vmatmul.mubr.bf16.gmra.mrb[152].mxu0 %v4383_v24  ;;  %v3063_v24 = vpop.permute.xlu1 %3062 }
 0x583   :  { %3263 = vmatprep.mubr.bf16.mxu0 %v4384_v6 }
 0x58a   :  { %3264 = vmatmul.mubr.bf16.gmra.mrb[156].mxu0 %v4386_v7 }
 0x625   :  { %v3973_v18 = vpop.f32.mrb[128].mxu0 }
 0x626   :  { %v3974_v16 = vpop.f32.mrb[129].mxu0 }
 0x627   :  { %v3975_v3 = vadd.f32 %v3974_v16, %v3973_v18  ;;  %v3976_v8 = vpop.f32.mrb[130].mxu0 }
 0x628   :  { %v3977_v49 = vpop.f32.mrb[131].mxu0 }
 0x629   :  { %v3210_v55 = vadd.f32 %v3975_v3, %v3018_v23  ;;  %v3978_v36 = vadd.f32 %v3977_v49, %v3976_v8  ;;  %v3068_v49 = vpop.permute.xlu0 %3067 }
 0x62b   :  { %v3213_v59 = vadd.f32 %v3978_v36, %v3023_v25  ;;  %v3272_v4 = vmax.f32 %v3210_v55, 0.0 }
 0x62d   :  { %v3273_v52 = vmax.f32 %v3213_v59, 0.0  ;;  %v3979_v62 = vpop.f32.mrb[132].mxu0  ;;  %v3073_v59 = vpop.permute.xlu1 %3072 }
 0x62e   :  { %v3980_v29 = vpop.f32.mrb[133].mxu0 }
 0x62f   :  { %v3981_v22 = vadd.f32 %v3980_v29, %v3979_v62  ;;  %v3982_v47 = vpop.f32.mrb[134].mxu0  ;;  %v3288_v1 = vpack.c.bf16 %v3273_v52, %v3272_v4 }
 0x630   :  { %v3983_v44 = vpop.f32.mrb[135].mxu0 }
 0x631   :  { %v3218_v60 = vadd.f32 %v3981_v22, %v3028_v31  ;;  %v3984_v26 = vadd.f32 %v3983_v44, %v3982_v47  ;;  %4104 = vmatprep.subr.bf16.mxu1 %v3288_v1  ;;  %v3078_v44 = vpop.permute.xlu0 %3077 }
 0x632   :  { %4105 = vmatpush3.bf16.msra.mxu1 %v3288_v1 }
 0x633   :  { %v3221_v15 = vadd.f32 %v3984_v26, %v3033_v21  ;;  %v3274_v39 = vmax.f32 %v3218_v60, 0.0 }
 0x635   :  { %v3275_v40 = vmax.f32 %v3221_v15, 0.0  ;;  %v3985_v56 = vpop.f32.mrb[136].mxu0  ;;  %v3083_v15 = vpop.permute.xlu1 %3082 }
 0x636   :  { %v3986_v19 = vpop.f32.mrb[137].mxu0 }
 0x637   :  { %v3987_v27 = vadd.f32 %v3986_v19, %v3985_v56  ;;  %v3988_v0 = vpop.f32.mrb[138].mxu0  ;;  %v3289_v57 = vpack.c.bf16 %v3275_v40, %v3274_v39 }
 0x638   :  { %v3989_v42 = vpop.f32.mrb[139].mxu0 }
 0x639   :  { %v3226_v34 = vadd.f32 %v3987_v27, %v3038_v54  ;;  %v3990_v20 = vadd.f32 %v3989_v42, %v3988_v0  ;;  %4106 = vmatprep.subr.bf16.mxu1 %v3289_v57  ;;  %v3088_v42 = vpop.permute.xlu0 %3087 }
 0x63a   :  { %4107 = vmatpush3.bf16.msra.mxu1 %v3289_v57 }
 0x63b   :  { %v3229_v13 = vadd.f32 %v3990_v20, %v3043_v45  ;;  %v3276_v14 = vmax.f32 %v3226_v34, 0.0 }
 0x63d   :  { %v3277_v38 = vmax.f32 %v3229_v13, 0.0  ;;  %v3991_v37 = vpop.f32.mrb[140].mxu0  ;;  %v3093_v13 = vpop.permute.xlu1 %3092 }
 0x63e   :  { %v3992_v61 = vpop.f32.mrb[141].mxu0 }
 0x63f   :  { %v3993_v43 = vadd.f32 %v3992_v61, %v3991_v37  ;;  %v3994_v51 = vpop.f32.mrb[142].mxu0  ;;  %v3290_v41 = vpack.c.bf16 %v3277_v38, %v3276_v14 }
 0x640   :  { %v3995_v33 = vpop.f32.mrb[143].mxu0 }
 0x641   :  { %v3234_v46 = vadd.f32 %v3993_v43, %v3048_v30  ;;  %v3996_v11 = vadd.f32 %v3995_v33, %v3994_v51  ;;  %4108 = vmatprep.subr.bf16.mxu1 %v3290_v41  ;;  %v4388_v43 = vld [vmem:[%s6066_s11 + $0x8] sm:$0xff]   ;;  %v4389_v51 = vld [vmem:[%s6066_s11 + $0x10] sm:$0xff]   ;;  %v4416_v30 = vmov 0.0   ;;  %v3315_v33 = vpop.permute.xlu0 %3314 }
 0x642   :  { %4109 = vmatpush3.bf16.msra.mxu1 %v3290_v41  ;;  %v4390_v41 = vld [vmem:[%s6066_s11 + $0x18] sm:$0xff]  }
 0x643   :  { %v3237_v58 = vadd.f32 %v3996_v11, %v3053_v50  ;;  %v3278_v9 = vmax.f32 %v3234_v46, 0.0  ;;  %v3320_v46 = vpop.permute.xlu1 %3319 }
 0x645   :  { %v3279_v35 = vmax.f32 %v3237_v58, 0.0  ;;  %v3997_v5 = vpop.f32.mrb[144].mxu0  ;;  %v3325_v11 = vpop.permute.xlu0 %3324 }
 0x646   :  { %v3998_v12 = vpop.f32.mrb[145].mxu0 }
 0x647   :  { %v3999_v10 = vadd.f32 %v3998_v12, %v3997_v5  ;;  %v4000_v32 = vpop.f32.mrb[146].mxu0  ;;  %v3291_v17 = vpack.c.bf16 %v3279_v35, %v3278_v9  ;;  %v3330_v50 = vpop.permute.xlu1 %3329 }
 0x648   :  { %v4001_v2 = vpop.f32.mrb[147].mxu0 }
 0x649   :  { %v3242_v63 = vadd.f32 %v3999_v10, %v3058_v53  ;;  %v4002_v48 = vadd.f32 %v4001_v2, %v4000_v32  ;;  %4110 = vmatprep.subr.bf16.mxu1 %v3291_v17  ;;  %v3335_v5 = vpop.permute.xlu0 %3334 }
 0x64a   :  { %4111 = vmatpush3.bf16.msra.mxu1 %v3291_v17 }
 0x64b   :  { %v3245_v6 = vadd.f32 %v4002_v48, %v3063_v24  ;;  %v3280_v7 = vmax.f32 %v3242_v63, 0.0  ;;  %v3340_v53 = vpop.permute.xlu1 %3339 }
 0x64d   :  { %v3281_v28 = vmax.f32 %v3245_v6, 0.0  ;;  %v4003_v18 = vpop.f32.mrb[148].mxu0 }
 0x64e   :  { %v4004_v16 = vpop.f32.mrb[149].mxu0 }
 0x64f   :  { %v4005_v3 = vadd.f32 %v4004_v16, %v4003_v18  ;;  %v4006_v8 = vpop.f32.mrb[150].mxu0  ;;  %v3292_v23 = vpack.c.bf16 %v3281_v28, %v3280_v7  ;;  %v3345_v28 = vpop.permute.xlu0 %3344 }
 0x650   :  { %v4007_v55 = vpop.f32.mrb[151].mxu0 }
 0x651   :  { %v3250_v36 = vadd.f32 %v4005_v3, %v3068_v49  ;;  %v4008_v25 = vadd.f32 %v4007_v55, %v4006_v8  ;;  %4112 = vmatprep.subr.bf16.mxu1 %v3292_v23 }
 0x652   :  { %4113 = vmatpush3.bf16.msra.mxu1 %v3292_v23  ;;  %v3350_v23 = vpop.permute.xlu1 %3349 }
 0x653   :  { %v3253_v4 = vadd.f32 %v4008_v25, %v3073_v59  ;;  %v3282_v52 = vmax.f32 %v3250_v36, 0.0 }
 0x655   :  { %v3283_v62 = vmax.f32 %v3253_v4, 0.0  ;;  %v4009_v29 = vpop.f32.mrb[152].mxu0 }
 0x656   :  { %v4010_v22 = vpop.f32.mrb[153].mxu0 }
 0x657   :  { %v4011_v47 = vadd.f32 %v4010_v22, %v4009_v29  ;;  %v4012_v1 = vpop.f32.mrb[154].mxu0  ;;  %v3293_v31 = vpack.c.bf16 %v3283_v62, %v3282_v52 }
 0x658   :  { %v4013_v60 = vpop.f32.mrb[155].mxu0 }
 0x659   :  { %v3258_v26 = vadd.f32 %v4011_v47, %v3078_v44  ;;  %v4014_v21 = vadd.f32 %v4013_v60, %v4012_v1  ;;  %4114 = vmatprep.subr.bf16.mxu1 %v3293_v31  ;;  %v3453_v1 = vld [vmem:[%s6068_s13] sm:$0xf] }
 0x65a   :  { %4115 = vmatpush3.bf16.msra.mxu1 %v3293_v31  ;;  %v3458_v31 = vpop.permute.xlu0 %3457 }
 0x65b   :  { %v3261_v39 = vadd.f32 %v4014_v21, %v3083_v15  ;;  %v3284_v40 = vmax.f32 %v3258_v26, 0.0 }
 0x65d   :  { %v3285_v56 = vmax.f32 %v3261_v39, 0.0  ;;  %v4015_v19 = vpop.f32.mrb[156].mxu0 }
 0x65e   :  { %v4016_v27 = vpop.f32.mrb[157].mxu0 }
 0x65f   :  { %v4017_v0 = vadd.f32 %v4016_v27, %v4015_v19  ;;  %v4018_v57 = vpop.f32.mrb[158].mxu0  ;;  %v3294_v54 = vpack.c.bf16 %v3285_v56, %v3284_v40 }
 0x660   :  { %v4019_v34 = vpop.f32.mrb[159].mxu0 }
 0x661   :  { %v3266_v20 = vadd.f32 %v4017_v0, %v3088_v42  ;;  %v4020_v45 = vadd.f32 %v4019_v34, %v4018_v57  ;;  %4116 = vmatprep.subr.bf16.mxu1 %v3294_v54 }
 0x662   :  { %4117 = vmatpush3.bf16.msra.mxu1 %v3294_v54 }
 0x663   :  { %v3269_v14 = vadd.f32 %v4020_v45, %v3093_v13  ;;  %v3286_v38 = vmax.f32 %v3266_v20, 0.0 }
 0x665   :  { %v3287_v37 = vmax.f32 %v3269_v14, 0.0 }
 0x667   :  { %v3295_v61 = vpack.c.bf16 %v3287_v37, %v3286_v38 }
 0x669   :  { %4118 = vmatprep.subr.bf16.mxu1 %v3295_v61 }
 0x66a   :  { %4119 = vmatpush3.bf16.msra.mxu1 %v3295_v61 }
 0x66b   :  { %4128 = vmatprep.subr.bf16.mxu1 %v4416_v30 }
 0x66d   :  { %4121 = vmatmul.mubr.bf16.vlgmr.msra.gmra.mrb[176].mxu1 %v4388_v43 }
 0x66e   :  { %4124 = vmatprep.mubr.bf16.mxu1 %v4389_v51 }
 0x675   :  { %4125 = vmatmul.mubr.bf16.gmra.mrb[180].mxu1 %v4390_v41 }
 0x676   :  { %4136 = vmatprep.mubr.msk.bf16.mxu1 %vm4417_vm2, %v4416_v30 }
 0x740   :  { %v4122_v58 = vpop.f32.mrb[176].mxu1 }
 0x741   :  { %v3419_v9 = vadd.f32 %v4122_v58, %v3325_v11  ;;  %v3410_v35 = vpop.f32.mrb[177].mxu1 }
 0x742   :  { %v3411_v12 = vadd.f32 %v3410_v35, %v3315_v33  ;;  %v4123_v10 = vpop.f32.mrb[178].mxu1 }
 0x743   :  { %v3422_v32 = vadd.f32 %v4123_v10, %v3330_v50  ;;  %v3413_v17 = vpop.f32.mrb[179].mxu1  ;;  %v3443_v63 = vmax.f32 %v3419_v9, 0.0 }
 0x744   :  { %v3414_v2 = vadd.f32 %v3413_v17, %v3320_v46  ;;  %v3441_v24 = vmax.f32 %v3411_v12, 0.0 }
 0x745   :  { %v3444_v48 = vmax.f32 %v3422_v32, 0.0 }
 0x746   :  { %v3442_v6 = vmax.f32 %v3414_v2, 0.0 }
 0x747   :  { %v3450_v7 = vpack.c.bf16 %v3444_v48, %v3443_v63 }
 0x748   :  { %v3449_v18 = vpack.c.bf16 %v3442_v6, %v3441_v24  ;;  %v4126_v16 = vpop.f32.mrb[180].mxu1 }
 0x749   :  { %v3435_v3 = vadd.f32 %v4126_v16, %v3345_v28  ;;  %v3426_v8 = vpop.f32.mrb[181].mxu1 }
 0x74a   :  { %v3427_v49 = vadd.f32 %v3426_v8, %v3335_v5  ;;  %v4127_v55 = vpop.f32.mrb[182].mxu1  ;;  %4129 = vmatpush3.bf16.msra.mxu1 %v3449_v18 }
 0x74b   :  { %v3438_v36 = vadd.f32 %v4127_v55, %v3350_v23  ;;  %v3429_v25 = vpop.f32.mrb[183].mxu1  ;;  %4130 = vmatprep.subr.bf16.mxu1 %v4416_v30  ;;  %v3447_v4 = vmax.f32 %v3435_v3, 0.0 }
 0x74c   :  { %v3430_v59 = vadd.f32 %v3429_v25, %v3340_v53  ;;  %v3445_v62 = vmax.f32 %v3427_v49, 0.0 }
 0x74d   :  { %v3448_v52 = vmax.f32 %v3438_v36, 0.0 }
 0x74e   :  { %v3446_v29 = vmax.f32 %v3430_v59, 0.0  ;;  %4131 = vmatpush3.bf16.msra.mxu1 %v3450_v7 }
 0x74f   :  { %v3452_v22 = vpack.c.bf16 %v3448_v52, %v3447_v4  ;;  %4132 = vmatprep.subr.bf16.mxu1 %v4416_v30 }
 0x750   :  { %v3451_v47 = vpack.c.bf16 %v3446_v29, %v3445_v62 }
 0x752   :  { %4133 = vmatpush3.bf16.msra.mxu1 %v3451_v47 }
 0x753   :  { %4134 = vmatprep.subr.bf16.mxu1 %v4416_v30 }
 0x756   :  { %4135 = vmatpush3.bf16.msra.mxu1 %v3452_v22 }
 0x759   :  { %4137 = vmatmul.mubr.msk.bf16.vlgmr.msra.gmra.mrb[184].mxu1 %vm3460_vm3, %v3453_v1 }
 0x82c   :  { %v3498_v44 = vpop.f32.mrb[184].mxu1 }
 0x82d   :  { %v3499_v60 = vadd.f32 %v3498_v44, %v3458_v31  ;;  %v4138_v26 = vpop.f32.mrb[185].mxu1 }
 0x82e   :  { %v3501_v21 = vpop.f32.mrb[186].mxu1 }
 0x82f   :  { %3504 = vst [vmem:[#allocation2] sm:$0xff] %v3499_v60  ;;  %v4139_v15 = vpop.f32.mrb[187].mxu1 }
 0x830   :  { %4402 = shalt.err (!%p4399_p4)
}
 0x831   :  { %s4403_s18 = scalar_lea.hbm %s6070_s15, 128 }
 0x832   :  { %p4404_p5 = scmp.ne.s32.totalorder %s6070_s15, %s4403_s18  ;;  %p4407_p6 = scmp.lt.u32.totalorder %s4403_s18, %s6070_s15 }
 0x834   :  { %p4409_p7 = pnand %p4407_p6, %p4404_p5 }
 0x836   :  { %4412 = shalt.err (!%p4409_p7)
}
 0x837   :  { %3514 = dma.vmem_to_hbm [thread:$0]  %s3512_s10, 128, %s6070_s15, [#allocation3]  }
 0x838   :  { %4413 = dma.done.wait [#allocation3], 128  }
 0x839   :  { %4414 = vsyncadd [#allocation3], 4294967168 }
 0x83a   :  { %3518 = vsyncpa [#allocation3], 1 }

</bundles_post_ra>
